<compile_context>
chip_gen: v7x
topology: tpu7x:2x2x1
jax: 0.10.0
libtpu: 0.0.40
codegen_flags: <defaults>
</compile_context>

<pallas_src>
import jax
import jax.numpy as jnp
from jax import lax
from jax.experimental import pallas as pl
from jax.experimental.pallas import tpu as pltpu


def _round_up(x, m):
    return ((x + m - 1) // m) * m


def _pick_tile(total, unit, cap):
    """Largest multiple of `unit` that divides `total` and is <= cap."""
    best = unit
    t = unit
    while t <= min(total, cap):
        if total % t == 0:
            best = t
        t += unit
    return best


# ----------------------------------------------------------------------------
# Kernel 1: hoisted input projection + fused bidirectional LSTM recurrence
# ----------------------------------------------------------------------------
def _bilstm_recurrence_kernel(
    emb_ref,     # (S*Bp, E)    f32  time-major embedded tokens (row t*Bp+b)
    wih_ref,     # (E, 8*Hp)    [fwd i,f,o,g | bwd i,f,o,g]  (W_ih^T, padded)
    whh_f_ref,   # (Hp, 4*Hp)   forward  W_hh^T  (gate order [i,f,o,g], padded)
    whh_b_ref,   # (Hp, 4*Hp)   backward W_hh^T
    b_ref,       # (1, 8*Hp)    [fwd b | bwd b]  (b_ih + b_hh)
    h0_ref,      # (2, Bp, Hp)  initial hidden (dir, batch, hidden)
    c0_ref,      # (2, Bp, Hp)  initial cell
    hseq_ref,    # OUT (S*Bp, 2*Hp)  fwd hidden -> cols [:Hp], bwd -> cols [Hp:]
    hn_ref,      # OUT (2, Bp, Hp)
    cn_ref,      # OUT (2, Bp, Hp)
    gx_ref,      # scratch (S*Bp, 8*Hp)  hoisted input-projection gates
):
    SB = emb_ref.shape[0]
    Bp = hn_ref.shape[1]
    Hp = hn_ref.shape[2]
    S = SB // Bp
    H4 = 4 * Hp

    # ---- hoisted input projection for BOTH directions (one big lane-dense matmul) ----
    gx_ref[...] = (
        jnp.dot(emb_ref[...], wih_ref[...], preferred_element_type=jnp.float32)
        + b_ref[...]
    )

    whh_f = whh_f_ref[...]
    whh_b = whh_b_ref[...]

    def step(h, c, gx, whh):
        gates = gx + jnp.dot(h, whh, preferred_element_type=jnp.float32)
        # gate order [i | f | o | g]: one contiguous sigmoid slice, one tanh slice
        sig = jax.nn.sigmoid(gates[:, : 3 * Hp])
        g = jnp.tanh(gates[:, 3 * Hp:])
        i_g = sig[:, :Hp]
        f_g = sig[:, Hp: 2 * Hp]
        o_g = sig[:, 2 * Hp: 3 * Hp]
        c_new = f_g * c + i_g * g
        h_new = o_g * jnp.tanh(c_new)
        return h_new, c_new

    # ---- fused forward (t) + backward (S-1-t) recurrence ----
    def body(t, carry):
        h_f, c_f, h_b, c_b = carry
        row_f = pl.multiple_of(t * Bp, Bp)
        row_b = pl.multiple_of((S - 1 - t) * Bp, Bp)
        gx_f = gx_ref[pl.ds(row_f, Bp), 0:H4]          # (Bp, 4Hp)
        gx_b = gx_ref[pl.ds(row_b, Bp), H4:2 * H4]     # (Bp, 4Hp)
        h_f, c_f = step(h_f, c_f, gx_f, whh_f)
        h_b, c_b = step(h_b, c_b, gx_b, whh_b)
        hseq_ref[pl.ds(row_f, Bp), 0:Hp] = h_f
        hseq_ref[pl.ds(row_b, Bp), Hp:2 * Hp] = h_b
        return (h_f, c_f, h_b, c_b)

    unroll = True if S <= 32 else 4
    h_f, c_f, h_b, c_b = lax.fori_loop(
        0, S, body, (h0_ref[0], c0_ref[0], h0_ref[1], c0_ref[1]), unroll=unroll)

    # PyTorch convention: h_n[0] = forward last, h_n[1] = backward last
    hn_ref[0] = h_f
    hn_ref[1] = h_b
    cn_ref[0] = c_f
    cn_ref[1] = c_b


# ----------------------------------------------------------------------------
# Kernel 2: dense vocab projection, tiled over (rows, vocab)
# ----------------------------------------------------------------------------
def _dense_proj_kernel(h_ref, w_ref, b_ref, out_ref):
    out_ref[...] = (
        jnp.dot(h_ref[...], w_ref[...], preferred_element_type=jnp.float32)
        + b_ref[...]
    )


# ----------------------------------------------------------------------------
# Wrapper (mirrors RNNModule.forward: logits (B, S, V), state (h_n, c_n))
# ----------------------------------------------------------------------------
def rnn_forward(kp, x, prev_state):
    h0, c0 = prev_state                          # each (2, B, H)
    B, S = x.shape
    H = int(h0.shape[-1])
    V = int(kp["embedding"].shape[0])
    E = int(kp["embedding"].shape[1])
    Hp = int(kp["whh_f"].shape[0])
    Vp = int(kp["dense_w"].shape[1])
    Bp = _round_up(B, 8)
    SB = S * Bp

    # Embedding gather is data-dependent glue; done in plain JAX.
    emb = kp["embedding"][x].astype(jnp.float32)          # (B, S, E)
    emb = jnp.transpose(emb, (1, 0, 2))                   # (S, B, E) time-major
    emb = jnp.pad(emb, ((0, 0), (0, Bp - B), (0, 0))).reshape(SB, E)

    pad_state = lambda a: jnp.pad(a, ((0, 0), (0, Bp - B), (0, Hp - H)))
    h0p, c0p = pad_state(h0), pad_state(c0)

    vmem = pl.BlockSpec(memory_space=pltpu.MemorySpace.VMEM)

    rec_cost = pl.CostEstimate(
        flops=int(2 * SB * E * 8 * Hp + S * 2 * (2 * Bp * Hp * 4 * Hp) + S * 2 * Bp * 8 * Hp),
        transcendentals=int(S * 2 * Bp * 5 * Hp),
        bytes_accessed=int(4 * (SB * E + E * 8 * Hp + 2 * Hp * 4 * Hp + 8 * Hp
                                + 4 * Bp * Hp + SB * 2 * Hp + 4 * Bp * Hp + SB * 8 * Hp)),
    )
    hseq, hn_p, cn_p = pl.pallas_call(
        _bilstm_recurrence_kernel,
        out_shape=(
            jax.ShapeDtypeStruct((SB, 2 * Hp), jnp.float32),   # hidden sequence (fwd|bwd)
            jax.ShapeDtypeStruct((2, Bp, Hp), jnp.float32),    # h_n
            jax.ShapeDtypeStruct((2, Bp, Hp), jnp.float32),    # c_n
        ),
        in_specs=[vmem] * 7,
        out_specs=(vmem, vmem, vmem),
        scratch_shapes=[pltpu.VMEM((SB, 8 * Hp), jnp.float32)],
        compiler_params=pltpu.CompilerParams(vmem_limit_bytes=64 * 1024 * 1024),
        cost_estimate=rec_cost,
    )(emb, kp["wih_all"], kp["whh_f"], kp["whh_b"], kp["b_all"], h0p, c0p)

    # Vocab projection: grid over (row tiles, vocab tiles), both parallel.
    TM = _pick_tile(SB, 8, 512)
    TV = _pick_tile(Vp, 128, 512)
    proj_cost = pl.CostEstimate(
        flops=int(2 * SB * 2 * Hp * Vp),
        transcendentals=0,
        bytes_accessed=int(4 * (SB * 2 * Hp * (Vp // TV) + 2 * Hp * Vp * (SB // TM)
                                + Vp + SB * Vp)),
    )
    logits2 = pl.pallas_call(
        _dense_proj_kernel,
        out_shape=jax.ShapeDtypeStruct((SB, Vp), jnp.float32),
        grid_spec=pltpu.PrefetchScalarGridSpec(
            num_scalar_prefetch=0,
            grid=(SB // TM, Vp // TV),
            in_specs=[pl.BlockSpec((TM, 2 * Hp), lambda i, j: (i, 0)),
                      pl.BlockSpec((2 * Hp, TV), lambda i, j: (0, j)),
                      pl.BlockSpec((1, TV), lambda i, j: (0, j))],
            out_specs=pl.BlockSpec((TM, TV), lambda i, j: (i, j)),
        ),
        compiler_params=pltpu.CompilerParams(
            dimension_semantics=("parallel", "parallel"),
            vmem_limit_bytes=64 * 1024 * 1024),
        cost_estimate=proj_cost,
    )(hseq, kp["dense_w"], kp["dense_b"])

    logits = logits2.reshape(S, Bp, Vp)[:, :B, :V]        # strip padding
    logits = jnp.transpose(logits, (1, 0, 2))             # back to batch_first (B, S, V)
    h_n = hn_p[:, :B, :H]
    c_n = cn_p[:, :B, :H]
    return logits, (h_n, c_n)


# ----------------------------------------------------------------------------
# Parameter prep: torch layout -> kernel layout (reordered + padded)
# ----------------------------------------------------------------------------
def prepare_params(raw, lstm_size, Hp, Vp):
    H = lstm_size
    V = int(raw["dense_b"].shape[0])

    def gates_T(w):
        # w: (4H, X) torch gate order [i,f,g,o] -> (X, 4Hp), order [i,f,o,g], H padded to Hp
        blocks = [w[k * H:(k + 1) * H] for k in (0, 1, 3, 2)]
        blocks = [jnp.pad(b, ((0, Hp - H), (0, 0))) for b in blocks]
        return jnp.concatenate(blocks, axis=0).T

    def bias_(bih, bhh):
        b = bih + bhh
        blocks = [b[k * H:(k + 1) * H] for k in (0, 1, 3, 2)]
        return jnp.concatenate([jnp.pad(bl, (0, Hp - H)) for bl in blocks])

    wih_all = jnp.concatenate([gates_T(raw["wih_f"]), gates_T(raw["wih_b"])], axis=1)
    whh_f = jnp.pad(gates_T(raw["whh_f"]), ((0, Hp - H), (0, 0)))       # (Hp, 4Hp)
    whh_b = jnp.pad(gates_T(raw["whh_b"]), ((0, Hp - H), (0, 0)))
    b_all = jnp.concatenate([bias_(raw["bih_f"], raw["bhh_f"]),
                             bias_(raw["bih_b"], raw["bhh_b"])])[None, :]   # (1, 8Hp)

    dw = raw["dense_w"].T                                   # (2H, V)
    dw_f = jnp.pad(dw[:H], ((0, Hp - H), (0, 0)))           # (Hp, V)
    dw_b = jnp.pad(dw[H:], ((0, Hp - H), (0, 0)))           # (Hp, V)
    dense_w = jnp.pad(jnp.concatenate([dw_f, dw_b], axis=0),
                      ((0, 0), (0, Vp - V)))                # (2Hp, Vp)
    dense_b = jnp.pad(raw["dense_b"], (0, Vp - V))[None, :]  # (1, Vp)

    return {
        "embedding": raw["embedding"],
        "wih_all": wih_all, "whh_f": whh_f, "whh_b": whh_b, "b_all": b_all,
        "dense_w": dense_w, "dense_b": dense_b,
    }


# ----------------------------------------------------------------------------
# Pure-JAX reference (torch semantics) + synthetic params
# ----------------------------------------------------------------------------
def rnn_forward_ref(raw, x, prev_state):
    h0, c0 = prev_state
    H = int(h0.shape[-1])
    emb = raw["embedding"][x].astype(jnp.float32)
    emb_t = jnp.transpose(emb, (1, 0, 2))                   # (S, B, E)

    def make_step(wih, whh, bih, bhh):
        wih_T, whh_T, b = wih.T, whh.T, bih + bhh

        def step(carry, x_t):
            h, c = carry
            gates = x_t @ wih_T + h @ whh_T + b
            i = jax.nn.sigmoid(gates[:, :H])
            f = jax.nn.sigmoid(gates[:, H:2 * H])
            g = jnp.tanh(gates[:, 2 * H:3 * H])
            o = jax.nn.sigmoid(gates[:, 3 * H:])
            c_new = f * c + i * g
            h_new = o * jnp.tanh(c_new)
            return (h_new, c_new), h_new
        return step

    (hf, cf), ys_f = lax.scan(
        make_step(raw["wih_f"], raw["whh_f"], raw["bih_f"], raw["bhh_f"]),
        (h0[0], c0[0]), emb_t)
    (hb, cb), ys_b = lax.scan(
        make_step(raw["wih_b"], raw["whh_b"], raw["bih_b"], raw["bhh_b"]),
        (h0[1], c0[1]), emb_t[::-1])
    ys_b = ys_b[::-1]
    out = jnp.concatenate([ys_f, ys_b], axis=-1)            # (S, B, 2H)
    logits = out @ raw["dense_w"].T + raw["dense_b"]
    return jnp.transpose(logits, (1, 0, 2)), (jnp.stack([hf, hb]), jnp.stack([cf, cb]))


def init_params(key, n_vocab, embedding_size, lstm_size):
    """Synthetic params in torch layout (nn.Embedding / nn.LSTM / nn.Linear shapes)."""
    H = lstm_size
    ks = jax.random.split(key, 11)
    k_lstm = 1.0 / jnp.sqrt(jnp.float32(H))
    k_dense = 1.0 / jnp.sqrt(jnp.float32(2 * H))
    u = lambda k, shape, s: jax.random.uniform(k, shape, jnp.float32, -s, s)
    return {
        "embedding": jax.random.normal(ks[0], (n_vocab, embedding_size), jnp.float32),
        "wih_f": u(ks[1], (4 * H, embedding_size), k_lstm),
        "whh_f": u(ks[2], (4 * H, H), k_lstm),
        "bih_f": u(ks[3], (4 * H,), k_lstm),
        "bhh_f": u(ks[4], (4 * H,), k_lstm),
        "wih_b": u(ks[5], (4 * H, embedding_size), k_lstm),
        "whh_b": u(ks[6], (4 * H, H), k_lstm),
        "bih_b": u(ks[7], (4 * H,), k_lstm),
        "bhh_b": u(ks[8], (4 * H,), k_lstm),
        "dense_w": u(ks[9], (n_vocab, 2 * H), k_dense),
        "dense_b": u(ks[10], (n_vocab,), k_dense),
    }


if __name__ == "__main__":
    n_vocab, seq_size, embedding_size, lstm_size = 64, 8, 32, 32
    batch = 2

    key = jax.random.PRNGKey(0)
    kparam, kx = jax.random.split(key)
    raw = init_params(kparam, n_vocab, embedding_size, lstm_size)

    Hp = _round_up(lstm_size, 128)
    Vp = _round_up(n_vocab, 128)
    kparams = prepare_params(raw, lstm_size, Hp, Vp)

    x = jax.random.randint(kx, (batch, seq_size), 0, n_vocab, dtype=jnp.int32)
    # zero_state(batch): (2*num_layers, B, H) for bidirectional single layer
    prev_state = (jnp.zeros((2, batch, lstm_size), jnp.float32),
                  jnp.zeros((2, batch, lstm_size), jnp.float32))

    logits, (h_n, c_n) = rnn_forward(kparams, x, prev_state)
    jax.block_until_ready((logits, h_n, c_n))

    ref_logits, (ref_h, ref_c) = rnn_forward_ref(raw, x, prev_state)
    assert logits.shape == (batch, seq_size, n_vocab)
    assert h_n.shape == (2, batch, lstm_size) and c_n.shape == (2, batch, lstm_size)
    assert jnp.allclose(logits, ref_logits, atol=2e-3, rtol=2e-3)
    assert jnp.allclose(h_n, ref_h, atol=2e-3, rtol=2e-3)
    assert jnp.allclose(c_n, ref_c, atol=2e-3, rtol=2e-3)

    print("KERNEL_OK")
</pallas_src>

<mosaic_0001>
module attributes {stable_mosaic.version = 11 : i64} {
  func.func @_bilstm_recurrence_kernel(%arg0: memref<64x32xf32, #tpu.memory_space<vmem>>, %arg1: memref<32x1024xf32, #tpu.memory_space<vmem>>, %arg2: memref<128x512xf32, #tpu.memory_space<vmem>>, %arg3: memref<128x512xf32, #tpu.memory_space<vmem>>, %arg4: memref<1x1024xf32, #tpu.memory_space<vmem>>, %arg5: memref<2x8x128xf32, #tpu.memory_space<vmem>>, %arg6: memref<2x8x128xf32, #tpu.memory_space<vmem>>, %arg7: memref<64x256xf32, #tpu.memory_space<vmem>>, %arg8: memref<2x8x128xf32, #tpu.memory_space<vmem>>, %arg9: memref<2x8x128xf32, #tpu.memory_space<vmem>>, %arg10: memref<64x1024xf32, #tpu.memory_space<vmem>>) attributes {dimension_semantics = [], scalar_prefetch = 0 : i64, scratch_operands = 1 : i64, tpu.core_type = #tpu.core_type<tc>} {
    %c0 = arith.constant 0 : index
    %c0_0 = arith.constant 0 : index
    %0 = vector.load %arg0[%c0, %c0_0] : memref<64x32xf32, #tpu.memory_space<vmem>>, vector<64x32xf32>
    %c0_1 = arith.constant 0 : index
    %c0_2 = arith.constant 0 : index
    %1 = vector.load %arg1[%c0_1, %c0_2] : memref<32x1024xf32, #tpu.memory_space<vmem>>, vector<32x1024xf32>
    %cst = arith.constant dense<0.000000e+00> : vector<64x1024xf32>
    %2 = tpu.matmul %0, %1, %cst {dimension_numbers = #tpu.dot_dimension_numbers<[1], [0], [0], [1], [0, 0, 1, 1], [], []>} : vector<64x32xf32>, vector<32x1024xf32>, vector<64x1024xf32> -> vector<64x1024xf32>
    %c0_3 = arith.constant 0 : index
    %c0_4 = arith.constant 0 : index
    %3 = vector.load %arg4[%c0_3, %c0_4] : memref<1x1024xf32, #tpu.memory_space<vmem>>, vector<1x1024xf32>
    %4 = vector.broadcast %3 : vector<1x1024xf32> to vector<64x1024xf32>
    %5 = arith.addf %2, %4 : vector<64x1024xf32>
    %c0_5 = arith.constant 0 : index
    %c0_6 = arith.constant 0 : index
    %6 = vector.load %arg10[%c0_5, %c0_6] : memref<64x1024xf32, #tpu.memory_space<vmem>>, vector<64x1024xf32>
    tpu.vector_store %arg10[%c0_5, %c0_6], %5 {strides = array<i32>} : memref<64x1024xf32, #tpu.memory_space<vmem>>, vector<64x1024xf32>,
    %c0_7 = arith.constant 0 : index
    %c0_8 = arith.constant 0 : index
    %7 = vector.load %arg2[%c0_7, %c0_8] : memref<128x512xf32, #tpu.memory_space<vmem>>, vector<128x512xf32>
    %c0_9 = arith.constant 0 : index
    %c0_10 = arith.constant 0 : index
    %8 = vector.load %arg3[%c0_9, %c0_10] : memref<128x512xf32, #tpu.memory_space<vmem>>, vector<128x512xf32>
    %c0_11 = arith.constant 0 : index
    %c0_12 = arith.constant 0 : index
    %c0_13 = arith.constant 0 : index
    %9 = vector.load %arg5[%c0_11, %c0_12, %c0_13] : memref<2x8x128xf32, #tpu.memory_space<vmem>>, vector<1x8x128xf32>
    %10 = vector.shape_cast %9 : vector<1x8x128xf32> to vector<8x128xf32>
    %c0_14 = arith.constant 0 : index
    %c0_15 = arith.constant 0 : index
    %c0_16 = arith.constant 0 : index
    %11 = vector.load %arg6[%c0_14, %c0_15, %c0_16] : memref<2x8x128xf32, #tpu.memory_space<vmem>>, vector<1x8x128xf32>
    %12 = vector.shape_cast %11 : vector<1x8x128xf32> to vector<8x128xf32>
    %c1 = arith.constant 1 : index
    %c0_17 = arith.constant 0 : index
    %c0_18 = arith.constant 0 : index
    %13 = vector.load %arg5[%c1, %c0_17, %c0_18] : memref<2x8x128xf32, #tpu.memory_space<vmem>>, vector<1x8x128xf32>
    %14 = vector.shape_cast %13 : vector<1x8x128xf32> to vector<8x128xf32>
    %c1_19 = arith.constant 1 : index
    %c0_20 = arith.constant 0 : index
    %c0_21 = arith.constant 0 : index
    %15 = vector.load %arg6[%c1_19, %c0_20, %c0_21] : memref<2x8x128xf32, #tpu.memory_space<vmem>>, vector<1x8x128xf32>
    %16 = vector.shape_cast %15 : vector<1x8x128xf32> to vector<8x128xf32>
    %c0_i32 = arith.constant 0 : i32
    %c8_i32 = arith.constant 8 : i32
    %17 = arith.muli %c0_i32, %c8_i32 : i32
    %18 = tpu.assume_multiple %17, 8 : i32
    %c7_i32 = arith.constant 7 : i32
    %19 = arith.subi %c7_i32, %c0_i32 : i32
    %c8_i32_22 = arith.constant 8 : i32
    %20 = arith.muli %19, %c8_i32_22 : i32
    %21 = tpu.assume_multiple %20, 8 : i32
    %22 = arith.index_cast %18 : i32 to index
    %c0_23 = arith.constant 0 : index
    %23 = vector.load %arg10[%22, %c0_23] : memref<64x1024xf32, #tpu.memory_space<vmem>>, vector<8x512xf32>
    %24 = arith.index_cast %21 : i32 to index
    %c512 = arith.constant 512 : index
    %25 = vector.load %arg10[%24, %c512] : memref<64x1024xf32, #tpu.memory_space<vmem>>, vector<8x512xf32>
    %cst_24 = arith.constant dense<0.000000e+00> : vector<8x512xf32>
    %26 = tpu.matmul %10, %7, %cst_24 {dimension_numbers = #tpu.dot_dimension_numbers<[1], [0], [0], [1], [0, 0, 1, 1], [], []>} : vector<8x128xf32>, vector<128x512xf32>, vector<8x512xf32> -> vector<8x512xf32>
    %27 = arith.addf %23, %26 : vector<8x512xf32>
    %28 = vector.extract_strided_slice %27 {offsets = [0, 0], sizes = [8, 384], strides = [1, 1]} : vector<8x512xf32> to vector<8x384xf32>
    %29 = arith.negf %28 : vector<8x384xf32>
    %30 = math.exp %29 : vector<8x384xf32>
    %cst_25 = arith.constant 1.000000e+00 : f32
    %31 = vector.broadcast %cst_25 : f32 to vector<8x384xf32>
    %32 = arith.addf %31, %30 : vector<8x384xf32>
    %33 = arith.divf %31, %32 : vector<8x384xf32>
    %34 = vector.extract_strided_slice %27 {offsets = [0, 384], sizes = [8, 128], strides = [1, 1]} : vector<8x512xf32> to vector<8x128xf32>
    %35 = math.tanh %34 : vector<8x128xf32>
    %36 = vector.extract_strided_slice %33 {offsets = [0, 0], sizes = [8, 128], strides = [1, 1]} : vector<8x384xf32> to vector<8x128xf32>
    %37 = vector.extract_strided_slice %33 {offsets = [0, 128], sizes = [8, 128], strides = [1, 1]} : vector<8x384xf32> to vector<8x128xf32>
    %38 = vector.extract_strided_slice %33 {offsets = [0, 256], sizes = [8, 128], strides = [1, 1]} : vector<8x384xf32> to vector<8x128xf32>
    %39 = arith.mulf %37, %12 : vector<8x128xf32>
    %40 = arith.mulf %36, %35 : vector<8x128xf32>
    %41 = arith.addf %39, %40 : vector<8x128xf32>
    %42 = math.tanh %41 : vector<8x128xf32>
    %43 = arith.mulf %38, %42 : vector<8x128xf32>
    %cst_26 = arith.constant dense<0.000000e+00> : vector<8x512xf32>
    %44 = tpu.matmul %14, %8, %cst_26 {dimension_numbers = #tpu.dot_dimension_numbers<[1], [0], [0], [1], [0, 0, 1, 1], [], []>} : vector<8x128xf32>, vector<128x512xf32>, vector<8x512xf32> -> vector<8x512xf32>
    %45 = arith.addf %25, %44 : vector<8x512xf32>
    %46 = vector.extract_strided_slice %45 {offsets = [0, 0], sizes = [8, 384], strides = [1, 1]} : vector<8x512xf32> to vector<8x384xf32>
    %47 = arith.negf %46 : vector<8x384xf32>
    %48 = math.exp %47 : vector<8x384xf32>
    %cst_27 = arith.constant 1.000000e+00 : f32
    %49 = vector.broadcast %cst_27 : f32 to vector<8x384xf32>
    %50 = arith.addf %49, %48 : vector<8x384xf32>
    %51 = arith.divf %49, %50 : vector<8x384xf32>
    %52 = vector.extract_strided_slice %45 {offsets = [0, 384], sizes = [8, 128], strides = [1, 1]} : vector<8x512xf32> to vector<8x128xf32>
    %53 = math.tanh %52 : vector<8x128xf32>
    %54 = vector.extract_strided_slice %51 {offsets = [0, 0], sizes = [8, 128], strides = [1, 1]} : vector<8x384xf32> to vector<8x128xf32>
    %55 = vector.extract_strided_slice %51 {offsets = [0, 128], sizes = [8, 128], strides = [1, 1]} : vector<8x384xf32> to vector<8x128xf32>
    %56 = vector.extract_strided_slice %51 {offsets = [0, 256], sizes = [8, 128], strides = [1, 1]} : vector<8x384xf32> to vector<8x128xf32>
    %57 = arith.mulf %55, %16 : vector<8x128xf32>
    %58 = arith.mulf %54, %53 : vector<8x128xf32>
    %59 = arith.addf %57, %58 : vector<8x128xf32>
    %60 = math.tanh %59 : vector<8x128xf32>
    %61 = arith.mulf %56, %60 : vector<8x128xf32>
    %62 = arith.index_cast %18 : i32 to index
    %c0_28 = arith.constant 0 : index
    %63 = vector.load %arg7[%62, %c0_28] : memref<64x256xf32, #tpu.memory_space<vmem>>, vector<8x128xf32>
    tpu.vector_store %arg7[%62, %c0_28], %43 {strides = array<i32>} : memref<64x256xf32, #tpu.memory_space<vmem>>, vector<8x128xf32>,
    %64 = arith.index_cast %21 : i32 to index
    %c128 = arith.constant 128 : index
    %65 = vector.load %arg7[%64, %c128] : memref<64x256xf32, #tpu.memory_space<vmem>>, vector<8x128xf32>
    tpu.vector_store %arg7[%64, %c128], %61 {strides = array<i32>} : memref<64x256xf32, #tpu.memory_space<vmem>>, vector<8x128xf32>,
    %c1_i32 = arith.constant 1 : i32
    %c8_i32_29 = arith.constant 8 : i32
    %66 = arith.muli %c1_i32, %c8_i32_29 : i32
    %67 = tpu.assume_multiple %66, 8 : i32
    %c7_i32_30 = arith.constant 7 : i32
    %68 = arith.subi %c7_i32_30, %c1_i32 : i32
    %c8_i32_31 = arith.constant 8 : i32
    %69 = arith.muli %68, %c8_i32_31 : i32
    %70 = tpu.assume_multiple %69, 8 : i32
    %71 = arith.index_cast %67 : i32 to index
    %c0_32 = arith.constant 0 : index
    %72 = vector.load %arg10[%71, %c0_32] : memref<64x1024xf32, #tpu.memory_space<vmem>>, vector<8x512xf32>
    %73 = arith.index_cast %70 : i32 to index
    %c512_33 = arith.constant 512 : index
    %74 = vector.load %arg10[%73, %c512_33] : memref<64x1024xf32, #tpu.memory_space<vmem>>, vector<8x512xf32>
    %cst_34 = arith.constant dense<0.000000e+00> : vector<8x512xf32>
    %75 = tpu.matmul %43, %7, %cst_34 {dimension_numbers = #tpu.dot_dimension_numbers<[1], [0], [0], [1], [0, 0, 1, 1], [], []>} : vector<8x128xf32>, vector<128x512xf32>, vector<8x512xf32> -> vector<8x512xf32>
    %76 = arith.addf %72, %75 : vector<8x512xf32>
    %77 = vector.extract_strided_slice %76 {offsets = [0, 0], sizes = [8, 384], strides = [1, 1]} : vector<8x512xf32> to vector<8x384xf32>
    %78 = arith.negf %77 : vector<8x384xf32>
    %79 = math.exp %78 : vector<8x384xf32>
    %cst_35 = arith.constant 1.000000e+00 : f32
    %80 = vector.broadcast %cst_35 : f32 to vector<8x384xf32>
    %81 = arith.addf %80, %79 : vector<8x384xf32>
    %82 = arith.divf %80, %81 : vector<8x384xf32>
    %83 = vector.extract_strided_slice %76 {offsets = [0, 384], sizes = [8, 128], strides = [1, 1]} : vector<8x512xf32> to vector<8x128xf32>
    %84 = math.tanh %83 : vector<8x128xf32>
    %85 = vector.extract_strided_slice %82 {offsets = [0, 0], sizes = [8, 128], strides = [1, 1]} : vector<8x384xf32> to vector<8x128xf32>
    %86 = vector.extract_strided_slice %82 {offsets = [0, 128], sizes = [8, 128], strides = [1, 1]} : vector<8x384xf32> to vector<8x128xf32>
    %87 = vector.extract_strided_slice %82 {offsets = [0, 256], sizes = [8, 128], strides = [1, 1]} : vector<8x384xf32> to vector<8x128xf32>
    %88 = arith.mulf %86, %41 : vector<8x128xf32>
    %89 = arith.mulf %85, %84 : vector<8x128xf32>
    %90 = arith.addf %88, %89 : vector<8x128xf32>
    %91 = math.tanh %90 : vector<8x128xf32>
    %92 = arith.mulf %87, %91 : vector<8x128xf32>
    %cst_36 = arith.constant dense<0.000000e+00> : vector<8x512xf32>
    %93 = tpu.matmul %61, %8, %cst_36 {dimension_numbers = #tpu.dot_dimension_numbers<[1], [0], [0], [1], [0, 0, 1, 1], [], []>} : vector<8x128xf32>, vector<128x512xf32>, vector<8x512xf32> -> vector<8x512xf32>
    %94 = arith.addf %74, %93 : vector<8x512xf32>
    %95 = vector.extract_strided_slice %94 {offsets = [0, 0], sizes = [8, 384], strides = [1, 1]} : vector<8x512xf32> to vector<8x384xf32>
    %96 = arith.negf %95 : vector<8x384xf32>
    %97 = math.exp %96 : vector<8x384xf32>
    %cst_37 = arith.constant 1.000000e+00 : f32
    %98 = vector.broadcast %cst_37 : f32 to vector<8x384xf32>
    %99 = arith.addf %98, %97 : vector<8x384xf32>
    %100 = arith.divf %98, %99 : vector<8x384xf32>
    %101 = vector.extract_strided_slice %94 {offsets = [0, 384], sizes = [8, 128], strides = [1, 1]} : vector<8x512xf32> to vector<8x128xf32>
    %102 = math.tanh %101 : vector<8x128xf32>
    %103 = vector.extract_strided_slice %100 {offsets = [0, 0], sizes = [8, 128], strides = [1, 1]} : vector<8x384xf32> to vector<8x128xf32>
    %104 = vector.extract_strided_slice %100 {offsets = [0, 128], sizes = [8, 128], strides = [1, 1]} : vector<8x384xf32> to vector<8x128xf32>
    %105 = vector.extract_strided_slice %100 {offsets = [0, 256], sizes = [8, 128], strides = [1, 1]} : vector<8x384xf32> to vector<8x128xf32>
    %106 = arith.mulf %104, %59 : vector<8x128xf32>
    %107 = arith.mulf %103, %102 : vector<8x128xf32>
    %108 = arith.addf %106, %107 : vector<8x128xf32>
    %109 = math.tanh %108 : vector<8x128xf32>
    %110 = arith.mulf %105, %109 : vector<8x128xf32>
    %111 = arith.index_cast %67 : i32 to index
    %c0_38 = arith.constant 0 : index
    %112 = vector.load %arg7[%111, %c0_38] : memref<64x256xf32, #tpu.memory_space<vmem>>, vector<8x128xf32>
    tpu.vector_store %arg7[%111, %c0_38], %92 {strides = array<i32>} : memref<64x256xf32, #tpu.memory_space<vmem>>, vector<8x128xf32>,
    %113 = arith.index_cast %70 : i32 to index
    %c128_39 = arith.constant 128 : index
    %114 = vector.load %arg7[%113, %c128_39] : memref<64x256xf32, #tpu.memory_space<vmem>>, vector<8x128xf32>
    tpu.vector_store %arg7[%113, %c128_39], %110 {strides = array<i32>} : memref<64x256xf32, #tpu.memory_space<vmem>>, vector<8x128xf32>,
    %c2_i32 = arith.constant 2 : i32
    %c8_i32_40 = arith.constant 8 : i32
    %115 = arith.muli %c2_i32, %c8_i32_40 : i32
    %116 = tpu.assume_multiple %115, 8 : i32
    %c7_i32_41 = arith.constant 7 : i32
    %117 = arith.subi %c7_i32_41, %c2_i32 : i32
    %c8_i32_42 = arith.constant 8 : i32
    %118 = arith.muli %117, %c8_i32_42 : i32
    %119 = tpu.assume_multiple %118, 8 : i32
    %120 = arith.index_cast %116 : i32 to index
    %c0_43 = arith.constant 0 : index
    %121 = vector.load %arg10[%120, %c0_43] : memref<64x1024xf32, #tpu.memory_space<vmem>>, vector<8x512xf32>
    %122 = arith.index_cast %119 : i32 to index
    %c512_44 = arith.constant 512 : index
    %123 = vector.load %arg10[%122, %c512_44] : memref<64x1024xf32, #tpu.memory_space<vmem>>, vector<8x512xf32>
    %cst_45 = arith.constant dense<0.000000e+00> : vector<8x512xf32>
    %124 = tpu.matmul %92, %7, %cst_45 {dimension_numbers = #tpu.dot_dimension_numbers<[1], [0], [0], [1], [0, 0, 1, 1], [], []>} : vector<8x128xf32>, vector<128x512xf32>, vector<8x512xf32> -> vector<8x512xf32>
    %125 = arith.addf %121, %124 : vector<8x512xf32>
    %126 = vector.extract_strided_slice %125 {offsets = [0, 0], sizes = [8, 384], strides = [1, 1]} : vector<8x512xf32> to vector<8x384xf32>
    %127 = arith.negf %126 : vector<8x384xf32>
    %128 = math.exp %127 : vector<8x384xf32>
    %cst_46 = arith.constant 1.000000e+00 : f32
    %129 = vector.broadcast %cst_46 : f32 to vector<8x384xf32>
    %130 = arith.addf %129, %128 : vector<8x384xf32>
    %131 = arith.divf %129, %130 : vector<8x384xf32>
    %132 = vector.extract_strided_slice %125 {offsets = [0, 384], sizes = [8, 128], strides = [1, 1]} : vector<8x512xf32> to vector<8x128xf32>
    %133 = math.tanh %132 : vector<8x128xf32>
    %134 = vector.extract_strided_slice %131 {offsets = [0, 0], sizes = [8, 128], strides = [1, 1]} : vector<8x384xf32> to vector<8x128xf32>
    %135 = vector.extract_strided_slice %131 {offsets = [0, 128], sizes = [8, 128], strides = [1, 1]} : vector<8x384xf32> to vector<8x128xf32>
    %136 = vector.extract_strided_slice %131 {offsets = [0, 256], sizes = [8, 128], strides = [1, 1]} : vector<8x384xf32> to vector<8x128xf32>
    %137 = arith.mulf %135, %90 : vector<8x128xf32>
    %138 = arith.mulf %134, %133 : vector<8x128xf32>
    %139 = arith.addf %137, %138 : vector<8x128xf32>
    %140 = math.tanh %139 : vector<8x128xf32>
    %141 = arith.mulf %136, %140 : vector<8x128xf32>
    %cst_47 = arith.constant dense<0.000000e+00> : vector<8x512xf32>
    %142 = tpu.matmul %110, %8, %cst_47 {dimension_numbers = #tpu.dot_dimension_numbers<[1], [0], [0], [1], [0, 0, 1, 1], [], []>} : vector<8x128xf32>, vector<128x512xf32>, vector<8x512xf32> -> vector<8x512xf32>
    %143 = arith.addf %123, %142 : vector<8x512xf32>
    %144 = vector.extract_strided_slice %143 {offsets = [0, 0], sizes = [8, 384], strides = [1, 1]} : vector<8x512xf32> to vector<8x384xf32>
    %145 = arith.negf %144 : vector<8x384xf32>
    %146 = math.exp %145 : vector<8x384xf32>
    %cst_48 = arith.constant 1.000000e+00 : f32
    %147 = vector.broadcast %cst_48 : f32 to vector<8x384xf32>
    %148 = arith.addf %147, %146 : vector<8x384xf32>
    %149 = arith.divf %147, %148 : vector<8x384xf32>
    %150 = vector.extract_strided_slice %143 {offsets = [0, 384], sizes = [8, 128], strides = [1, 1]} : vector<8x512xf32> to vector<8x128xf32>
    %151 = math.tanh %150 : vector<8x128xf32>
    %152 = vector.extract_strided_slice %149 {offsets = [0, 0], sizes = [8, 128], strides = [1, 1]} : vector<8x384xf32> to vector<8x128xf32>
    %153 = vector.extract_strided_slice %149 {offsets = [0, 128], sizes = [8, 128], strides = [1, 1]} : vector<8x384xf32> to vector<8x128xf32>
    %154 = vector.extract_strided_slice %149 {offsets = [0, 256], sizes = [8, 128], strides = [1, 1]} : vector<8x384xf32> to vector<8x128xf32>
    %155 = arith.mulf %153, %108 : vector<8x128xf32>
    %156 = arith.mulf %152, %151 : vector<8x128xf32>
    %157 = arith.addf %155, %156 : vector<8x128xf32>
    %158 = math.tanh %157 : vector<8x128xf32>
    %159 = arith.mulf %154, %158 : vector<8x128xf32>
    %160 = arith.index_cast %116 : i32 to index
    %c0_49 = arith.constant 0 : index
    %161 = vector.load %arg7[%160, %c0_49] : memref<64x256xf32, #tpu.memory_space<vmem>>, vector<8x128xf32>
    tpu.vector_store %arg7[%160, %c0_49], %141 {strides = array<i32>} : memref<64x256xf32, #tpu.memory_space<vmem>>, vector<8x128xf32>,
    %162 = arith.index_cast %119 : i32 to index
    %c128_50 = arith.constant 128 : index
    %163 = vector.load %arg7[%162, %c128_50] : memref<64x256xf32, #tpu.memory_space<vmem>>, vector<8x128xf32>
    tpu.vector_store %arg7[%162, %c128_50], %159 {strides = array<i32>} : memref<64x256xf32, #tpu.memory_space<vmem>>, vector<8x128xf32>,
    %c3_i32 = arith.constant 3 : i32
    %c8_i32_51 = arith.constant 8 : i32
    %164 = arith.muli %c3_i32, %c8_i32_51 : i32
    %165 = tpu.assume_multiple %164, 8 : i32
    %c7_i32_52 = arith.constant 7 : i32
    %166 = arith.subi %c7_i32_52, %c3_i32 : i32
    %c8_i32_53 = arith.constant 8 : i32
    %167 = arith.muli %166, %c8_i32_53 : i32
    %168 = tpu.assume_multiple %167, 8 : i32
    %169 = arith.index_cast %165 : i32 to index
    %c0_54 = arith.constant 0 : index
    %170 = vector.load %arg10[%169, %c0_54] : memref<64x1024xf32, #tpu.memory_space<vmem>>, vector<8x512xf32>
    %171 = arith.index_cast %168 : i32 to index
    %c512_55 = arith.constant 512 : index
    %172 = vector.load %arg10[%171, %c512_55] : memref<64x1024xf32, #tpu.memory_space<vmem>>, vector<8x512xf32>
    %cst_56 = arith.constant dense<0.000000e+00> : vector<8x512xf32>
    %173 = tpu.matmul %141, %7, %cst_56 {dimension_numbers = #tpu.dot_dimension_numbers<[1], [0], [0], [1], [0, 0, 1, 1], [], []>} : vector<8x128xf32>, vector<128x512xf32>, vector<8x512xf32> -> vector<8x512xf32>
    %174 = arith.addf %170, %173 : vector<8x512xf32>
    %175 = vector.extract_strided_slice %174 {offsets = [0, 0], sizes = [8, 384], strides = [1, 1]} : vector<8x512xf32> to vector<8x384xf32>
    %176 = arith.negf %175 : vector<8x384xf32>
    %177 = math.exp %176 : vector<8x384xf32>
    %cst_57 = arith.constant 1.000000e+00 : f32
    %178 = vector.broadcast %cst_57 : f32 to vector<8x384xf32>
    %179 = arith.addf %178, %177 : vector<8x384xf32>
    %180 = arith.divf %178, %179 : vector<8x384xf32>
    %181 = vector.extract_strided_slice %174 {offsets = [0, 384], sizes = [8, 128], strides = [1, 1]} : vector<8x512xf32> to vector<8x128xf32>
    %182 = math.tanh %181 : vector<8x128xf32>
    %183 = vector.extract_strided_slice %180 {offsets = [0, 0], sizes = [8, 128], strides = [1, 1]} : vector<8x384xf32> to vector<8x128xf32>
    %184 = vector.extract_strided_slice %180 {offsets = [0, 128], sizes = [8, 128], strides = [1, 1]} : vector<8x384xf32> to vector<8x128xf32>
    %185 = vector.extract_strided_slice %180 {offsets = [0, 256], sizes = [8, 128], strides = [1, 1]} : vector<8x384xf32> to vector<8x128xf32>
    %186 = arith.mulf %184, %139 : vector<8x128xf32>
    %187 = arith.mulf %183, %182 : vector<8x128xf32>
    %188 = arith.addf %186, %187 : vector<8x128xf32>
    %189 = math.tanh %188 : vector<8x128xf32>
    %190 = arith.mulf %185, %189 : vector<8x128xf32>
    %cst_58 = arith.constant dense<0.000000e+00> : vector<8x512xf32>
    %191 = tpu.matmul %159, %8, %cst_58 {dimension_numbers = #tpu.dot_dimension_numbers<[1], [0], [0], [1], [0, 0, 1, 1], [], []>} : vector<8x128xf32>, vector<128x512xf32>, vector<8x512xf32> -> vector<8x512xf32>
    %192 = arith.addf %172, %191 : vector<8x512xf32>
    %193 = vector.extract_strided_slice %192 {offsets = [0, 0], sizes = [8, 384], strides = [1, 1]} : vector<8x512xf32> to vector<8x384xf32>
    %194 = arith.negf %193 : vector<8x384xf32>
    %195 = math.exp %194 : vector<8x384xf32>
    %cst_59 = arith.constant 1.000000e+00 : f32
    %196 = vector.broadcast %cst_59 : f32 to vector<8x384xf32>
    %197 = arith.addf %196, %195 : vector<8x384xf32>
    %198 = arith.divf %196, %197 : vector<8x384xf32>
    %199 = vector.extract_strided_slice %192 {offsets = [0, 384], sizes = [8, 128], strides = [1, 1]} : vector<8x512xf32> to vector<8x128xf32>
    %200 = math.tanh %199 : vector<8x128xf32>
    %201 = vector.extract_strided_slice %198 {offsets = [0, 0], sizes = [8, 128], strides = [1, 1]} : vector<8x384xf32> to vector<8x128xf32>
    %202 = vector.extract_strided_slice %198 {offsets = [0, 128], sizes = [8, 128], strides = [1, 1]} : vector<8x384xf32> to vector<8x128xf32>
    %203 = vector.extract_strided_slice %198 {offsets = [0, 256], sizes = [8, 128], strides = [1, 1]} : vector<8x384xf32> to vector<8x128xf32>
    %204 = arith.mulf %202, %157 : vector<8x128xf32>
    %205 = arith.mulf %201, %200 : vector<8x128xf32>
    %206 = arith.addf %204, %205 : vector<8x128xf32>
    %207 = math.tanh %206 : vector<8x128xf32>
    %208 = arith.mulf %203, %207 : vector<8x128xf32>
    %209 = arith.index_cast %165 : i32 to index
    %c0_60 = arith.constant 0 : index
    %210 = vector.load %arg7[%209, %c0_60] : memref<64x256xf32, #tpu.memory_space<vmem>>, vector<8x128xf32>
    tpu.vector_store %arg7[%209, %c0_60], %190 {strides = array<i32>} : memref<64x256xf32, #tpu.memory_space<vmem>>, vector<8x128xf32>,
    %211 = arith.index_cast %168 : i32 to index
    %c128_61 = arith.constant 128 : index
    %212 = vector.load %arg7[%211, %c128_61] : memref<64x256xf32, #tpu.memory_space<vmem>>, vector<8x128xf32>
    tpu.vector_store %arg7[%211, %c128_61], %208 {strides = array<i32>} : memref<64x256xf32, #tpu.memory_space<vmem>>, vector<8x128xf32>,
    %c4_i32 = arith.constant 4 : i32
    %c8_i32_62 = arith.constant 8 : i32
    %213 = arith.muli %c4_i32, %c8_i32_62 : i32
    %214 = tpu.assume_multiple %213, 8 : i32
    %c7_i32_63 = arith.constant 7 : i32
    %215 = arith.subi %c7_i32_63, %c4_i32 : i32
    %c8_i32_64 = arith.constant 8 : i32
    %216 = arith.muli %215, %c8_i32_64 : i32
    %217 = tpu.assume_multiple %216, 8 : i32
    %218 = arith.index_cast %214 : i32 to index
    %c0_65 = arith.constant 0 : index
    %219 = vector.load %arg10[%218, %c0_65] : memref<64x1024xf32, #tpu.memory_space<vmem>>, vector<8x512xf32>
    %220 = arith.index_cast %217 : i32 to index
    %c512_66 = arith.constant 512 : index
    %221 = vector.load %arg10[%220, %c512_66] : memref<64x1024xf32, #tpu.memory_space<vmem>>, vector<8x512xf32>
    %cst_67 = arith.constant dense<0.000000e+00> : vector<8x512xf32>
    %222 = tpu.matmul %190, %7, %cst_67 {dimension_numbers = #tpu.dot_dimension_numbers<[1], [0], [0], [1], [0, 0, 1, 1], [], []>} : vector<8x128xf32>, vector<128x512xf32>, vector<8x512xf32> -> vector<8x512xf32>
    %223 = arith.addf %219, %222 : vector<8x512xf32>
    %224 = vector.extract_strided_slice %223 {offsets = [0, 0], sizes = [8, 384], strides = [1, 1]} : vector<8x512xf32> to vector<8x384xf32>
    %225 = arith.negf %224 : vector<8x384xf32>
    %226 = math.exp %225 : vector<8x384xf32>
    %cst_68 = arith.constant 1.000000e+00 : f32
    %227 = vector.broadcast %cst_68 : f32 to vector<8x384xf32>
    %228 = arith.addf %227, %226 : vector<8x384xf32>
    %229 = arith.divf %227, %228 : vector<8x384xf32>
    %230 = vector.extract_strided_slice %223 {offsets = [0, 384], sizes = [8, 128], strides = [1, 1]} : vector<8x512xf32> to vector<8x128xf32>
    %231 = math.tanh %230 : vector<8x128xf32>
    %232 = vector.extract_strided_slice %229 {offsets = [0, 0], sizes = [8, 128], strides = [1, 1]} : vector<8x384xf32> to vector<8x128xf32>
    %233 = vector.extract_strided_slice %229 {offsets = [0, 128], sizes = [8, 128], strides = [1, 1]} : vector<8x384xf32> to vector<8x128xf32>
    %234 = vector.extract_strided_slice %229 {offsets = [0, 256], sizes = [8, 128], strides = [1, 1]} : vector<8x384xf32> to vector<8x128xf32>
    %235 = arith.mulf %233, %188 : vector<8x128xf32>
    %236 = arith.mulf %232, %231 : vector<8x128xf32>
    %237 = arith.addf %235, %236 : vector<8x128xf32>
    %238 = math.tanh %237 : vector<8x128xf32>
    %239 = arith.mulf %234, %238 : vector<8x128xf32>
    %cst_69 = arith.constant dense<0.000000e+00> : vector<8x512xf32>
    %240 = tpu.matmul %208, %8, %cst_69 {dimension_numbers = #tpu.dot_dimension_numbers<[1], [0], [0], [1], [0, 0, 1, 1], [], []>} : vector<8x128xf32>, vector<128x512xf32>, vector<8x512xf32> -> vector<8x512xf32>
    %241 = arith.addf %221, %240 : vector<8x512xf32>
    %242 = vector.extract_strided_slice %241 {offsets = [0, 0], sizes = [8, 384], strides = [1, 1]} : vector<8x512xf32> to vector<8x384xf32>
    %243 = arith.negf %242 : vector<8x384xf32>
    %244 = math.exp %243 : vector<8x384xf32>
    %cst_70 = arith.constant 1.000000e+00 : f32
    %245 = vector.broadcast %cst_70 : f32 to vector<8x384xf32>
    %246 = arith.addf %245, %244 : vector<8x384xf32>
    %247 = arith.divf %245, %246 : vector<8x384xf32>
    %248 = vector.extract_strided_slice %241 {offsets = [0, 384], sizes = [8, 128], strides = [1, 1]} : vector<8x512xf32> to vector<8x128xf32>
    %249 = math.tanh %248 : vector<8x128xf32>
    %250 = vector.extract_strided_slice %247 {offsets = [0, 0], sizes = [8, 128], strides = [1, 1]} : vector<8x384xf32> to vector<8x128xf32>
    %251 = vector.extract_strided_slice %247 {offsets = [0, 128], sizes = [8, 128], strides = [1, 1]} : vector<8x384xf32> to vector<8x128xf32>
    %252 = vector.extract_strided_slice %247 {offsets = [0, 256], sizes = [8, 128], strides = [1, 1]} : vector<8x384xf32> to vector<8x128xf32>
    %253 = arith.mulf %251, %206 : vector<8x128xf32>
    %254 = arith.mulf %250, %249 : vector<8x128xf32>
    %255 = arith.addf %253, %254 : vector<8x128xf32>
    %256 = math.tanh %255 : vector<8x128xf32>
    %257 = arith.mulf %252, %256 : vector<8x128xf32>
    %258 = arith.index_cast %214 : i32 to index
    %c0_71 = arith.constant 0 : index
    %259 = vector.load %arg7[%258, %c0_71] : memref<64x256xf32, #tpu.memory_space<vmem>>, vector<8x128xf32>
    tpu.vector_store %arg7[%258, %c0_71], %239 {strides = array<i32>} : memref<64x256xf32, #tpu.memory_space<vmem>>, vector<8x128xf32>,
    %260 = arith.index_cast %217 : i32 to index
    %c128_72 = arith.constant 128 : index
    %261 = vector.load %arg7[%260, %c128_72] : memref<64x256xf32, #tpu.memory_space<vmem>>, vector<8x128xf32>
    tpu.vector_store %arg7[%260, %c128_72], %257 {strides = array<i32>} : memref<64x256xf32, #tpu.memory_space<vmem>>, vector<8x128xf32>,
    %c5_i32 = arith.constant 5 : i32
    %c8_i32_73 = arith.constant 8 : i32
    %262 = arith.muli %c5_i32, %c8_i32_73 : i32
    %263 = tpu.assume_multiple %262, 8 : i32
    %c7_i32_74 = arith.constant 7 : i32
    %264 = arith.subi %c7_i32_74, %c5_i32 : i32
    %c8_i32_75 = arith.constant 8 : i32
    %265 = arith.muli %264, %c8_i32_75 : i32
    %266 = tpu.assume_multiple %265, 8 : i32
    %267 = arith.index_cast %263 : i32 to index
    %c0_76 = arith.constant 0 : index
    %268 = vector.load %arg10[%267, %c0_76] : memref<64x1024xf32, #tpu.memory_space<vmem>>, vector<8x512xf32>
    %269 = arith.index_cast %266 : i32 to index
    %c512_77 = arith.constant 512 : index
    %270 = vector.load %arg10[%269, %c512_77] : memref<64x1024xf32, #tpu.memory_space<vmem>>, vector<8x512xf32>
    %cst_78 = arith.constant dense<0.000000e+00> : vector<8x512xf32>
    %271 = tpu.matmul %239, %7, %cst_78 {dimension_numbers = #tpu.dot_dimension_numbers<[1], [0], [0], [1], [0, 0, 1, 1], [], []>} : vector<8x128xf32>, vector<128x512xf32>, vector<8x512xf32> -> vector<8x512xf32>
    %272 = arith.addf %268, %271 : vector<8x512xf32>
    %273 = vector.extract_strided_slice %272 {offsets = [0, 0], sizes = [8, 384], strides = [1, 1]} : vector<8x512xf32> to vector<8x384xf32>
    %274 = arith.negf %273 : vector<8x384xf32>
    %275 = math.exp %274 : vector<8x384xf32>
    %cst_79 = arith.constant 1.000000e+00 : f32
    %276 = vector.broadcast %cst_79 : f32 to vector<8x384xf32>
    %277 = arith.addf %276, %275 : vector<8x384xf32>
    %278 = arith.divf %276, %277 : vector<8x384xf32>
    %279 = vector.extract_strided_slice %272 {offsets = [0, 384], sizes = [8, 128], strides = [1, 1]} : vector<8x512xf32> to vector<8x128xf32>
    %280 = math.tanh %279 : vector<8x128xf32>
    %281 = vector.extract_strided_slice %278 {offsets = [0, 0], sizes = [8, 128], strides = [1, 1]} : vector<8x384xf32> to vector<8x128xf32>
    %282 = vector.extract_strided_slice %278 {offsets = [0, 128], sizes = [8, 128], strides = [1, 1]} : vector<8x384xf32> to vector<8x128xf32>
    %283 = vector.extract_strided_slice %278 {offsets = [0, 256], sizes = [8, 128], strides = [1, 1]} : vector<8x384xf32> to vector<8x128xf32>
    %284 = arith.mulf %282, %237 : vector<8x128xf32>
    %285 = arith.mulf %281, %280 : vector<8x128xf32>
    %286 = arith.addf %284, %285 : vector<8x128xf32>
    %287 = math.tanh %286 : vector<8x128xf32>
    %288 = arith.mulf %283, %287 : vector<8x128xf32>
    %cst_80 = arith.constant dense<0.000000e+00> : vector<8x512xf32>
    %289 = tpu.matmul %257, %8, %cst_80 {dimension_numbers = #tpu.dot_dimension_numbers<[1], [0], [0], [1], [0, 0, 1, 1], [], []>} : vector<8x128xf32>, vector<128x512xf32>, vector<8x512xf32> -> vector<8x512xf32>
    %290 = arith.addf %270, %289 : vector<8x512xf32>
    %291 = vector.extract_strided_slice %290 {offsets = [0, 0], sizes = [8, 384], strides = [1, 1]} : vector<8x512xf32> to vector<8x384xf32>
    %292 = arith.negf %291 : vector<8x384xf32>
    %293 = math.exp %292 : vector<8x384xf32>
    %cst_81 = arith.constant 1.000000e+00 : f32
    %294 = vector.broadcast %cst_81 : f32 to vector<8x384xf32>
    %295 = arith.addf %294, %293 : vector<8x384xf32>
    %296 = arith.divf %294, %295 : vector<8x384xf32>
    %297 = vector.extract_strided_slice %290 {offsets = [0, 384], sizes = [8, 128], strides = [1, 1]} : vector<8x512xf32> to vector<8x128xf32>
    %298 = math.tanh %297 : vector<8x128xf32>
    %299 = vector.extract_strided_slice %296 {offsets = [0, 0], sizes = [8, 128], strides = [1, 1]} : vector<8x384xf32> to vector<8x128xf32>
    %300 = vector.extract_strided_slice %296 {offsets = [0, 128], sizes = [8, 128], strides = [1, 1]} : vector<8x384xf32> to vector<8x128xf32>
    %301 = vector.extract_strided_slice %296 {offsets = [0, 256], sizes = [8, 128], strides = [1, 1]} : vector<8x384xf32> to vector<8x128xf32>
    %302 = arith.mulf %300, %255 : vector<8x128xf32>
    %303 = arith.mulf %299, %298 : vector<8x128xf32>
    %304 = arith.addf %302, %303 : vector<8x128xf32>
    %305 = math.tanh %304 : vector<8x128xf32>
    %306 = arith.mulf %301, %305 : vector<8x128xf32>
    %307 = arith.index_cast %263 : i32 to index
    %c0_82 = arith.constant 0 : index
    %308 = vector.load %arg7[%307, %c0_82] : memref<64x256xf32, #tpu.memory_space<vmem>>, vector<8x128xf32>
    tpu.vector_store %arg7[%307, %c0_82], %288 {strides = array<i32>} : memref<64x256xf32, #tpu.memory_space<vmem>>, vector<8x128xf32>,
    %309 = arith.index_cast %266 : i32 to index
    %c128_83 = arith.constant 128 : index
    %310 = vector.load %arg7[%309, %c128_83] : memref<64x256xf32, #tpu.memory_space<vmem>>, vector<8x128xf32>
    tpu.vector_store %arg7[%309, %c128_83], %306 {strides = array<i32>} : memref<64x256xf32, #tpu.memory_space<vmem>>, vector<8x128xf32>,
    %c6_i32 = arith.constant 6 : i32
    %c8_i32_84 = arith.constant 8 : i32
    %311 = arith.muli %c6_i32, %c8_i32_84 : i32
    %312 = tpu.assume_multiple %311, 8 : i32
    %c7_i32_85 = arith.constant 7 : i32
    %313 = arith.subi %c7_i32_85, %c6_i32 : i32
    %c8_i32_86 = arith.constant 8 : i32
    %314 = arith.muli %313, %c8_i32_86 : i32
    %315 = tpu.assume_multiple %314, 8 : i32
    %316 = arith.index_cast %312 : i32 to index
    %c0_87 = arith.constant 0 : index
    %317 = vector.load %arg10[%316, %c0_87] : memref<64x1024xf32, #tpu.memory_space<vmem>>, vector<8x512xf32>
    %318 = arith.index_cast %315 : i32 to index
    %c512_88 = arith.constant 512 : index
    %319 = vector.load %arg10[%318, %c512_88] : memref<64x1024xf32, #tpu.memory_space<vmem>>, vector<8x512xf32>
    %cst_89 = arith.constant dense<0.000000e+00> : vector<8x512xf32>
    %320 = tpu.matmul %288, %7, %cst_89 {dimension_numbers = #tpu.dot_dimension_numbers<[1], [0], [0], [1], [0, 0, 1, 1], [], []>} : vector<8x128xf32>, vector<128x512xf32>, vector<8x512xf32> -> vector<8x512xf32>
    %321 = arith.addf %317, %320 : vector<8x512xf32>
    %322 = vector.extract_strided_slice %321 {offsets = [0, 0], sizes = [8, 384], strides = [1, 1]} : vector<8x512xf32> to vector<8x384xf32>
    %323 = arith.negf %322 : vector<8x384xf32>
    %324 = math.exp %323 : vector<8x384xf32>
    %cst_90 = arith.constant 1.000000e+00 : f32
    %325 = vector.broadcast %cst_90 : f32 to vector<8x384xf32>
    %326 = arith.addf %325, %324 : vector<8x384xf32>
    %327 = arith.divf %325, %326 : vector<8x384xf32>
    %328 = vector.extract_strided_slice %321 {offsets = [0, 384], sizes = [8, 128], strides = [1, 1]} : vector<8x512xf32> to vector<8x128xf32>
    %329 = math.tanh %328 : vector<8x128xf32>
    %330 = vector.extract_strided_slice %327 {offsets = [0, 0], sizes = [8, 128], strides = [1, 1]} : vector<8x384xf32> to vector<8x128xf32>
    %331 = vector.extract_strided_slice %327 {offsets = [0, 128], sizes = [8, 128], strides = [1, 1]} : vector<8x384xf32> to vector<8x128xf32>
    %332 = vector.extract_strided_slice %327 {offsets = [0, 256], sizes = [8, 128], strides = [1, 1]} : vector<8x384xf32> to vector<8x128xf32>
    %333 = arith.mulf %331, %286 : vector<8x128xf32>
    %334 = arith.mulf %330, %329 : vector<8x128xf32>
    %335 = arith.addf %333, %334 : vector<8x128xf32>
    %336 = math.tanh %335 : vector<8x128xf32>
    %337 = arith.mulf %332, %336 : vector<8x128xf32>
    %cst_91 = arith.constant dense<0.000000e+00> : vector<8x512xf32>
    %338 = tpu.matmul %306, %8, %cst_91 {dimension_numbers = #tpu.dot_dimension_numbers<[1], [0], [0], [1], [0, 0, 1, 1], [], []>} : vector<8x128xf32>, vector<128x512xf32>, vector<8x512xf32> -> vector<8x512xf32>
    %339 = arith.addf %319, %338 : vector<8x512xf32>
    %340 = vector.extract_strided_slice %339 {offsets = [0, 0], sizes = [8, 384], strides = [1, 1]} : vector<8x512xf32> to vector<8x384xf32>
    %341 = arith.negf %340 : vector<8x384xf32>
    %342 = math.exp %341 : vector<8x384xf32>
    %cst_92 = arith.constant 1.000000e+00 : f32
    %343 = vector.broadcast %cst_92 : f32 to vector<8x384xf32>
    %344 = arith.addf %343, %342 : vector<8x384xf32>
    %345 = arith.divf %343, %344 : vector<8x384xf32>
    %346 = vector.extract_strided_slice %339 {offsets = [0, 384], sizes = [8, 128], strides = [1, 1]} : vector<8x512xf32> to vector<8x128xf32>
    %347 = math.tanh %346 : vector<8x128xf32>
    %348 = vector.extract_strided_slice %345 {offsets = [0, 0], sizes = [8, 128], strides = [1, 1]} : vector<8x384xf32> to vector<8x128xf32>
    %349 = vector.extract_strided_slice %345 {offsets = [0, 128], sizes = [8, 128], strides = [1, 1]} : vector<8x384xf32> to vector<8x128xf32>
    %350 = vector.extract_strided_slice %345 {offsets = [0, 256], sizes = [8, 128], strides = [1, 1]} : vector<8x384xf32> to vector<8x128xf32>
    %351 = arith.mulf %349, %304 : vector<8x128xf32>
    %352 = arith.mulf %348, %347 : vector<8x128xf32>
    %353 = arith.addf %351, %352 : vector<8x128xf32>
    %354 = math.tanh %353 : vector<8x128xf32>
    %355 = arith.mulf %350, %354 : vector<8x128xf32>
    %356 = arith.index_cast %312 : i32 to index
    %c0_93 = arith.constant 0 : index
    %357 = vector.load %arg7[%356, %c0_93] : memref<64x256xf32, #tpu.memory_space<vmem>>, vector<8x128xf32>
    tpu.vector_store %arg7[%356, %c0_93], %337 {strides = array<i32>} : memref<64x256xf32, #tpu.memory_space<vmem>>, vector<8x128xf32>,
    %358 = arith.index_cast %315 : i32 to index
    %c128_94 = arith.constant 128 : index
    %359 = vector.load %arg7[%358, %c128_94] : memref<64x256xf32, #tpu.memory_space<vmem>>, vector<8x128xf32>
    tpu.vector_store %arg7[%358, %c128_94], %355 {strides = array<i32>} : memref<64x256xf32, #tpu.memory_space<vmem>>, vector<8x128xf32>,
    %c7_i32_95 = arith.constant 7 : i32
    %c8_i32_96 = arith.constant 8 : i32
    %360 = arith.muli %c7_i32_95, %c8_i32_96 : i32
    %361 = tpu.assume_multiple %360, 8 : i32
    %c7_i32_97 = arith.constant 7 : i32
    %362 = arith.subi %c7_i32_97, %c7_i32_95 : i32
    %c8_i32_98 = arith.constant 8 : i32
    %363 = arith.muli %362, %c8_i32_98 : i32
    %364 = tpu.assume_multiple %363, 8 : i32
    %365 = arith.index_cast %361 : i32 to index
    %c0_99 = arith.constant 0 : index
    %366 = vector.load %arg10[%365, %c0_99] : memref<64x1024xf32, #tpu.memory_space<vmem>>, vector<8x512xf32>
    %367 = arith.index_cast %364 : i32 to index
    %c512_100 = arith.constant 512 : index
    %368 = vector.load %arg10[%367, %c512_100] : memref<64x1024xf32, #tpu.memory_space<vmem>>, vector<8x512xf32>
    %cst_101 = arith.constant dense<0.000000e+00> : vector<8x512xf32>
    %369 = tpu.matmul %337, %7, %cst_101 {dimension_numbers = #tpu.dot_dimension_numbers<[1], [0], [0], [1], [0, 0, 1, 1], [], []>} : vector<8x128xf32>, vector<128x512xf32>, vector<8x512xf32> -> vector<8x512xf32>
    %370 = arith.addf %366, %369 : vector<8x512xf32>
    %371 = vector.extract_strided_slice %370 {offsets = [0, 0], sizes = [8, 384], strides = [1, 1]} : vector<8x512xf32> to vector<8x384xf32>
    %372 = arith.negf %371 : vector<8x384xf32>
    %373 = math.exp %372 : vector<8x384xf32>
    %cst_102 = arith.constant 1.000000e+00 : f32
    %374 = vector.broadcast %cst_102 : f32 to vector<8x384xf32>
    %375 = arith.addf %374, %373 : vector<8x384xf32>
    %376 = arith.divf %374, %375 : vector<8x384xf32>
    %377 = vector.extract_strided_slice %370 {offsets = [0, 384], sizes = [8, 128], strides = [1, 1]} : vector<8x512xf32> to vector<8x128xf32>
    %378 = math.tanh %377 : vector<8x128xf32>
    %379 = vector.extract_strided_slice %376 {offsets = [0, 0], sizes = [8, 128], strides = [1, 1]} : vector<8x384xf32> to vector<8x128xf32>
    %380 = vector.extract_strided_slice %376 {offsets = [0, 128], sizes = [8, 128], strides = [1, 1]} : vector<8x384xf32> to vector<8x128xf32>
    %381 = vector.extract_strided_slice %376 {offsets = [0, 256], sizes = [8, 128], strides = [1, 1]} : vector<8x384xf32> to vector<8x128xf32>
    %382 = arith.mulf %380, %335 : vector<8x128xf32>
    %383 = arith.mulf %379, %378 : vector<8x128xf32>
    %384 = arith.addf %382, %383 : vector<8x128xf32>
    %385 = math.tanh %384 : vector<8x128xf32>
    %386 = arith.mulf %381, %385 : vector<8x128xf32>
    %cst_103 = arith.constant dense<0.000000e+00> : vector<8x512xf32>
    %387 = tpu.matmul %355, %8, %cst_103 {dimension_numbers = #tpu.dot_dimension_numbers<[1], [0], [0], [1], [0, 0, 1, 1], [], []>} : vector<8x128xf32>, vector<128x512xf32>, vector<8x512xf32> -> vector<8x512xf32>
    %388 = arith.addf %368, %387 : vector<8x512xf32>
    %389 = vector.extract_strided_slice %388 {offsets = [0, 0], sizes = [8, 384], strides = [1, 1]} : vector<8x512xf32> to vector<8x384xf32>
    %390 = arith.negf %389 : vector<8x384xf32>
    %391 = math.exp %390 : vector<8x384xf32>
    %cst_104 = arith.constant 1.000000e+00 : f32
    %392 = vector.broadcast %cst_104 : f32 to vector<8x384xf32>
    %393 = arith.addf %392, %391 : vector<8x384xf32>
    %394 = arith.divf %392, %393 : vector<8x384xf32>
    %395 = vector.extract_strided_slice %388 {offsets = [0, 384], sizes = [8, 128], strides = [1, 1]} : vector<8x512xf32> to vector<8x128xf32>
    %396 = math.tanh %395 : vector<8x128xf32>
    %397 = vector.extract_strided_slice %394 {offsets = [0, 0], sizes = [8, 128], strides = [1, 1]} : vector<8x384xf32> to vector<8x128xf32>
    %398 = vector.extract_strided_slice %394 {offsets = [0, 128], sizes = [8, 128], strides = [1, 1]} : vector<8x384xf32> to vector<8x128xf32>
    %399 = vector.extract_strided_slice %394 {offsets = [0, 256], sizes = [8, 128], strides = [1, 1]} : vector<8x384xf32> to vector<8x128xf32>
    %400 = arith.mulf %398, %353 : vector<8x128xf32>
    %401 = arith.mulf %397, %396 : vector<8x128xf32>
    %402 = arith.addf %400, %401 : vector<8x128xf32>
    %403 = math.tanh %402 : vector<8x128xf32>
    %404 = arith.mulf %399, %403 : vector<8x128xf32>
    %405 = arith.index_cast %361 : i32 to index
    %c0_105 = arith.constant 0 : index
    %406 = vector.load %arg7[%405, %c0_105] : memref<64x256xf32, #tpu.memory_space<vmem>>, vector<8x128xf32>
    tpu.vector_store %arg7[%405, %c0_105], %386 {strides = array<i32>} : memref<64x256xf32, #tpu.memory_space<vmem>>, vector<8x128xf32>,
    %407 = arith.index_cast %364 : i32 to index
    %c128_106 = arith.constant 128 : index
    %408 = vector.load %arg7[%407, %c128_106] : memref<64x256xf32, #tpu.memory_space<vmem>>, vector<8x128xf32>
    tpu.vector_store %arg7[%407, %c128_106], %404 {strides = array<i32>} : memref<64x256xf32, #tpu.memory_space<vmem>>, vector<8x128xf32>,
    %c8_i32_107 = arith.constant 8 : i32
    %c0_108 = arith.constant 0 : index
    %c0_109 = arith.constant 0 : index
    %c0_110 = arith.constant 0 : index
    %409 = vector.load %arg8[%c0_108, %c0_109, %c0_110] : memref<2x8x128xf32, #tpu.memory_space<vmem>>, vector<1x8x128xf32>
    %410 = vector.shape_cast %409 : vector<1x8x128xf32> to vector<8x128xf32>
    %411 = vector.shape_cast %386 : vector<8x128xf32> to vector<1x8x128xf32>
    tpu.vector_store %arg8[%c0_108, %c0_109, %c0_110], %411 {strides = array<i32>} : memref<2x8x128xf32, #tpu.memory_space<vmem>>, vector<1x8x128xf32>,
    %c1_111 = arith.constant 1 : index
    %c0_112 = arith.constant 0 : index
    %c0_113 = arith.constant 0 : index
    %412 = vector.load %arg8[%c1_111, %c0_112, %c0_113] : memref<2x8x128xf32, #tpu.memory_space<vmem>>, vector<1x8x128xf32>
    %413 = vector.shape_cast %412 : vector<1x8x128xf32> to vector<8x128xf32>
    %414 = vector.shape_cast %404 : vector<8x128xf32> to vector<1x8x128xf32>
    tpu.vector_store %arg8[%c1_111, %c0_112, %c0_113], %414 {strides = array<i32>} : memref<2x8x128xf32, #tpu.memory_space<vmem>>, vector<1x8x128xf32>,
    %c0_114 = arith.constant 0 : index
    %c0_115 = arith.constant 0 : index
    %c0_116 = arith.constant 0 : index
    %415 = vector.load %arg9[%c0_114, %c0_115, %c0_116] : memref<2x8x128xf32, #tpu.memory_space<vmem>>, vector<1x8x128xf32>
    %416 = vector.shape_cast %415 : vector<1x8x128xf32> to vector<8x128xf32>
    %417 = vector.shape_cast %384 : vector<8x128xf32> to vector<1x8x128xf32>
    tpu.vector_store %arg9[%c0_114, %c0_115, %c0_116], %417 {strides = array<i32>} : memref<2x8x128xf32, #tpu.memory_space<vmem>>, vector<1x8x128xf32>,
    %c1_117 = arith.constant 1 : index
    %c0_118 = arith.constant 0 : index
    %c0_119 = arith.constant 0 : index
    %418 = vector.load %arg9[%c1_117, %c0_118, %c0_119] : memref<2x8x128xf32, #tpu.memory_space<vmem>>, vector<1x8x128xf32>
    %419 = vector.shape_cast %418 : vector<1x8x128xf32> to vector<8x128xf32>
    %420 = vector.shape_cast %402 : vector<8x128xf32> to vector<1x8x128xf32>
    tpu.vector_store %arg9[%c1_117, %c0_118, %c0_119], %420 {strides = array<i32>} : memref<2x8x128xf32, #tpu.memory_space<vmem>>, vector<1x8x128xf32>,
    return
  }
}

</mosaic_0001>

<bundles_post_ra>
// kernel: tpu_custom_call.1
= control target key start
LH: loop header
LB: loop body
LE: loop exit
PB: predicated region body
PF: predicated region fallthrough
CT: control target
= control target key end

     0   :  { %15 = vsyncpa [#allocation4], 0  ;;  %s6722_s0 = inlined_call_operand.hbm [shape: f32[64,32], index: 0, kind: input, shape index: {}]   ;;  %s6723_s1 = inlined_call_operand.hbm [shape: f32[32,1024], index: 1, kind: input, shape index: {}]   ;;  %s6724_s2 = inlined_call_operand.hbm [shape: f32[128,512], index: 2, kind: input, shape index: {}]   ;;  %s6725_s3 = inlined_call_operand.hbm [shape: f32[128,512], index: 3, kind: input, shape index: {}]   ;;  %s6726_s4 = inlined_call_operand.hbm [shape: f32[1,1024], index: 4, kind: input, shape index: {}]   ;;  %s6727_s5 = inlined_call_operand.hbm [shape: f32[2,8,128], index: 5, kind: input, shape index: {}]   ;;  %s6728_s6 = inlined_call_operand.hbm [shape: f32[2,8,128], index: 6, kind: input, shape index: {}]   ;;  %s6729_s7 = inlined_call_operand.hbm [shape: f32[64,256], index: 7, kind: output, shape index: {0}]   ;;  %s6730_s8 = inlined_call_operand.hbm [shape: f32[2,8,128], index: 8, kind: output, shape index: {1}]   ;;  %s6731_s9 = inlined_call_operand.hbm [shape: f32[2,8,128], index: 9, kind: output, shape index: {2}]  }
   0x1   :  { %16 = vsyncpa [#allocation7], 0 }
   0x2   :  { %17 = vsyncpa [#allocation10], 0 }
   0x3   :  { %18 = vsyncpa [#allocation13], 0 }
   0x4   :  { %19 = vsyncpa [#allocation5], 0 }
   0x5   :  { %20 = vsyncpa [#allocation17], 0  ;;  %s5571_s30 = smov [#allocation6]   ;;  %s5339_s13 = scalar_lea.hbm %s6723_s1, 4096 }
   0x6   :  { %s38_s10 = sshll.u32 %s5571_s30, 4  ;;  %p5340_p0 = scmp.ne.s32.totalorder %s6723_s1, %s5339_s13  ;;  %s39_s10 = int_to_ptr.vmem [resolvable:$true] %s38_s10 }
   0x7   :  { %p5343_p1 = scmp.lt.u32.totalorder %s5339_s13, %s6723_s1 }
   0x9   :  { %p5345_p2 = pnand %p5343_p1, %p5340_p0 }
   0xb   :  { %5348 = shalt.err (!%p5345_p2)
}
   0xc   :  { %s5349_s18 = scalar_lea.vmem %s39_s10, 4096  ;;  %p5354_p4 = scmp.lt.s32.totalorder %s39_s10, %s39_s10 }
   0xd   :  { %p5350_p3 = scmp.ne.s32.totalorder %s39_s10, %s5349_s18  ;;  %p5355_p5 = scmp.lt.s32.totalorder %s5349_s18, %s5349_s18 }
   0xf   :  { %p5356_p6 = por %p5355_p5, %p5354_p4 }
  0x11   :  { %p5357_p7 = pnand %p5356_p6, %p5350_p3 }
  0x13   :  { %5360 = shalt.err (!%p5357_p7)
}
  0x14   :  { %s5572_s19 = smov 1024   ;;  %s5573_s20 = smov 64  }
  0x15   :  { %44 = dma.hbm_to_vmem [thread:$0]  %s6723_s1, 4096, %s39_s10, [#allocation7], %s5572_s19, %s5572_s19, %s5573_s20  }
  0x16   :  { %s5574_s23 = smov [#allocation9]   ;;  %s5361_s27 = scalar_lea.hbm %s6725_s3, 8192 }
  0x17   :  { %s62_s24 = sshll.u32 %s5574_s23, 4  ;;  %p5362_p8 = scmp.ne.s32.totalorder %s6725_s3, %s5361_s27  ;;  %s63_s24 = int_to_ptr.vmem [resolvable:$true] %s62_s24 }
  0x18   :  { %p5365_p9 = scmp.lt.u32.totalorder %s5361_s27, %s6725_s3 }
  0x1a   :  { %p5367_p10 = pnand %p5365_p9, %p5362_p8 }
  0x1c   :  { %5370 = shalt.err (!%p5367_p10)
}
  0x1d   :  { %s5371_s12 = scalar_lea.vmem %s63_s24, 8192  ;;  %p5376_p12 = scmp.lt.s32.totalorder %s63_s24, %s63_s24 }
  0x1e   :  { %p5372_p11 = scmp.ne.s32.totalorder %s63_s24, %s5371_s12  ;;  %p5377_p13 = scmp.lt.s32.totalorder %s5371_s12, %s5371_s12 }
  0x20   :  { %p5378_p0 = por %p5377_p13, %p5376_p12 }
  0x22   :  { %p5379_p1 = pnand %p5378_p0, %p5372_p11 }
  0x24   :  { %5382 = shalt.err (!%p5379_p1)
}
  0x25   :  { %s5575_s1 = smov 512   ;;  %s5576_s10 = smov 32  }
  0x26   :  { %68 = dma.hbm_to_vmem [thread:$0]  %s6725_s3, 8192, %s63_s24, [#allocation10], %s5575_s1, %s5575_s1, %s5576_s10  }
  0x27   :  { %s5577_s15 = smov [#allocation12]   ;;  %s5578_s17 = smov [#allocation3]  }
  0x28   :  { %s84_s16 = sshll.u32 %s5577_s15, 4  ;;  %s26_s18 = sshll.u32 %s5578_s17, 4  ;;  %s85_s16 = int_to_ptr.vmem [resolvable:$true] %s84_s16  ;;  %s5667_s18 = int_to_ptr.vmem [resolvable:$true] %s26_s18 }
  0x29   :  { %s5383_s21 = scalar_lea.hbm %s6727_s5, 256 }
  0x2a   :  { %p5384_p2 = scmp.ne.s32.totalorder %s6727_s5, %s5383_s21  ;;  %p5387_p3 = scmp.lt.u32.totalorder %s5383_s21, %s6727_s5 }
  0x2c   :  { %p5389_p4 = pnand %p5387_p3, %p5384_p2 }
  0x2e   :  { %5392 = shalt.err (!%p5389_p4)
}
  0x2f   :  { %s5393_s3 = scalar_lea.vmem %s85_s16, 256  ;;  %p5398_p6 = scmp.lt.s32.totalorder %s85_s16, %s85_s16 }
  0x30   :  { %p5394_p5 = scmp.ne.s32.totalorder %s85_s16, %s5393_s3  ;;  %p5399_p7 = scmp.lt.s32.totalorder %s5393_s3, %s5393_s3 }
  0x32   :  { %p5400_p8 = por %p5399_p7, %p5398_p6 }
  0x34   :  { %p5401_p9 = pnand %p5400_p8, %p5394_p5 }
  0x36   :  { %5404 = shalt.err (!%p5401_p9)
}
  0x37   :  { %s5579_s24 = smov 128   ;;  %s5580_s27 = smov 8  }
  0x38   :  { %90 = dma.hbm_to_vmem [thread:$0]  %s6727_s5, 256, %s85_s16, [#allocation13], %s5579_s24, %s5579_s24, %s5580_s27  }
  0x39   :  { %s5405_s12 = scalar_lea.hbm %s6722_s0, 1024 }
  0x3a   :  { %p5406_p10 = scmp.ne.s32.totalorder %s6722_s0, %s5405_s12  ;;  %p5409_p11 = scmp.lt.u32.totalorder %s5405_s12, %s6722_s0 }
  0x3c   :  { %p5411_p12 = pnand %p5409_p11, %p5406_p10 }
  0x3e   :  { %5414 = shalt.err (!%p5411_p12)
}
  0x3f   :  { %s5415_s19 = scalar_lea.vmem %s5667_s18, 1024  ;;  %p5420_p0 = scmp.lt.s32.totalorder %s5667_s18, %s5667_s18 }
  0x40   :  { %p5416_p13 = scmp.ne.s32.totalorder %s5667_s18, %s5415_s19  ;;  %p5421_p1 = scmp.lt.s32.totalorder %s5415_s19, %s5415_s19 }
  0x42   :  { %p5422_p2 = por %p5421_p1, %p5420_p0 }
  0x44   :  { %p5423_p3 = pnand %p5422_p2, %p5416_p13 }
  0x46   :  { %5426 = shalt.err (!%p5423_p3)
}
  0x47   :  { %32 = dma.hbm_to_vmem [thread:$0]  %s6722_s0, 1024, %s5667_s18, [#allocation4], %s5579_s24, %s5579_s24, %s5580_s27  }
  0x48   :  { %s5581_s20 = smov [#allocation8]   ;;  %s5582_s22 = smov [#allocation11]  }
  0x49   :  { %s50_s21 = sshll.u32 %s5581_s20, 4  ;;  %s75_s23 = sshll.u32 %s5582_s22, 4  ;;  %s51_s21 = int_to_ptr.vmem [resolvable:$true] %s50_s21  ;;  %s76_s23 = int_to_ptr.vmem [resolvable:$true] %s75_s23 }
  0x4a   :  { %s5427_s3 = scalar_lea.hbm %s6724_s2, 8192 }
  0x4b   :  { %p5428_p4 = scmp.ne.s32.totalorder %s6724_s2, %s5427_s3  ;;  %p5431_p5 = scmp.lt.u32.totalorder %s5427_s3, %s6724_s2 }
  0x4d   :  { %p5433_p6 = pnand %p5431_p5, %p5428_p4 }
  0x4f   :  { %5436 = shalt.err (!%p5433_p6)
}
  0x50   :  { %s5437_s0 = scalar_lea.vmem %s51_s21, 8192  ;;  %p5442_p8 = scmp.lt.s32.totalorder %s51_s21, %s51_s21 }
  0x51   :  { %p5438_p7 = scmp.ne.s32.totalorder %s51_s21, %s5437_s0  ;;  %p5443_p9 = scmp.lt.s32.totalorder %s5437_s0, %s5437_s0 }
  0x53   :  { %p5444_p10 = por %p5443_p9, %p5442_p8 }
  0x55   :  { %p5445_p11 = pnand %p5444_p10, %p5438_p7 }
  0x57   :  { %5448 = shalt.err (!%p5445_p11)
}
  0x58   :  { %56 = dma.hbm_to_vmem [thread:$0]  %s6724_s2, 8192, %s51_s21, [#allocation7], %s5575_s1, %s5575_s1, %s5576_s10  }
  0x59   :  { %s5449_s15 = scalar_lea.hbm %s6726_s4, 128 }
  0x5a   :  { %p5450_p12 = scmp.ne.s32.totalorder %s6726_s4, %s5449_s15  ;;  %p5453_p13 = scmp.lt.u32.totalorder %s5449_s15, %s6726_s4 }
  0x5c   :  { %p5455_p0 = pnand %p5453_p13, %p5450_p12 }
  0x5e   :  { %5458 = shalt.err (!%p5455_p0)
}
  0x5f   :  { %s5459_s20 = scalar_lea.vmem %s76_s23, 128  ;;  %p5464_p2 = scmp.lt.s32.totalorder %s76_s23, %s76_s23 }
  0x60   :  { %p5460_p1 = scmp.ne.s32.totalorder %s76_s23, %s5459_s20  ;;  %p5465_p3 = scmp.lt.s32.totalorder %s5459_s20, %s5459_s20 }
  0x62   :  { %p5466_p4 = por %p5465_p3, %p5464_p2 }
  0x64   :  { %p5467_p5 = pnand %p5466_p4, %p5460_p1 }
  0x66   :  { %5470 = shalt.err (!%p5467_p5)
}
  0x67   :  { %78 = dma.hbm_to_vmem [thread:$0]  %s6726_s4, 128, %s76_s23, [#allocation10]  }
  0x68   :  { %s5583_s10 = smov [#allocation14]   ;;  %s5471_s26 = scalar_lea.hbm %s6728_s6, 256 }
  0x69   :  { %s96_s21 = sshll.u32 %s5583_s10, 4  ;;  %p5472_p6 = scmp.ne.s32.totalorder %s6728_s6, %s5471_s26  ;;  %s97_s21 = int_to_ptr.vmem [resolvable:$true] %s96_s21 }
  0x6a   :  { %p5475_p7 = scmp.lt.u32.totalorder %s5471_s26, %s6728_s6 }
  0x6c   :  { %p5477_p8 = pnand %p5475_p7, %p5472_p6 }
  0x6e   :  { %5480 = shalt.err (!%p5477_p8)
}
  0x6f   :  { %s5481_s11 = scalar_lea.vmem %s97_s21, 256  ;;  %p5486_p10 = scmp.lt.s32.totalorder %s97_s21, %s97_s21 }
  0x70   :  { %p5482_p9 = scmp.ne.s32.totalorder %s97_s21, %s5481_s11  ;;  %p5487_p11 = scmp.lt.s32.totalorder %s5481_s11, %s5481_s11 }
  0x72   :  { %p5488_p12 = por %p5487_p11, %p5486_p10 }
  0x74   :  { %p5489_p13 = pnand %p5488_p12, %p5482_p9 }
  0x76   :  { %5492 = shalt.err (!%p5489_p13)
}
  0x77   :  { %102 = dma.hbm_to_vmem [thread:$0]  %s6728_s6, 256, %s97_s21, [#allocation13], %s5579_s24, %s5579_s24, %s5580_s27  }
  0x78   :  { %5559 = dma.done.wait [#allocation4], 1024  }
  0x79   :  { %5560 = vsyncadd [#allocation4], 4294966272 }
  0x7a   :  { %5561 = dma.done.wait [#allocation7], 12288  }
  0x7b   :  { %5562 = vsyncadd [#allocation7], 4294955008 }
  0x7c   :  { %5563 = dma.done.wait [#allocation10], 8320  }
  0x7d   :  { %5564 = vsyncadd [#allocation10], 4294958976 }
  0x7e   :  { %5565 = dma.done.wait [#allocation13], 512  }
  0x7f   :  { %5566 = vsyncadd [#allocation13], 4294966784  ;;  %v6732_v0 = vmov 0.0   ;;  %v133_v1 = vld [vmem:[#allocation6 + $0x8] sm:$0xff]  ;;  %v135_v3 = vld [vmem:[#allocation6 + $0x18] sm:$0xff]  ;;  %vm206_vm0 = vcmask 261120  }
  0x80   :  { %295 = vmatprep.mubr.f32.mxu0 %v6732_v0  ;;  %408 = vmatprep.mubr.f32.mxu1 %v6732_v0  ;;  %v141_v2 = vld [vmem:[#allocation6 + $0x48] sm:$0xff]  ;;  %v143_v5 = vld [vmem:[#allocation6 + $0x58] sm:$0xff]  ;;  %v132_v6 = vld [vmem:[#allocation6] sm:$0xff]  ;;  %s5585_s6 = smov [#allocation16]   ;;  %s5586_s18 = smov [#allocation15]  }
  0x81   :  { %v3880_v4 = vpack.c.bf16 %v141_v2, %v133_v1  ;;  %v140_v7 = vld [vmem:[#allocation6 + $0x40] sm:$0xff]  ;;  %v3888_v8 = vpack.c.bf16 %v143_v5, %v135_v3  ;;  %v134_v10 = vld [vmem:[#allocation6 + $0x10] sm:$0xff]  ;;  %v149_v12 = vld [vmem:[#allocation6 + $0x88] sm:$0xff]  ;;  %s3752_s0 = sshll.u32 %s5585_s6, 4  ;;  %s3740_s12 = sshll.u32 %s5586_s18, 4  ;;  %s3753_s0 = int_to_ptr.vmem [resolvable:$true] %s3752_s0  ;;  %s6666_s12 = int_to_ptr.vmem [resolvable:$true] %s3740_s12 }
  0x82   :  { %v3882_v9 = vpack.c.bf16 %v140_v7, %v132_v6  ;;  %v142_v11 = vld [vmem:[#allocation6 + $0x50] sm:$0xff]  ;;  %v157_v14 = vld [vmem:[#allocation6 + $0xc8] sm:$0xff]  ;;  %v151_v15 = vld [vmem:[#allocation6 + $0x98] sm:$0xff]  ;;  %s5587_s13 = smov [#allocation18]   ;;  %s5493_s15 = scalar_lea.vmem %s3753_s0, 256 }
  0x83   :  { %3881 = vmatprep.subr.bf16.mxu0 %v3880_v4  ;;  %v3890_v13 = vpack.c.bf16 %v142_v11, %v134_v10  ;;  %v159_v16 = vld [vmem:[#allocation6 + $0xd8] sm:$0xff]  ;;  %3889 = vmatprep.subr.bf16.mxu1 %v3888_v8  ;;  %v3884_v17 = vpack.c.bf16 %v157_v14, %v149_v12  ;;  %v148_v19 = vld [vmem:[#allocation6 + $0x80] sm:$0xff]  ;;  %v150_v21 = vld [vmem:[#allocation6 + $0x90] sm:$0xff]  ;;  %s3764_s14 = sshll.u32 %s5587_s13, 4  ;;  %p5494_p0 = scmp.ne.s32.totalorder %s3753_s0, %s5493_s15  ;;  %s6668_s14 = int_to_ptr.vmem [resolvable:$true] %s3764_s14 }
  0x84   :  { %3883 = vmatpush1.bf16.msra.mxu0 %v3882_v9  ;;  %v3892_v18 = vpack.c.bf16 %v159_v16, %v151_v15  ;;  %v156_v20 = vld [vmem:[#allocation6 + $0xc0] sm:$0xff]  ;;  %v158_v23 = vld [vmem:[#allocation6 + $0xd0] sm:$0xff]  ;;  %v137_v24 = vld [vmem:[#allocation6 + $0x28] sm:$0xff]  ;;  %p5498_p1 = scmp.lt.s32.totalorder %s3753_s0, %s3753_s0  ;;  %p5499_p2 = scmp.lt.s32.totalorder %s5493_s15, %s5493_s15 }
  0x85   :  { %3891 = vmatpush1.bf16.msra.mxu1 %v3890_v13  ;;  %v3886_v22 = vpack.c.bf16 %v156_v20, %v148_v19  ;;  %3885 = vmatprep.subr.bf16.mxu0 %v3884_v17  ;;  %v3894_v25 = vpack.c.bf16 %v158_v23, %v150_v21  ;;  %v145_v26 = vld [vmem:[#allocation6 + $0x68] sm:$0xff]  ;;  %v136_v27 = vld [vmem:[#allocation6 + $0x20] sm:$0xff]  ;;  %v139_v32 = vld [vmem:[#allocation6 + $0x38] sm:$0xff] }
  0x86   :  { %3893 = vmatprep.subr.bf16.mxu1 %v3892_v18  ;;  %v144_v28 = vld [vmem:[#allocation6 + $0x60] sm:$0xff]  ;;  %v3896_v29 = vpack.c.bf16 %v145_v26, %v137_v24  ;;  %v147_v33 = vld [vmem:[#allocation6 + $0x78] sm:$0xff]  ;;  %v153_v35 = vld [vmem:[#allocation6 + $0xa8] sm:$0xff]  ;;  %p5500_p3 = por %p5499_p2, %p5498_p1 }
  0x87   :  { %v5748_v30 = vld [vmem:[#allocation3] sm:$0xff]  ;;  %v3898_v31 = vpack.c.bf16 %v144_v28, %v136_v27  ;;  %v3904_v34 = vpack.c.bf16 %v147_v33, %v139_v32  ;;  %v161_v36 = vld [vmem:[#allocation6 + $0xe8] sm:$0xff]  ;;  %v138_v37 = vld [vmem:[#allocation6 + $0x30] sm:$0xff] }
  0x88   :  { %3887 = vmatpush1.bf16.msra.mxu0 %v3886_v22  ;;  %v3900_v38 = vpack.c.bf16 %v161_v36, %v153_v35  ;;  %v146_v39 = vld [vmem:[#allocation6 + $0x70] sm:$0xff]  ;;  %v152_v40 = vld [vmem:[#allocation6 + $0xa0] sm:$0xff]  ;;  %v155_v43 = vld [vmem:[#allocation6 + $0xb8] sm:$0xff]  ;;  %p5501_p4 = pnand %p5500_p3, %p5494_p0 }
  0x89   :  { %3895 = vmatpush1.bf16.msra.mxu1 %v3894_v25  ;;  %3897 = vmatprep.subr.bf16.mxu0 %v3896_v29  ;;  %v160_v41 = vld [vmem:[#allocation6 + $0xe0] sm:$0xff]  ;;  %v3906_v42 = vpack.c.bf16 %v146_v39, %v138_v37  ;;  %v5754_v44 = vld [vmem:[#allocation3 + $0x8] sm:$0xff]  ;;  %v163_v45 = vld [vmem:[#allocation6 + $0xf8] sm:$0xff] }
  0x8a   :  { %3905 = vmatprep.subr.bf16.mxu1 %v3904_v34  ;;  %v154_v46 = vld [vmem:[#allocation6 + $0xb0] sm:$0xff]  ;;  %v3902_v47 = vpack.c.bf16 %v160_v41, %v152_v40  ;;  %v3908_v48 = vpack.c.bf16 %v163_v45, %v155_v43  ;;  %v748_v50 = vld [vmem:[#allocation8 + $0x8] sm:$0xff]  ;;  %v750_v54 = vld [vmem:[#allocation8 + $0x18] sm:$0xff] }
  0x8b   :  { %3800 = vmatmul.mubr.msk.f32.vlgmr.msra.gmra.mrb[0].mxu0 %vm206_vm0, %v5748_v30  ;;  %v162_v49 = vld [vmem:[#allocation6 + $0xf0] sm:$0xff]  ;;  %v752_v51 = vld [vmem:[#allocation8 + $0x28] sm:$0xff]  ;;  %v754_v55 = vld [vmem:[#allocation8 + $0x38] sm:$0xff] }
  0x8c   :  { %3808 = vmatmul.mubr.msk.f32.vlgmr.msra.gmra.mrb[0].mxu1 %vm206_vm0, %v5748_v30  ;;  %3899 = vmatpush1.bf16.msra.mxu0 %v3898_v31  ;;  %v3910_v52 = vpack.c.bf16 %v162_v49, %v154_v46  ;;  %v5758_v53 = vpack.c.bf16 %v752_v51, %v748_v50  ;;  %v5762_v56 = vpack.c.bf16 %v754_v55, %v750_v54  ;;  %v5767_v57 = vld [vmem:[#allocation3 + $0x10] sm:$0xff]  ;;  %v5777_v58 = vld [vmem:[#allocation3 + $0x18] sm:$0xff]  ;;  %v5785_v59 = vld [vmem:[#allocation3 + $0x20] sm:$0xff] }
  0x8d   :  { %301 = vmatprep.mubr.f32.mxu0 %v6732_v0  ;;  %414 = vmatprep.mubr.f32.mxu1 %v6732_v0  ;;  %v5793_v60 = vld [vmem:[#allocation3 + $0x28] sm:$0xff]  ;;  %v5801_v61 = vld [vmem:[#allocation3 + $0x30] sm:$0xff]  ;;  %v5809_v62 = vld [vmem:[#allocation3 + $0x38] sm:$0xff] }
  0x8e   :  { %3901 = vmatprep.subr.bf16.mxu0 %v3900_v38  ;;  %3907 = vmatpush1.bf16.msra.mxu1 %v3906_v42  ;;  %v747_v63 = vld [vmem:[#allocation8] sm:$0xff]  ;;  %v749_v2 = vld [vmem:[#allocation8 + $0x10] sm:$0xff]  ;;  %v756_v4 = vld [vmem:[#allocation8 + $0x48] sm:$0xff] }
  0x8f   :  { %3801 = vmatmul.mubr.msk.f32.gmra.mrb[2].mxu0 %vm206_vm0, %v5754_v44  ;;  %3909 = vmatprep.subr.bf16.mxu1 %v3908_v48  ;;  %v751_v1 = vld [vmem:[#allocation8 + $0x20] sm:$0xff]  ;;  %v753_v3 = vld [vmem:[#allocation8 + $0x30] sm:$0xff]  ;;  %v760_v5 = vld [vmem:[#allocation8 + $0x68] sm:$0xff] }
  0x90   :  { %3809 = vmatmul.mubr.msk.f32.gmra.mrb[2].mxu1 %vm206_vm0, %v5754_v44  ;;  %307 = vmatprep.mubr.f32.mxu0 %v6732_v0  ;;  %v5817_v6 = vpack.c.bf16 %v751_v1, %v747_v63  ;;  %v758_v7 = vld [vmem:[#allocation8 + $0x58] sm:$0xff]  ;;  %v5820_v9 = vpack.c.bf16 %v753_v3, %v749_v2  ;;  %v755_v10 = vld [vmem:[#allocation8 + $0x40] sm:$0xff]  ;;  %v5822_v12 = vpack.c.bf16 %v760_v5, %v756_v4  ;;  %v757_v13 = vld [vmem:[#allocation8 + $0x50] sm:$0xff] }
  0x91   :  { %420 = vmatprep.mubr.f32.mxu1 %v6732_v0  ;;  %3903 = vmatpush1.bf16.msra.mxu0 %v3902_v47  ;;  %v762_v8 = vld [vmem:[#allocation8 + $0x78] sm:$0xff]  ;;  %v759_v11 = vld [vmem:[#allocation8 + $0x60] sm:$0xff]  ;;  %v761_v14 = vld [vmem:[#allocation8 + $0x70] sm:$0xff] }
  0x92   :  { %3911 = vmatpush1.bf16.msra.mxu1 %v3910_v52  ;;  %3913 = vmatprep.subr.bf16.mxu0 %v5758_v53  ;;  %v5826_v15 = vpack.c.bf16 %v762_v8, %v758_v7  ;;  %v764_v16 = vld [vmem:[#allocation8 + $0x88] sm:$0xff]  ;;  %v5831_v18 = vpack.c.bf16 %v759_v11, %v755_v10  ;;  %v766_v19 = vld [vmem:[#allocation8 + $0x98] sm:$0xff]  ;;  %v5835_v21 = vpack.c.bf16 %v761_v14, %v757_v13  ;;  %v763_v22 = vld [vmem:[#allocation8 + $0x80] sm:$0xff] }
  0x93   :  { %3802 = vmatmul.mubr.msk.f32.gmra.mrb[4].mxu0 %vm206_vm0, %v5767_v57  ;;  %3945 = vmatprep.subr.bf16.mxu1 %v5762_v56  ;;  %v768_v17 = vld [vmem:[#allocation8 + $0xa8] sm:$0xff]  ;;  %v770_v20 = vld [vmem:[#allocation8 + $0xb8] sm:$0xff]  ;;  %v767_v23 = vld [vmem:[#allocation8 + $0xa0] sm:$0xff] }
  0x94   :  { %3810 = vmatmul.mubr.msk.f32.gmra.mrb[4].mxu1 %vm206_vm0, %v5767_v57  ;;  %313 = vmatprep.mubr.f32.mxu0 %v6732_v0  ;;  %v5839_v24 = vpack.c.bf16 %v768_v17, %v764_v16  ;;  %v765_v25 = vld [vmem:[#allocation8 + $0x90] sm:$0xff]  ;;  %v5844_v27 = vpack.c.bf16 %v770_v20, %v766_v19  ;;  %v772_v28 = vld [vmem:[#allocation8 + $0xc8] sm:$0xff]  ;;  %v774_v31 = vld [vmem:[#allocation8 + $0xd8] sm:$0xff] }
  0x95   :  { %426 = vmatprep.mubr.f32.mxu1 %v6732_v0  ;;  %v769_v26 = vld [vmem:[#allocation8 + $0xb0] sm:$0xff]  ;;  %v776_v29 = vld [vmem:[#allocation8 + $0xe8] sm:$0xff]  ;;  %v778_v32 = vld [vmem:[#allocation8 + $0xf8] sm:$0xff] }
  0x96   :  { %6816 = vst [vmem:[#allocation25_spill] sm:$0xff] %v5839_v24  ;;  %6817 = vst [vmem:[#allocation26_spill] sm:$0xff] %v5844_v27  ;;  %v5853_v33 = vpack.c.bf16 %v769_v26, %v765_v25  ;;  %v771_v34 = vld [vmem:[#allocation8 + $0xc0] sm:$0xff]  ;;  %v5857_v36 = vpack.c.bf16 %v776_v29, %v772_v28  ;;  %v773_v37 = vld [vmem:[#allocation8 + $0xd0] sm:$0xff]  ;;  %v5862_v39 = vpack.c.bf16 %v778_v32, %v774_v31 }
  0x97   :  { %3803 = vmatmul.mubr.msk.f32.gmra.mrb[6].mxu0 %vm206_vm0, %v5777_v58  ;;  %v775_v35 = vld [vmem:[#allocation8 + $0xe0] sm:$0xff]  ;;  %v777_v38 = vld [vmem:[#allocation8 + $0xf0] sm:$0xff]  ;;  %v780_v40 = vld [vmem:[#allocation8 + $0x108] sm:$0xff] }
  0x98   :  { %3811 = vmatmul.mubr.msk.f32.gmra.mrb[6].mxu1 %vm206_vm0, %v5777_v58  ;;  %319 = vmatprep.mubr.f32.mxu0 %v6732_v0  ;;  %6819 = vst [vmem:[#allocation28_spill] sm:$0xff] %v5853_v33  ;;  %6820 = vst [vmem:[#allocation29_spill] sm:$0xff] %v5857_v36  ;;  %v784_v41 = vld [vmem:[#allocation8 + $0x128] sm:$0xff]  ;;  %v5867_v42 = vpack.c.bf16 %v775_v35, %v771_v34  ;;  %v782_v43 = vld [vmem:[#allocation8 + $0x118] sm:$0xff]  ;;  %v5871_v45 = vpack.c.bf16 %v777_v38, %v773_v37 }
  0x99   :  { %432 = vmatprep.mubr.f32.mxu1 %v6732_v0  ;;  %6821 = vst [vmem:[#allocation30_spill] sm:$0xff] %v5862_v39  ;;  %v779_v46 = vld [vmem:[#allocation8 + $0x100] sm:$0xff]  ;;  %v5875_v48 = vpack.c.bf16 %v784_v41, %v780_v40  ;;  %v781_v49 = vld [vmem:[#allocation8 + $0x110] sm:$0xff]  ;;  %v788_v52 = vld [vmem:[#allocation8 + $0x148] sm:$0xff] }
  0x9a   :  { %6822 = vst [vmem:[#allocation31_spill] sm:$0xff] %v5867_v42  ;;  %6823 = vst [vmem:[#allocation32_spill] sm:$0xff] %v5871_v45  ;;  %v783_v47 = vld [vmem:[#allocation8 + $0x120] sm:$0xff]  ;;  %v785_v50 = vld [vmem:[#allocation8 + $0x130] sm:$0xff] }
  0x9b   :  { %3804 = vmatmul.mubr.msk.f32.gmra.mrb[8].mxu0 %vm206_vm0, %v5785_v59  ;;  %6824 = vst [vmem:[#allocation33_spill] sm:$0xff] %v5875_v48  ;;  %v792_v54 = vld [vmem:[#allocation8 + $0x168] sm:$0xff]  ;;  %v5885_v55 = vpack.c.bf16 %v783_v47, %v779_v46  ;;  %v794_v63 = vld [vmem:[#allocation8 + $0x178] sm:$0xff]  ;;  %v5889_v1 = vpack.c.bf16 %v785_v50, %v781_v49  ;;  %v787_v2 = vld [vmem:[#allocation8 + $0x140] sm:$0xff] }
  0x9c   :  { %3812 = vmatmul.mubr.msk.f32.gmra.mrb[8].mxu1 %vm206_vm0, %v5785_v59  ;;  %325 = vmatprep.mubr.f32.mxu0 %v6732_v0  ;;  %v791_v3 = vld [vmem:[#allocation8 + $0x160] sm:$0xff]  ;;  %v5893_v4 = vpack.c.bf16 %v792_v54, %v788_v52  ;;  %v793_v5 = vld [vmem:[#allocation8 + $0x170] sm:$0xff]  ;;  %v796_v8 = vld [vmem:[#allocation8 + $0x188] sm:$0xff] }
  0x9d   :  { %438 = vmatprep.mubr.f32.mxu1 %v6732_v0  ;;  %6826 = vst [vmem:[#allocation35_spill] sm:$0xff] %v5885_v55  ;;  %6827 = vst [vmem:[#allocation36_spill] sm:$0xff] %v5889_v1  ;;  %v800_v10 = vld [vmem:[#allocation8 + $0x1a8] sm:$0xff]  ;;  %v5903_v11 = vpack.c.bf16 %v791_v3, %v787_v2  ;;  %v798_v13 = vld [vmem:[#allocation8 + $0x198] sm:$0xff] }
  0x9e   :  { %6828 = vst [vmem:[#allocation37_spill] sm:$0xff] %v5893_v4  ;;  %v802_v14 = vld [vmem:[#allocation8 + $0x1b8] sm:$0xff]  ;;  %v795_v17 = vld [vmem:[#allocation8 + $0x180] sm:$0xff]  ;;  %v5911_v20 = vpack.c.bf16 %v800_v10, %v796_v8  ;;  %v804_v25 = vld [vmem:[#allocation8 + $0x1c8] sm:$0xff] }
  0x9f   :  { %3805 = vmatmul.mubr.msk.f32.gmra.mrb[10].mxu0 %vm206_vm0, %v5793_v60  ;;  %6830 = vst [vmem:[#allocation39_spill] sm:$0xff] %v5903_v11  ;;  %v799_v19 = vld [vmem:[#allocation8 + $0x1a0] sm:$0xff]  ;;  %v808_v26 = vld [vmem:[#allocation8 + $0x1e8] sm:$0xff]  ;;  %v806_v29 = vld [vmem:[#allocation8 + $0x1d8] sm:$0xff] }
  0xa0   :  { %3813 = vmatmul.mubr.msk.f32.gmra.mrb[10].mxu1 %vm206_vm0, %v5793_v60  ;;  %331 = vmatprep.mubr.f32.mxu0 %v6732_v0  ;;  %6832 = vst [vmem:[#allocation41_spill] sm:$0xff] %v5911_v20  ;;  %v5921_v28 = vpack.c.bf16 %v799_v19, %v795_v17  ;;  %v810_v31 = vld [vmem:[#allocation8 + $0x1f8] sm:$0xff]  ;;  %v803_v34 = vld [vmem:[#allocation8 + $0x1c0] sm:$0xff]  ;;  %v5929_v37 = vpack.c.bf16 %v808_v26, %v804_v25  ;;  %v809_v38 = vld [vmem:[#allocation8 + $0x1f0] sm:$0xff] }
  0xa1   :  { %444 = vmatprep.mubr.f32.mxu1 %v6732_v0  ;;  %v807_v35 = vld [vmem:[#allocation8 + $0x1e0] sm:$0xff]  ;;  %v5934_v40 = vpack.c.bf16 %v810_v31, %v806_v29  ;;  %v812_v41 = vld [vmem:[#allocation9 + $0x8] sm:$0xff]  ;;  %v814_v46 = vld [vmem:[#allocation9 + $0x18] sm:$0xff] }
  0xa2   :  { %6834 = vst [vmem:[#allocation43_spill] sm:$0xff] %v5921_v28  ;;  %6836 = vst [vmem:[#allocation45_spill] sm:$0xff] %v5929_v37  ;;  %v818_v47 = vld [vmem:[#allocation9 + $0x38] sm:$0xff]  ;;  %v811_v50 = vld [vmem:[#allocation9] sm:$0xff] }
  0xa3   :  { %3806 = vmatmul.mubr.msk.f32.gmra.mrb[12].mxu0 %vm206_vm0, %v5801_v61  ;;  %6837 = vst [vmem:[#allocation46_spill] sm:$0xff] %v5934_v40  ;;  %v815_v52 = vld [vmem:[#allocation9 + $0x20] sm:$0xff]  ;;  %v813_v54 = vld [vmem:[#allocation9 + $0x10] sm:$0xff]  ;;  %v824_v2 = vld [vmem:[#allocation9 + $0x68] sm:$0xff]  ;;  %v5952_v3 = vpack.c.bf16 %v818_v47, %v814_v46 }
  0xa4   :  { %3814 = vmatmul.mubr.msk.f32.gmra.mrb[12].mxu1 %vm206_vm0, %v5801_v61  ;;  %337 = vmatprep.mubr.f32.mxu0 %v6732_v0  ;;  %v875_v8 = vld [vmem:[#allocation12] sm:$0xff]  ;;  %v5957_v10 = vpack.c.bf16 %v815_v52, %v811_v50  ;;  %v819_v17 = vld [vmem:[#allocation9 + $0x40] sm:$0xff]  ;;  %v830_v29 = vld [vmem:[#allocation9 + $0x98] sm:$0xff] }
  0xa5   :  { %450 = vmatprep.mubr.f32.mxu1 %v6732_v0  ;;  %6841 = vst [vmem:[#allocation50_spill] sm:$0xff] %v5952_v3  ;;  %v823_v19 = vld [vmem:[#allocation9 + $0x60] sm:$0xff]  ;;  %v828_v25 = vld [vmem:[#allocation9 + $0x88] sm:$0xff]  ;;  %v834_v31 = vld [vmem:[#allocation9 + $0xb8] sm:$0xff] }
  0xa6   :  { %v832_v26 = vld [vmem:[#allocation9 + $0xa8] sm:$0xff]  ;;  %v5980_v46 = vpack.c.bf16 %v834_v31, %v830_v29  ;;  %v833_v47 = vld [vmem:[#allocation9 + $0xb0] sm:$0xff]  ;;  %v850_v29 = vld [vmem:[#allocation9 + $0x138] sm:$0xff] }
  0xa7   :  { %3807 = vmatmul.mubr.msk.f32.gmra.mrb[14].mxu0 %vm206_vm0, %v5809_v62  ;;  %v836_v50 = vld [vmem:[#allocation9 + $0xc8] sm:$0xff] }
  0xa8   :  { %3815 = vmatmul.mubr.msk.f32.gmra.mrb[14].mxu1 %vm206_vm0, %v5809_v62  ;;  %521 = vmatprep.mubr.f32.mxu0 %v6732_v0  ;;  %v840_v52 = vld [vmem:[#allocation9 + $0xe8] sm:$0xff] }
  0xa9   :  { %634 = vmatprep.mubr.f32.mxu1 %v6732_v0 }
  0xab   :  { %3816 = vmatmul.mubr.msk.f32.vlgmr.msra.gmra.mrb[16].mxu0 %vm206_vm0, %v5748_v30 }
  0xac   :  { %3824 = vmatmul.mubr.msk.f32.vlgmr.msra.gmra.mrb[16].mxu1 %vm206_vm0, %v5748_v30  ;;  %3915 = vmatpush1.bf16.msra.mxu0 %v5817_v6  ;;  %v5849_v30 = vpack.c.bf16 %v767_v23, %v763_v22  ;;  %v801_v22 = vld [vmem:[#allocation8 + $0x1b0] sm:$0xff]  ;;  %v5916_v23 = vpack.c.bf16 %v802_v14, %v798_v13 }
  0xad   :  { %3947 = vmatpush1.bf16.msra.mxu1 %v5820_v9  ;;  %527 = vmatprep.mubr.f32.mxu0 %v6732_v0 }
  0xae   :  { %640 = vmatprep.mubr.f32.mxu1 %v6732_v0  ;;  %3917 = vmatprep.subr.bf16.mxu0 %v5822_v12  ;;  %6818 = vst [vmem:[#allocation27_spill] sm:$0xff] %v5849_v30  ;;  %6833 = vst [vmem:[#allocation42_spill] sm:$0xff] %v5916_v23 }
  0xaf   :  { %3949 = vmatprep.subr.bf16.mxu1 %v5826_v15  ;;  %3817 = vmatmul.mubr.msk.f32.gmra.mrb[18].mxu0 %vm206_vm0, %v5754_v44 }
  0xb0   :  { %3825 = vmatmul.mubr.msk.f32.gmra.mrb[18].mxu1 %vm206_vm0, %v5754_v44  ;;  %3919 = vmatpush1.bf16.msra.mxu0 %v5831_v18  ;;  %v786_v44 = vld [vmem:[#allocation8 + $0x138] sm:$0xff] }
  0xb1   :  { %3951 = vmatpush1.bf16.msra.mxu1 %v5835_v21  ;;  %533 = vmatprep.mubr.f32.mxu0 %v6732_v0  ;;  %v5880_v51 = vpack.c.bf16 %v786_v44, %v782_v43  ;;  %v816_v43 = vld [vmem:[#allocation9 + $0x28] sm:$0xff]  ;;  %v5939_v44 = vpack.c.bf16 %v807_v35, %v803_v34  ;;  %v5971_v34 = vpack.c.bf16 %v823_v19, %v819_v17  ;;  %v837_v17 = vld [vmem:[#allocation9 + $0xd0] sm:$0xff] }
  0xb2   :  { %646 = vmatprep.mubr.f32.mxu1 %v6732_v0  ;;  %3921 = vmatprep.subr.bf16.mxu0 %v5839_v24 }
  0xb3   :  { %3953 = vmatprep.subr.bf16.mxu1 %v5844_v27  ;;  %3818 = vmatmul.mubr.msk.f32.gmra.mrb[20].mxu0 %vm206_vm0, %v5767_v57  ;;  %6825 = vst [vmem:[#allocation34_spill] sm:$0xff] %v5880_v51  ;;  %6838 = vst [vmem:[#allocation47_spill] sm:$0xff] %v5939_v44 }
  0xb4   :  { %3826 = vmatmul.mubr.msk.f32.gmra.mrb[20].mxu1 %vm206_vm0, %v5767_v57  ;;  %3923 = vmatpush1.bf16.msra.mxu0 %v5849_v30  ;;  %v790_v57 = vld [vmem:[#allocation8 + $0x158] sm:$0xff] }
  0xb5   :  { %3955 = vmatpush1.bf16.msra.mxu1 %v5853_v33  ;;  %539 = vmatprep.mubr.f32.mxu0 %v6732_v0  ;;  %v5898_v7 = vpack.c.bf16 %v794_v63, %v790_v57  ;;  %v817_v57 = vld [vmem:[#allocation9 + $0x30] sm:$0xff]  ;;  %v820_v63 = vld [vmem:[#allocation9 + $0x48] sm:$0xff] }
  0xb6   :  { %652 = vmatprep.mubr.f32.mxu1 %v6732_v0  ;;  %3925 = vmatprep.subr.bf16.mxu0 %v5857_v36  ;;  %v5961_v13 = vpack.c.bf16 %v817_v57, %v813_v54  ;;  %v5963_v14 = vpack.c.bf16 %v824_v2, %v820_v63  ;;  %v838_v54 = vld [vmem:[#allocation9 + $0xd8] sm:$0xff] }
  0xb7   :  { %3957 = vmatprep.subr.bf16.mxu1 %v5862_v39  ;;  %3819 = vmatmul.mubr.msk.f32.gmra.mrb[22].mxu0 %vm206_vm0, %v5777_v58  ;;  %6829 = vst [vmem:[#allocation38_spill] sm:$0xff] %v5898_v7  ;;  %v842_v57 = vld [vmem:[#allocation9 + $0xf8] sm:$0xff] }
  0xb8   :  { %3827 = vmatmul.mubr.msk.f32.gmra.mrb[22].mxu1 %vm206_vm0, %v5777_v58  ;;  %3927 = vmatpush1.bf16.msra.mxu0 %v5867_v42  ;;  %v789_v58 = vld [vmem:[#allocation8 + $0x150] sm:$0xff]  ;;  %v5994_v19 = vpack.c.bf16 %v842_v57, %v838_v54  ;;  %v852_v57 = vld [vmem:[#allocation9 + $0x148] sm:$0xff] }
  0xb9   :  { %3959 = vmatpush1.bf16.msra.mxu1 %v5871_v45  ;;  %545 = vmatprep.mubr.f32.mxu0 %v6732_v0  ;;  %v5907_v16 = vpack.c.bf16 %v793_v5, %v789_v58  ;;  %v822_v58 = vld [vmem:[#allocation9 + $0x58] sm:$0xff]  ;;  %v849_v54 = vld [vmem:[#allocation9 + $0x130] sm:$0xff] }
  0xba   :  { %658 = vmatprep.mubr.f32.mxu1 %v6732_v0  ;;  %3929 = vmatprep.subr.bf16.mxu0 %v5875_v48  ;;  %v826_v5 = vld [vmem:[#allocation9 + $0x78] sm:$0xff]  ;;  %6844 = vst [vmem:[#allocation53_spill] sm:$0xff] %v5994_v19 }
  0xbb   :  { %3961 = vmatprep.subr.bf16.mxu1 %v5880_v51  ;;  %3820 = vmatmul.mubr.msk.f32.gmra.mrb[24].mxu0 %vm206_vm0, %v5785_v59  ;;  %6831 = vst [vmem:[#allocation40_spill] sm:$0xff] %v5907_v16 }
  0xbc   :  { %3828 = vmatmul.mubr.msk.f32.gmra.mrb[24].mxu1 %vm206_vm0, %v5785_v59  ;;  %3931 = vmatpush1.bf16.msra.mxu0 %v5885_v55  ;;  %v797_v59 = vld [vmem:[#allocation8 + $0x190] sm:$0xff] }
  0xbd   :  { %3963 = vmatpush1.bf16.msra.mxu1 %v5889_v1  ;;  %551 = vmatprep.mubr.f32.mxu0 %v6732_v0  ;;  %v5925_v32 = vpack.c.bf16 %v801_v22, %v797_v59  ;;  %v821_v59 = vld [vmem:[#allocation9 + $0x50] sm:$0xff] }
  0xbe   :  { %664 = vmatprep.mubr.f32.mxu1 %v6732_v0  ;;  %3933 = vmatprep.subr.bf16.mxu0 %v5893_v4  ;;  %v825_v22 = vld [vmem:[#allocation9 + $0x70] sm:$0xff] }
  0xbf   :  { %3965 = vmatprep.subr.bf16.mxu1 %v5898_v7  ;;  %3821 = vmatmul.mubr.msk.f32.gmra.mrb[26].mxu0 %vm206_vm0, %v5793_v60  ;;  %6835 = vst [vmem:[#allocation44_spill] sm:$0xff] %v5925_v32  ;;  %v5975_v35 = vpack.c.bf16 %v825_v22, %v821_v59  ;;  %v841_v59 = vld [vmem:[#allocation9 + $0xf0] sm:$0xff]  ;;  %v844_v22 = vld [vmem:[#allocation9 + $0x108] sm:$0xff] }
  0xc0   :  { %3829 = vmatmul.mubr.msk.f32.gmra.mrb[26].mxu1 %vm206_vm0, %v5793_v60  ;;  %3935 = vmatpush1.bf16.msra.mxu0 %v5903_v11  ;;  %v805_v60 = vld [vmem:[#allocation8 + $0x1d0] sm:$0xff] }
  0xc1   :  { %3967 = vmatpush1.bf16.msra.mxu1 %v5907_v16  ;;  %557 = vmatprep.mubr.f32.mxu0 %v6732_v0  ;;  %v5943_v49 = vpack.c.bf16 %v809_v38, %v805_v60  ;;  %v5977_v60 = vpack.c.bf16 %v832_v26, %v828_v25  ;;  %v827_v38 = vld [vmem:[#allocation9 + $0x80] sm:$0xff]  ;;  %v848_v25 = vld [vmem:[#allocation9 + $0x128] sm:$0xff]  ;;  %v846_v26 = vld [vmem:[#allocation9 + $0x118] sm:$0xff] }
  0xc2   :  { %670 = vmatprep.mubr.f32.mxu1 %v6732_v0  ;;  %3937 = vmatprep.subr.bf16.mxu0 %v5911_v20 }
  0xc3   :  { %3969 = vmatprep.subr.bf16.mxu1 %v5916_v23  ;;  %3822 = vmatmul.mubr.msk.f32.gmra.mrb[28].mxu0 %vm206_vm0, %v5801_v61  ;;  %6839 = vst [vmem:[#allocation48_spill] sm:$0xff] %v5943_v49 }
  0xc4   :  { %3830 = vmatmul.mubr.msk.f32.gmra.mrb[28].mxu1 %vm206_vm0, %v5801_v61  ;;  %3939 = vmatpush1.bf16.msra.mxu0 %v5921_v28  ;;  %v5947_v61 = vpack.c.bf16 %v816_v43, %v812_v41  ;;  %v831_v41 = vld [vmem:[#allocation9 + $0xa0] sm:$0xff]  ;;  %v829_v43 = vld [vmem:[#allocation9 + $0x90] sm:$0xff] }
  0xc5   :  { %3971 = vmatpush1.bf16.msra.mxu1 %v5925_v32  ;;  %563 = vmatprep.mubr.f32.mxu0 %v6732_v0  ;;  %v5985_v63 = vpack.c.bf16 %v831_v41, %v827_v38  ;;  %v5989_v2 = vpack.c.bf16 %v833_v47, %v829_v43  ;;  %v6001_v38 = vpack.c.bf16 %v841_v59, %v837_v17  ;;  %v843_v43 = vld [vmem:[#allocation9 + $0x100] sm:$0xff] }
  0xc6   :  { %676 = vmatprep.mubr.f32.mxu1 %v6732_v0  ;;  %3941 = vmatprep.subr.bf16.mxu0 %v5929_v37  ;;  %6840 = vst [vmem:[#allocation49_spill] sm:$0xff] %v5947_v61  ;;  %v6003_v41 = vpack.c.bf16 %v848_v25, %v844_v22  ;;  %v847_v47 = vld [vmem:[#allocation9 + $0x120] sm:$0xff] }
  0xc7   :  { %3973 = vmatprep.subr.bf16.mxu1 %v5934_v40  ;;  %3823 = vmatmul.mubr.msk.f32.gmra.mrb[30].mxu0 %vm206_vm0, %v5809_v62  ;;  %6842 = vst [vmem:[#allocation51_spill] sm:$0xff] %v5989_v2  ;;  %6846 = vst [vmem:[#allocation55_spill] sm:$0xff] %v6001_v38  ;;  %v851_v22 = vld [vmem:[#allocation9 + $0x140] sm:$0xff] }
  0xc8   :  { %3831 = vmatmul.mubr.msk.f32.gmra.mrb[30].mxu1 %vm206_vm0, %v5809_v62  ;;  %3943 = vmatpush1.bf16.msra.mxu0 %v5939_v44  ;;  %v5967_v62 = vpack.c.bf16 %v826_v5, %v822_v58  ;;  %v5991_v58 = vpack.c.bf16 %v840_v52, %v836_v50  ;;  %v835_v5 = vld [vmem:[#allocation9 + $0xc0] sm:$0xff]  ;;  %6847 = vst [vmem:[#allocation56_spill] sm:$0xff] %v6003_v41  ;;  %v845_v50 = vld [vmem:[#allocation9 + $0x110] sm:$0xff] }
  0xc9   :  { %3975 = vmatpush1.bf16.msra.mxu1 %v5943_v49  ;;  %959 = vmatprep.mubr.f32.mxu0 %v6732_v0  ;;  %v6006_v52 = vpack.c.bf16 %v850_v29, %v846_v26  ;;  %v6013_v17 = vpack.c.bf16 %v849_v54, %v845_v50  ;;  %v855_v25 = vld [vmem:[#allocation9 + $0x160] sm:$0xff]  ;;  %v853_v26 = vld [vmem:[#allocation9 + $0x150] sm:$0xff] }
  0xca   :  { %1030 = vmatprep.mubr.f32.mxu1 %v6732_v0  ;;  %3977 = vmatprep.subr.bf16.mxu0 %v5947_v61  ;;  %6843 = vst [vmem:[#allocation52_spill] sm:$0xff] %v5991_v58  ;;  %v859_v54 = vld [vmem:[#allocation9 + $0x180] sm:$0xff] }
  0xcb   :  { %4009 = vmatprep.subr.bf16.mxu1 %v5952_v3  ;;  %960 = vmatmul.mubr.f32.vlgmr.msra.gmra.mrb[0].mxu0 %v875_v8  ;;  %6848 = vst [vmem:[#allocation57_spill] sm:$0xff] %v6006_v52  ;;  %6850 = vst [vmem:[#allocation59_spill] sm:$0xff] %v6013_v17 }
  0xcc   :  { %1031 = vmatmul.mubr.f32.vlgmr.msra.gmra.mrb[0].mxu1 %v875_v8  ;;  %3979 = vmatpush1.bf16.msra.mxu0 %v5957_v10  ;;  %v839_v8 = vld [vmem:[#allocation9 + $0xe0] sm:$0xff] }
  0xcd   :  { %4011 = vmatpush1.bf16.msra.mxu1 %v5961_v13  ;;  %3981 = vmatprep.subr.bf16.mxu0 %v5963_v14  ;;  %v5997_v31 = vpack.c.bf16 %v839_v8, %v835_v5  ;;  %v854_v5 = vld [vmem:[#allocation9 + $0x158] sm:$0xff] }
  0xce   :  { %4013 = vmatprep.subr.bf16.mxu1 %v5967_v62  ;;  %1129 = vmatprep.mubr.f32.mxu0 %v6732_v0  ;;  %v858_v8 = vld [vmem:[#allocation9 + $0x178] sm:$0xff] }
  0xcf   :  { %1200 = vmatprep.mubr.f32.mxu1 %v6732_v0  ;;  %6845 = vst [vmem:[#allocation54_spill] sm:$0xff] %v5997_v31  ;;  %v856_v0 = vld [vmem:[#allocation9 + $0x168] sm:$0xff]  ;;  %v6018_v29 = vpack.c.bf16 %v858_v8, %v854_v5  ;;  %v861_v5 = vld [vmem:[#allocation9 + $0x190] sm:$0xff] }
  0xd0   :  { %3983 = vmatpush1.bf16.msra.mxu0 %v5971_v34  ;;  %v6015_v59 = vpack.c.bf16 %v856_v0, %v852_v57  ;;  %v863_v57 = vld [vmem:[#allocation9 + $0x1a0] sm:$0xff] }
  0xd1   :  { %4015 = vmatpush1.bf16.msra.mxu1 %v5975_v35  ;;  %3985 = vmatprep.subr.bf16.mxu0 %v5977_v60  ;;  %6851 = vst [vmem:[#allocation60_spill] sm:$0xff] %v6018_v29 }
  0xd2   :  { %4017 = vmatprep.subr.bf16.mxu1 %v5980_v46 }
  0xd4   :  { %3987 = vmatpush1.bf16.msra.mxu0 %v5985_v63 }
  0xd5   :  { %4019 = vmatpush1.bf16.msra.mxu1 %v5989_v2  ;;  %3989 = vmatprep.subr.bf16.mxu0 %v5991_v58  ;;  %v6009_v2 = vpack.c.bf16 %v847_v47, %v843_v43  ;;  %v860_v58 = vld [vmem:[#allocation9 + $0x188] sm:$0xff]  ;;  %v862_v43 = vld [vmem:[#allocation9 + $0x198] sm:$0xff] }
  0xd6   :  { %4021 = vmatprep.subr.bf16.mxu1 %v5994_v19  ;;  %v857_v19 = vld [vmem:[#allocation9 + $0x170] sm:$0xff]  ;;  %v866_v47 = vld [vmem:[#allocation9 + $0x1b8] sm:$0xff] }
  0xd7   :  { %6849 = vst [vmem:[#allocation58_spill] sm:$0xff] %v6009_v2  ;;  %v6025_v0 = vpack.c.bf16 %v857_v19, %v853_v26  ;;  %v6030_v8 = vpack.c.bf16 %v866_v47, %v862_v43  ;;  %v871_v26 = vld [vmem:[#allocation9 + $0x1e0] sm:$0xff]  ;;  %v869_v47 = vld [vmem:[#allocation9 + $0x1d0] sm:$0xff] }
  0xd8   :  { %3991 = vmatpush1.bf16.msra.mxu0 %v5997_v31  ;;  %v864_v31 = vld [vmem:[#allocation9 + $0x1a8] sm:$0xff] }
  0xd9   :  { %4023 = vmatpush1.bf16.msra.mxu1 %v6001_v38  ;;  %3993 = vmatprep.subr.bf16.mxu0 %v6003_v41  ;;  %v6021_v38 = vpack.c.bf16 %v855_v25, %v851_v22  ;;  %v6027_v50 = vpack.c.bf16 %v864_v31, %v860_v58  ;;  %v868_v41 = vld [vmem:[#allocation9 + $0x1c8] sm:$0xff]  ;;  %v870_v22 = vld [vmem:[#allocation9 + $0x1d8] sm:$0xff]  ;;  %v867_v31 = vld [vmem:[#allocation9 + $0x1c0] sm:$0xff] }
  0xda   :  { %4025 = vmatprep.subr.bf16.mxu1 %v6006_v52  ;;  %v865_v52 = vld [vmem:[#allocation9 + $0x1b0] sm:$0xff]  ;;  %v874_v25 = vld [vmem:[#allocation9 + $0x1f8] sm:$0xff] }
  0xdb   :  { %v6037_v58 = vpack.c.bf16 %v865_v52, %v861_v5  ;;  %v6042_v43 = vpack.c.bf16 %v874_v25, %v870_v22  ;;  %v164_v22 = vld [vmem:[#allocation11] sm:$0xff] }
  0xdc   :  { %3995 = vmatpush1.bf16.msra.mxu0 %v6009_v2  ;;  %v872_v2 = vld [vmem:[#allocation9 + $0x1e8] sm:$0xff] }
  0xdd   :  { %4027 = vmatpush1.bf16.msra.mxu1 %v6013_v17  ;;  %3997 = vmatprep.subr.bf16.mxu0 %v6015_v59  ;;  %v6033_v17 = vpack.c.bf16 %v863_v57, %v859_v54  ;;  %v6039_v19 = vpack.c.bf16 %v872_v2, %v868_v41  ;;  %v6045_v54 = vpack.c.bf16 %v871_v26, %v867_v31  ;;  %v878_v2 = vld [vmem:[#allocation12 + $0x8] sm:$0xff]  ;;  %v6852_v41 = vmov 0.0  }
  0xde   :  { %4029 = vmatprep.subr.bf16.mxu1 %v6018_v29  ;;  %v873_v29 = vld [vmem:[#allocation9 + $0x1f0] sm:$0xff] }
  0xdf   :  { %v6049_v52 = vpack.c.bf16 %v873_v29, %v869_v47  ;;  %v166_v29 = vlaneseq }
  0xe0   :  { %3999 = vmatpush1.bf16.msra.mxu0 %v6021_v38 }
  0xe1   :  { %4031 = vmatpush1.bf16.msra.mxu1 %v6025_v0  ;;  %4001 = vmatprep.subr.bf16.mxu0 %v6027_v50  ;;  %v167_v57 = vshrl.u32 %v166_v29, 7 }
  0xe2   :  { %4033 = vmatprep.subr.bf16.mxu1 %v6030_v8 }
  0xe3   :  { %v168_v5 = vsub.s32 0, %v167_v57  ;;  %v172_v25 = vsub.s32 1, %v167_v57 }
  0xe4   :  { %4003 = vmatpush1.bf16.msra.mxu0 %v6033_v17 }
  0xe5   :  { %4035 = vmatpush1.bf16.msra.mxu1 %v6037_v58  ;;  %4005 = vmatprep.subr.bf16.mxu0 %v6039_v19  ;;  %v6090_v31 = vrot.slane %v164_v22, %v168_v5  ;;  %v6092_v26 = vrot.slane %v164_v22, %v172_v25 }
  0xe6   :  { %4037 = vmatprep.subr.bf16.mxu1 %v6042_v43 }
  0xe7   :  { %6853 = vst [vmem:[#allocation61_spill] sm:$0xff] %v6090_v31  ;;  %6854 = vst [vmem:[#allocation62_spill] sm:$0xff] %v6092_v26 }
  0xe8   :  { %4007 = vmatpush1.bf16.msra.mxu0 %v6045_v54 }
  0xe9   :  { %4039 = vmatpush1.bf16.msra.mxu1 %v6049_v52  ;;  %4041 = vmatprep.subr.bf16.mxu0 %v5758_v53 }
  0xea   :  { %4073 = vmatprep.subr.bf16.mxu1 %v5762_v56 }
  0xeb   :  { %1130 = vmatmul.mubr.f32.vlgmr.msra.gmra.mrb[30].mxu0 %v878_v2 }
  0xec   :  { %1201 = vmatmul.mubr.f32.vlgmr.msra.gmra.mrb[30].mxu1 %v878_v2  ;;  %4043 = vmatpush1.bf16.msra.mxu0 %v5817_v6  ;;  %v176_v2 = vsub.s32 2, %v167_v57 }
  0xed   :  { %4075 = vmatpush1.bf16.msra.mxu1 %v5820_v9  ;;  %4045 = vmatprep.subr.bf16.mxu0 %v5822_v12 }
  0xee   :  { %4077 = vmatprep.subr.bf16.mxu1 %v5826_v15  ;;  %1321 = vmatprep.mubr.f32.mxu0 %v6852_v41 }
  0xef   :  { %1392 = vmatprep.mubr.f32.mxu1 %v6852_v41 }
  0xf0   :  { %4047 = vmatpush1.bf16.msra.mxu0 %v5831_v18 }
  0xf1   :  { %4079 = vmatpush1.bf16.msra.mxu1 %v5835_v21  ;;  %4049 = vmatprep.subr.bf16.mxu0 %v5839_v24 }
  0xf2   :  { %4081 = vmatprep.subr.bf16.mxu1 %v5844_v27 }
  0xf4   :  { %4051 = vmatpush1.bf16.msra.mxu0 %v5849_v30 }
  0xf5   :  { %4083 = vmatpush1.bf16.msra.mxu1 %v5853_v33  ;;  %4053 = vmatprep.subr.bf16.mxu0 %v5857_v36 }
  0xf6   :  { %4085 = vmatprep.subr.bf16.mxu1 %v5862_v39 }
  0xf8   :  { %4055 = vmatpush1.bf16.msra.mxu0 %v5867_v42 }
  0xf9   :  { %4087 = vmatpush1.bf16.msra.mxu1 %v5871_v45  ;;  %4057 = vmatprep.subr.bf16.mxu0 %v5875_v48 }
  0xfa   :  { %4089 = vmatprep.subr.bf16.mxu1 %v5880_v51 }
  0xfc   :  { %4059 = vmatpush1.bf16.msra.mxu0 %v5885_v55 }
  0xfd   :  { %4091 = vmatpush1.bf16.msra.mxu1 %v5889_v1  ;;  %4061 = vmatprep.subr.bf16.mxu0 %v5893_v4 }
  0xfe   :  { %4093 = vmatprep.subr.bf16.mxu1 %v5898_v7 }
 0x100   :  { %4063 = vmatpush1.bf16.msra.mxu0 %v5903_v11 }
 0x101   :  { %4095 = vmatpush1.bf16.msra.mxu1 %v5907_v16  ;;  %4065 = vmatprep.subr.bf16.mxu0 %v5911_v20 }
 0x102   :  { %4097 = vmatprep.subr.bf16.mxu1 %v5916_v23 }
 0x104   :  { %4067 = vmatpush1.bf16.msra.mxu0 %v5921_v28  ;;  %v180_v28 = vsub.s32 3, %v167_v57 }
 0x105   :  { %4099 = vmatpush1.bf16.msra.mxu1 %v5925_v32  ;;  %4069 = vmatprep.subr.bf16.mxu0 %v5929_v37 }
 0x106   :  { %4101 = vmatprep.subr.bf16.mxu1 %v5934_v40  ;;  %v6099_v25 = vrot.slane %v164_v22, %v180_v28 }
 0x108   :  { %4071 = vmatpush1.bf16.msra.mxu0 %v5939_v44  ;;  %6856 = vst [vmem:[#allocation64_spill] sm:$0xff] %v6099_v25 }
 0x109   :  { %4103 = vmatpush1.bf16.msra.mxu1 %v5943_v49  ;;  %4105 = vmatprep.subr.bf16.mxu0 %v5947_v61 }
 0x10a   :  { %4137 = vmatprep.subr.bf16.mxu1 %v5952_v3  ;;  %v6096_v3 = vrot.slane %v164_v22, %v176_v2 }
 0x10c   :  { %6855 = vst [vmem:[#allocation63_spill] sm:$0xff] %v6096_v3 }
 0x19e   :  { %v961_v47 = vpop.f32.mrb[0].mxu0 }
 0x19f   :  { %v4936_v40 = vadd.f32 %v961_v47, %v6090_v31  ;;  %v1032_v44 = vpop.f32.mrb[0].mxu1  ;;  %v963_v37 = vpop.f32.mrb[1].mxu0 }
 0x1a0   :  { %v4937_v49 = vadd.f32 %v963_v37, %v6092_v26  ;;  %v1034_v61 = vpop.f32.mrb[1].mxu1  ;;  %v4952_v5 = vadd.f32 %v1032_v44, %v6096_v3  ;;  %v876_v26 = vld [vmem:[#allocation14] sm:$0xff] }
 0x1a1   :  { %v3832_v32 = vmul.f32 -1.442695, %v4936_v40  ;;  %v4953_v20 = vadd.f32 %v1034_v61, %v6099_v25  ;;  %v184_v40 = vsub.s32 4, %v167_v57  ;;  %v192_v25 = vsub.s32 6, %v167_v57 }
 0x1a2   :  { %v3833_v29 = vmul.f32 -1.442695, %v4937_v49  ;;  %v3834_v23 = vmul.f32 -1.442695, %v4952_v5 }
 0x1a3   :  { %5083 = vpow2.f32 %v3832_v32  ;;  %v188_v32 = vsub.s32 5, %v167_v57  ;;  %v6102_v28 = vrot.slane %v164_v22, %v184_v40 }
 0x1a4   :  { %5085 = vpow2.f32 %v3833_v29 }
 0x1a5   :  { %5087 = vpow2.f32 %v3834_v23  ;;  %v6104_v61 = vrot.slane %v164_v22, %v188_v32 }
 0x1a6   :  { %5089 = vtanh.f32 %v4953_v20 }
 0x1a7   :  { %6857 = vst [vmem:[#allocation65_spill] sm:$0xff] %v6104_v61 }
 0x1ad   :  { %v5084_v47 = vpop.eup %5083 }
 0x1ae   :  { %v1050_v31 = vadd.f32 1.0, %v5084_v47  ;;  %v5086_v16 = vpop.eup %5085 }
 0x1af   :  { %v1051_v37 = vadd.f32 1.0, %v5086_v16  ;;  %v5088_v49 = vpop.eup %5087 }
 0x1b0   :  { %5091 = vrcp.f32 %v1050_v31  ;;  %v5090_v2 = vpop.eup %5089  ;;  %v1052_v3 = vadd.f32 1.0, %v5088_v49 }
 0x1b1   :  { %5093 = vrcp.f32 %v1051_v37 }
 0x1b2   :  { %5095 = vrcp.f32 %v1052_v3 }
 0x1ba   :  { %v5092_v29 = vpop.eup %5091 }
 0x1bb   :  { %v1061_v44 = vmul.f32 %v5092_v29, %v5090_v2  ;;  %v5094_v5 = vpop.eup %5093  ;;  %v6111_v2 = vrot.slane %v164_v22, %v192_v25  ;;  %v6859_v25 = vld [vmem:[#allocation52_spill] sm:$0xff] }
 0x1bc   :  { %v1060_v47 = vmul.f32 %v5094_v5, %v876_v26  ;;  %v196_v26 = vsub.s32 7, %v167_v57 }
 0x1be   :  { %v1131_v23 = vpop.f32.mrb[30].mxu0  ;;  %v6106_v20 = vadd.f32 %v1061_v44, %v1060_v47  ;;  %v6114_v29 = vrot.slane %v164_v22, %v196_v26  ;;  %v5096_v44 = vpop.eup %5095  ;;  %v6861_v26 = vld [vmem:[#allocation54_spill] sm:$0xff] }
 0x1bf   :  { %v4982_v16 = vadd.f32 %v1131_v23, %v6102_v28  ;;  %v1202_v31 = vpop.f32.mrb[30].mxu1  ;;  %v1133_v37 = vpop.f32.mrb[31].mxu0 }
 0x1c0   :  { %v4983_v11 = vadd.f32 %v1133_v37, %v6104_v61  ;;  %v1204_v7 = vpop.f32.mrb[31].mxu1  ;;  %5097 = vtanh.f32 %v6106_v20  ;;  %v4998_v32 = vadd.f32 %v1202_v31, %v6111_v2 }
 0x1c1   :  { %v3835_v40 = vmul.f32 -1.442695, %v4982_v16  ;;  %v4999_v3 = vadd.f32 %v1204_v7, %v6114_v29  ;;  %v6858_v7 = vld [vmem:[#allocation51_spill] sm:$0xff] }
 0x1c2   :  { %v3836_v49 = vmul.f32 -1.442695, %v4983_v11  ;;  %v3837_v5 = vmul.f32 -1.442695, %v4998_v32  ;;  %v6862_v32 = vld [vmem:[#allocation55_spill] sm:$0xff] }
 0x1c3   :  { %5099 = vpow2.f32 %v3835_v40  ;;  %v880_v40 = vld [vmem:[#allocation14 + $0x8] sm:$0xff] }
 0x1c4   :  { %5101 = vpow2.f32 %v3836_v49 }
 0x1c5   :  { %5103 = vpow2.f32 %v3837_v5 }
 0x1c6   :  { %5105 = vtanh.f32 %v4999_v3  ;;  %v6864_v3 = vld [vmem:[#allocation57_spill] sm:$0xff] }
 0x1ca   :  { %v5098_v47 = vpop.eup %5097 }
 0x1cb   :  { %v1064_v23 = vmul.f32 %v5098_v47, %v5096_v44  ;;  %v6863_v47 = vld [vmem:[#allocation56_spill] sm:$0xff] }
 0x1cd   :  { %v5100_v37 = vpop.eup %5099  ;;  %1238 = vst [vmem:[#allocation15] sm:$0xff] %v1064_v23  ;;  %1322 = vmatmul.mubr.f32.vlgmr.msra.gmra.mrb[2].mxu0 %v1064_v23  ;;  %1393 = vmatmul.mubr.f32.vlgmr.msra.gmra.mrb[2].mxu1 %v1064_v23 }
 0x1ce   :  { %v1220_v61 = vadd.f32 1.0, %v5100_v37  ;;  %v5102_v11 = vpop.eup %5101  ;;  %4107 = vmatpush1.bf16.msra.mxu0 %v5957_v10  ;;  %4139 = vmatpush1.bf16.msra.mxu1 %v5961_v13 }
 0x1cf   :  { %v1221_v57 = vadd.f32 1.0, %v5102_v11  ;;  %4109 = vmatprep.subr.bf16.mxu0 %v5963_v14  ;;  %4141 = vmatprep.subr.bf16.mxu1 %v5967_v62  ;;  %v5104_v22 = vpop.eup %5103  ;;  %v6865_v11 = vld [vmem:[#allocation58_spill] sm:$0xff] }
 0x1d0   :  { %5107 = vrcp.f32 %v1220_v61  ;;  %1491 = vmatprep.mubr.f32.mxu0 %v6852_v41  ;;  %1562 = vmatprep.mubr.f32.mxu1 %v6852_v41  ;;  %v6860_v61 = vld [vmem:[#allocation53_spill] sm:$0xff]  ;;  %v5106_v16 = vpop.eup %5105  ;;  %v1222_v5 = vadd.f32 1.0, %v5104_v22 }
 0x1d1   :  { %5109 = vrcp.f32 %v1221_v57  ;;  %v6866_v57 = vld [vmem:[#allocation59_spill] sm:$0xff] }
 0x1d2   :  { %4111 = vmatpush1.bf16.msra.mxu0 %v5971_v34  ;;  %4143 = vmatpush1.bf16.msra.mxu1 %v5975_v35  ;;  %5111 = vrcp.f32 %v1222_v5  ;;  %v6870_v5 = vld [vmem:[#allocation40_spill] sm:$0xff] }
 0x1d3   :  { %4113 = vmatprep.subr.bf16.mxu0 %v5977_v60  ;;  %4145 = vmatprep.subr.bf16.mxu1 %v5980_v46 }
 0x1d6   :  { %4115 = vmatpush1.bf16.msra.mxu0 %v5985_v63  ;;  %4147 = vmatpush1.bf16.msra.mxu1 %v6858_v7 }
 0x1d7   :  { %4117 = vmatprep.subr.bf16.mxu0 %v6859_v25  ;;  %4149 = vmatprep.subr.bf16.mxu1 %v6860_v61 }
 0x1da   :  { %v5108_v31 = vpop.eup %5107  ;;  %4119 = vmatpush1.bf16.msra.mxu0 %v6861_v26  ;;  %4151 = vmatpush1.bf16.msra.mxu1 %v6862_v32 }
 0x1db   :  { %v1231_v49 = vmul.f32 %v5108_v31, %v5106_v16  ;;  %v5110_v44 = vpop.eup %5109  ;;  %4121 = vmatprep.subr.bf16.mxu0 %v6863_v47  ;;  %4153 = vmatprep.subr.bf16.mxu1 %v6864_v3  ;;  %v6867_v16 = vld [vmem:[#allocation60_spill] sm:$0xff] }
 0x1dc   :  { %v1230_v23 = vmul.f32 %v5110_v44, %v880_v40  ;;  %v5112_v22 = vpop.eup %5111  ;;  %v6869_v44 = vld [vmem:[#allocation39_spill] sm:$0xff] }
 0x1de   :  { %v6135_v37 = vadd.f32 %v1231_v49, %v1230_v23  ;;  %4123 = vmatpush1.bf16.msra.mxu0 %v6865_v11  ;;  %4155 = vmatpush1.bf16.msra.mxu1 %v6866_v57  ;;  %v6868_v49 = vld [vmem:[#allocation38_spill] sm:$0xff]  ;;  %v6871_v23 = vld [vmem:[#allocation41_spill] sm:$0xff] }
 0x1df   :  { %4125 = vmatprep.subr.bf16.mxu0 %v6015_v59  ;;  %4157 = vmatprep.subr.bf16.mxu1 %v6867_v16 }
 0x1e0   :  { %5113 = vtanh.f32 %v6135_v37 }
 0x1e2   :  { %4127 = vmatpush1.bf16.msra.mxu0 %v6021_v38  ;;  %4159 = vmatpush1.bf16.msra.mxu1 %v6025_v0 }
 0x1e3   :  { %4129 = vmatprep.subr.bf16.mxu0 %v6027_v50  ;;  %4161 = vmatprep.subr.bf16.mxu1 %v6030_v8 }
 0x1e6   :  { %4131 = vmatpush1.bf16.msra.mxu0 %v6033_v17  ;;  %4163 = vmatpush1.bf16.msra.mxu1 %v6037_v58 }
 0x1e7   :  { %4133 = vmatprep.subr.bf16.mxu0 %v6039_v19  ;;  %4165 = vmatprep.subr.bf16.mxu1 %v6042_v43 }
 0x1ea   :  { %v5114_v31 = vpop.eup %5113  ;;  %4135 = vmatpush1.bf16.msra.mxu0 %v6045_v54  ;;  %4167 = vmatpush1.bf16.msra.mxu1 %v6049_v52 }
 0x1eb   :  { %v1234_v40 = vmul.f32 %v5114_v31, %v5112_v22  ;;  %4169 = vmatprep.subr.bf16.mxu0 %v5758_v53  ;;  %4201 = vmatprep.subr.bf16.mxu1 %v5762_v56  ;;  %v6872_v22 = vld [vmem:[#allocation42_spill] sm:$0xff]  ;;  %v6873_v31 = vld [vmem:[#allocation43_spill] sm:$0xff] }
 0x1ed   :  { %1242 = vst [vmem:[#allocation15 + $0x78] sm:$0xff] %v1234_v40  ;;  %1492 = vmatmul.mubr.f32.vlgmr.msra.gmra.mrb[28].mxu0 %v1234_v40  ;;  %1563 = vmatmul.mubr.f32.vlgmr.msra.gmra.mrb[28].mxu1 %v1234_v40  ;;  %v6874_v40 = vld [vmem:[#allocation44_spill] sm:$0xff] }
 0x1ee   :  { %4171 = vmatpush1.bf16.msra.mxu0 %v5817_v6  ;;  %4203 = vmatpush1.bf16.msra.mxu1 %v5820_v9 }
 0x1ef   :  { %4173 = vmatprep.subr.bf16.mxu0 %v5822_v12  ;;  %4205 = vmatprep.subr.bf16.mxu1 %v5826_v15 }
 0x1f0   :  { %1683 = vmatprep.mubr.f32.mxu0 %v6852_v41  ;;  %1754 = vmatprep.mubr.f32.mxu1 %v6852_v41 }
 0x1f2   :  { %4175 = vmatpush1.bf16.msra.mxu0 %v5831_v18  ;;  %4207 = vmatpush1.bf16.msra.mxu1 %v5835_v21 }
 0x1f3   :  { %4177 = vmatprep.subr.bf16.mxu0 %v5839_v24  ;;  %4209 = vmatprep.subr.bf16.mxu1 %v5844_v27 }
 0x1f6   :  { %4179 = vmatpush1.bf16.msra.mxu0 %v5849_v30  ;;  %4211 = vmatpush1.bf16.msra.mxu1 %v5853_v33 }
 0x1f7   :  { %4181 = vmatprep.subr.bf16.mxu0 %v5857_v36  ;;  %4213 = vmatprep.subr.bf16.mxu1 %v5862_v39  ;;  %v6884_v36 = vld [vmem:[#allocation64_spill] sm:$0xff] }
 0x1fa   :  { %4183 = vmatpush1.bf16.msra.mxu0 %v5867_v42  ;;  %4215 = vmatpush1.bf16.msra.mxu1 %v5871_v45  ;;  %v6882_v42 = vld [vmem:[#allocation62_spill] sm:$0xff] }
 0x1fb   :  { %4185 = vmatprep.subr.bf16.mxu0 %v5875_v48  ;;  %4217 = vmatprep.subr.bf16.mxu1 %v5880_v51  ;;  %v6875_v51 = vld [vmem:[#allocation45_spill] sm:$0xff] }
 0x1fc   :  { %v6881_v48 = vld [vmem:[#allocation61_spill] sm:$0xff] }
 0x1fe   :  { %4187 = vmatpush1.bf16.msra.mxu0 %v5885_v55  ;;  %4219 = vmatpush1.bf16.msra.mxu1 %v5889_v1  ;;  %v6876_v55 = vld [vmem:[#allocation46_spill] sm:$0xff]  ;;  %v6877_v1 = vld [vmem:[#allocation47_spill] sm:$0xff] }
 0x1ff   :  { %4189 = vmatprep.subr.bf16.mxu0 %v5893_v4  ;;  %4221 = vmatprep.subr.bf16.mxu1 %v6868_v49  ;;  %v6878_v4 = vld [vmem:[#allocation48_spill] sm:$0xff]  ;;  %v6879_v49 = vld [vmem:[#allocation49_spill] sm:$0xff] }
 0x202   :  { %4191 = vmatpush1.bf16.msra.mxu0 %v6869_v44  ;;  %4223 = vmatpush1.bf16.msra.mxu1 %v6870_v5  ;;  %v6880_v44 = vld [vmem:[#allocation50_spill] sm:$0xff] }
 0x203   :  { %4193 = vmatprep.subr.bf16.mxu0 %v6871_v23  ;;  %4225 = vmatprep.subr.bf16.mxu1 %v6872_v22 }
 0x206   :  { %4195 = vmatpush1.bf16.msra.mxu0 %v6873_v31  ;;  %4227 = vmatpush1.bf16.msra.mxu1 %v6874_v40 }
 0x207   :  { %4197 = vmatprep.subr.bf16.mxu0 %v6875_v51  ;;  %4229 = vmatprep.subr.bf16.mxu1 %v6876_v55  ;;  %v6883_v55 = vld [vmem:[#allocation63_spill] sm:$0xff] }
 0x20a   :  { %4199 = vmatpush1.bf16.msra.mxu0 %v6877_v1  ;;  %4231 = vmatpush1.bf16.msra.mxu1 %v6878_v4 }
 0x20b   :  { %4233 = vmatprep.subr.bf16.mxu0 %v6879_v49  ;;  %4265 = vmatprep.subr.bf16.mxu1 %v6880_v44 }
 0x2a0   :  { %v1323_v5 = vpop.f32.mrb[2].mxu0  ;;  %v1394_v23 = vpop.f32.mrb[2].mxu1 }
 0x2a1   :  { %v4938_v22 = vadd.f32 %v1323_v5, %v6881_v48  ;;  %v1325_v45 = vpop.f32.mrb[3].mxu0  ;;  %v1396_v31 = vpop.f32.mrb[3].mxu1  ;;  %v4954_v1 = vadd.f32 %v1394_v23, %v6883_v55 }
 0x2a2   :  { %v4939_v40 = vadd.f32 %v1325_v45, %v6882_v42  ;;  %v4955_v4 = vadd.f32 %v1396_v31, %v6884_v36 }
 0x2a3   :  { %v3838_v39 = vmul.f32 -1.442695, %v4938_v22  ;;  %v3840_v33 = vmul.f32 -1.442695, %v4954_v1 }
 0x2a4   :  { %v3839_v51 = vmul.f32 -1.442695, %v4939_v40 }
 0x2a5   :  { %5115 = vpow2.f32 %v3838_v39 }
 0x2a6   :  { %5117 = vpow2.f32 %v3839_v51 }
 0x2a7   :  { %5119 = vtanh.f32 %v4955_v4 }
 0x2a8   :  { %5121 = vpow2.f32 %v3840_v33 }
 0x2af   :  { %v5116_v49 = vpop.eup %5115 }
 0x2b0   :  { %v1412_v30 = vadd.f32 1.0, %v5116_v49  ;;  %v5118_v44 = vpop.eup %5117 }
 0x2b1   :  { %v1413_v5 = vadd.f32 1.0, %v5118_v44  ;;  %v5120_v48 = vpop.eup %5119 }
 0x2b2   :  { %5123 = vrcp.f32 %v1412_v30  ;;  %v5122_v27 = vpop.eup %5121  ;;  %v6885_v30 = vld [vmem:[#allocation65_spill] sm:$0xff] }
 0x2b3   :  { %5125 = vrcp.f32 %v1413_v5  ;;  %v1414_v39 = vadd.f32 1.0, %v5122_v27 }
 0x2b5   :  { %5127 = vrcp.f32 %v1414_v39 }
 0x2bc   :  { %v5124_v45 = vpop.eup %5123 }
 0x2bd   :  { %v1423_v22 = vmul.f32 %v5124_v45, %v5120_v48  ;;  %v5126_v40 = vpop.eup %5125 }
 0x2be   :  { %v1422_v51 = vmul.f32 %v5126_v40, %v6106_v20 }
 0x2bf   :  { %v5128_v48 = vpop.eup %5127 }
 0x2c0   :  { %v1493_v23 = vpop.f32.mrb[28].mxu0  ;;  %v1564_v55 = vpop.f32.mrb[28].mxu1  ;;  %v6193_v31 = vadd.f32 %v1423_v22, %v1422_v51 }
 0x2c1   :  { %v4980_v1 = vadd.f32 %v1493_v23, %v6102_v28  ;;  %v1495_v4 = vpop.f32.mrb[29].mxu0  ;;  %v1566_v49 = vpop.f32.mrb[29].mxu1  ;;  %v4996_v27 = vadd.f32 %v1564_v55, %v6111_v2 }
 0x2c2   :  { %v4981_v33 = vadd.f32 %v1495_v4, %v6885_v30  ;;  %5129 = vtanh.f32 %v6193_v31  ;;  %v4997_v20 = vadd.f32 %v1566_v49, %v6114_v29 }
 0x2c3   :  { %v3841_v44 = vmul.f32 -1.442695, %v4980_v1  ;;  %v3843_v22 = vmul.f32 -1.442695, %v4996_v27 }
 0x2c4   :  { %v3842_v5 = vmul.f32 -1.442695, %v4981_v33 }
 0x2c5   :  { %5131 = vpow2.f32 %v3841_v44 }
 0x2c6   :  { %5133 = vpow2.f32 %v3842_v5 }
 0x2c7   :  { %5135 = vtanh.f32 %v4997_v20 }
 0x2c8   :  { %5137 = vpow2.f32 %v3843_v22  ;;  %v6886_v22 = vld [vmem:[#allocation26_spill] sm:$0xff] }
 0x2cc   :  { %v5130_v45 = vpop.eup %5129 }
 0x2cd   :  { %v1426_v40 = vmul.f32 %v5130_v45, %v5128_v48 }
 0x2cf   :  { %v5132_v51 = vpop.eup %5131  ;;  %1600 = vst [vmem:[#allocation15 + $0x10] sm:$0xff] %v1426_v40  ;;  %1684 = vmatmul.mubr.f32.vlgmr.msra.gmra.mrb[4].mxu0 %v1426_v40  ;;  %1755 = vmatmul.mubr.f32.vlgmr.msra.gmra.mrb[4].mxu1 %v1426_v40  ;;  %v6887_v40 = vld [vmem:[#allocation27_spill] sm:$0xff] }
 0x2d0   :  { %v1582_v23 = vadd.f32 1.0, %v5132_v51  ;;  %v5134_v39 = vpop.eup %5133  ;;  %4235 = vmatpush1.bf16.msra.mxu0 %v5957_v10  ;;  %4267 = vmatpush1.bf16.msra.mxu1 %v5961_v13  ;;  %v6888_v51 = vld [vmem:[#allocation28_spill] sm:$0xff] }
 0x2d1   :  { %v1583_v55 = vadd.f32 1.0, %v5134_v39  ;;  %4237 = vmatprep.subr.bf16.mxu0 %v5963_v14  ;;  %4269 = vmatprep.subr.bf16.mxu1 %v5967_v62  ;;  %v5136_v1 = vpop.eup %5135  ;;  %v6890_v39 = vld [vmem:[#allocation30_spill] sm:$0xff] }
 0x2d2   :  { %5139 = vrcp.f32 %v1582_v23  ;;  %1853 = vmatprep.mubr.f32.mxu0 %v6852_v41  ;;  %1924 = vmatprep.mubr.f32.mxu1 %v6852_v41  ;;  %v5138_v4 = vpop.eup %5137  ;;  %v6889_v23 = vld [vmem:[#allocation29_spill] sm:$0xff] }
 0x2d3   :  { %5141 = vrcp.f32 %v1583_v55  ;;  %v1584_v5 = vadd.f32 1.0, %v5138_v4  ;;  %v6891_v55 = vld [vmem:[#allocation31_spill] sm:$0xff]  ;;  %v6893_v4 = vld [vmem:[#allocation33_spill] sm:$0xff] }
 0x2d4   :  { %4239 = vmatpush1.bf16.msra.mxu0 %v5971_v34  ;;  %4271 = vmatpush1.bf16.msra.mxu1 %v5975_v35 }
 0x2d5   :  { %4241 = vmatprep.subr.bf16.mxu0 %v5977_v60  ;;  %4273 = vmatprep.subr.bf16.mxu1 %v5980_v46  ;;  %5143 = vrcp.f32 %v1584_v5  ;;  %v6897_v5 = vld [vmem:[#allocation37_spill] sm:$0xff] }
 0x2d8   :  { %4243 = vmatpush1.bf16.msra.mxu0 %v5985_v63  ;;  %4275 = vmatpush1.bf16.msra.mxu1 %v6858_v7 }
 0x2d9   :  { %4245 = vmatprep.subr.bf16.mxu0 %v6859_v25  ;;  %4277 = vmatprep.subr.bf16.mxu1 %v6860_v61 }
 0x2dc   :  { %v5140_v49 = vpop.eup %5139  ;;  %4247 = vmatpush1.bf16.msra.mxu0 %v6861_v26  ;;  %4279 = vmatpush1.bf16.msra.mxu1 %v6862_v32 }
 0x2dd   :  { %v1593_v33 = vmul.f32 %v5140_v49, %v5136_v1  ;;  %v5142_v44 = vpop.eup %5141  ;;  %4249 = vmatprep.subr.bf16.mxu0 %v6863_v47  ;;  %4281 = vmatprep.subr.bf16.mxu1 %v6864_v3  ;;  %v6892_v1 = vld [vmem:[#allocation32_spill] sm:$0xff]  ;;  %v6894_v49 = vld [vmem:[#allocation34_spill] sm:$0xff] }
 0x2de   :  { %v1592_v27 = vmul.f32 %v5142_v44, %v6135_v37  ;;  %v6896_v44 = vld [vmem:[#allocation36_spill] sm:$0xff] }
 0x2df   :  { %v5144_v37 = vpop.eup %5143 }
 0x2e0   :  { %v6219_v48 = vadd.f32 %v1593_v33, %v1592_v27  ;;  %4251 = vmatpush1.bf16.msra.mxu0 %v6865_v11  ;;  %4283 = vmatpush1.bf16.msra.mxu1 %v6866_v57  ;;  %v6895_v33 = vld [vmem:[#allocation35_spill] sm:$0xff]  ;;  %v6898_v27 = vld [vmem:[#allocation38_spill] sm:$0xff] }
 0x2e1   :  { %4253 = vmatprep.subr.bf16.mxu0 %v6015_v59  ;;  %4285 = vmatprep.subr.bf16.mxu1 %v6867_v16 }
 0x2e2   :  { %5145 = vtanh.f32 %v6219_v48 }
 0x2e4   :  { %4255 = vmatpush1.bf16.msra.mxu0 %v6021_v38  ;;  %4287 = vmatpush1.bf16.msra.mxu1 %v6025_v0 }
 0x2e5   :  { %4257 = vmatprep.subr.bf16.mxu0 %v6027_v50  ;;  %4289 = vmatprep.subr.bf16.mxu1 %v6030_v8 }
 0x2e8   :  { %4259 = vmatpush1.bf16.msra.mxu0 %v6033_v17  ;;  %4291 = vmatpush1.bf16.msra.mxu1 %v6037_v58 }
 0x2e9   :  { %4261 = vmatprep.subr.bf16.mxu0 %v6039_v19  ;;  %4293 = vmatprep.subr.bf16.mxu1 %v6042_v43 }
 0x2ec   :  { %v5146_v20 = vpop.eup %5145  ;;  %4263 = vmatpush1.bf16.msra.mxu0 %v6045_v54  ;;  %4295 = vmatpush1.bf16.msra.mxu1 %v6049_v52 }
 0x2ed   :  { %v1596_v45 = vmul.f32 %v5146_v20, %v5144_v37  ;;  %4297 = vmatprep.subr.bf16.mxu0 %v5758_v53  ;;  %4329 = vmatprep.subr.bf16.mxu1 %v5762_v56  ;;  %v6899_v37 = vld [vmem:[#allocation39_spill] sm:$0xff]  ;;  %v6900_v20 = vld [vmem:[#allocation40_spill] sm:$0xff] }
 0x2ef   :  { %1604 = vst [vmem:[#allocation15 + $0x68] sm:$0xff] %v1596_v45  ;;  %1854 = vmatmul.mubr.f32.vlgmr.msra.gmra.mrb[26].mxu0 %v1596_v45  ;;  %1925 = vmatmul.mubr.f32.vlgmr.msra.gmra.mrb[26].mxu1 %v1596_v45  ;;  %v6901_v45 = vld [vmem:[#allocation41_spill] sm:$0xff] }
 0x2f0   :  { %4299 = vmatpush1.bf16.msra.mxu0 %v5817_v6  ;;  %4331 = vmatpush1.bf16.msra.mxu1 %v5820_v9 }
 0x2f1   :  { %4301 = vmatprep.subr.bf16.mxu0 %v5822_v12  ;;  %4333 = vmatprep.subr.bf16.mxu1 %v5826_v15 }
 0x2f2   :  { %2045 = vmatprep.mubr.f32.mxu0 %v6852_v41  ;;  %2116 = vmatprep.mubr.f32.mxu1 %v6852_v41 }
 0x2f4   :  { %4303 = vmatpush1.bf16.msra.mxu0 %v5831_v18  ;;  %4335 = vmatpush1.bf16.msra.mxu1 %v5835_v21 }
 0x2f5   :  { %4305 = vmatprep.subr.bf16.mxu0 %v5839_v24  ;;  %4337 = vmatprep.subr.bf16.mxu1 %v6886_v22 }
 0x2f8   :  { %4307 = vmatpush1.bf16.msra.mxu0 %v6887_v40  ;;  %4339 = vmatpush1.bf16.msra.mxu1 %v6888_v51 }
 0x2f9   :  { %4309 = vmatprep.subr.bf16.mxu0 %v6889_v23  ;;  %4341 = vmatprep.subr.bf16.mxu1 %v6890_v39  ;;  %v6911_v39 = vld [vmem:[#allocation61_spill] sm:$0xff] }
 0x2fc   :  { %4311 = vmatpush1.bf16.msra.mxu0 %v6891_v55  ;;  %4343 = vmatpush1.bf16.msra.mxu1 %v6892_v1  ;;  %v6902_v55 = vld [vmem:[#allocation42_spill] sm:$0xff]  ;;  %v6903_v1 = vld [vmem:[#allocation43_spill] sm:$0xff] }
 0x2fd   :  { %4313 = vmatprep.subr.bf16.mxu0 %v6893_v4  ;;  %4345 = vmatprep.subr.bf16.mxu1 %v6894_v49  ;;  %v6904_v4 = vld [vmem:[#allocation44_spill] sm:$0xff]  ;;  %v6905_v49 = vld [vmem:[#allocation45_spill] sm:$0xff] }
 0x300   :  { %4315 = vmatpush1.bf16.msra.mxu0 %v6895_v33  ;;  %4347 = vmatpush1.bf16.msra.mxu1 %v6896_v44  ;;  %v6906_v33 = vld [vmem:[#allocation46_spill] sm:$0xff]  ;;  %v6907_v44 = vld [vmem:[#allocation47_spill] sm:$0xff] }
 0x301   :  { %4317 = vmatprep.subr.bf16.mxu0 %v6897_v5  ;;  %4349 = vmatprep.subr.bf16.mxu1 %v6898_v27  ;;  %v6908_v5 = vld [vmem:[#allocation48_spill] sm:$0xff]  ;;  %v6909_v27 = vld [vmem:[#allocation49_spill] sm:$0xff] }
 0x304   :  { %4319 = vmatpush1.bf16.msra.mxu0 %v6899_v37  ;;  %4351 = vmatpush1.bf16.msra.mxu1 %v6900_v20  ;;  %v6910_v37 = vld [vmem:[#allocation50_spill] sm:$0xff] }
 0x305   :  { %4321 = vmatprep.subr.bf16.mxu0 %v6901_v45  ;;  %4353 = vmatprep.subr.bf16.mxu1 %v6902_v55 }
 0x308   :  { %4323 = vmatpush1.bf16.msra.mxu0 %v6903_v1  ;;  %4355 = vmatpush1.bf16.msra.mxu1 %v6904_v4 }
 0x309   :  { %4325 = vmatprep.subr.bf16.mxu0 %v6905_v49  ;;  %4357 = vmatprep.subr.bf16.mxu1 %v6906_v33  ;;  %v6912_v33 = vld [vmem:[#allocation63_spill] sm:$0xff] }
 0x30c   :  { %4327 = vmatpush1.bf16.msra.mxu0 %v6907_v44  ;;  %4359 = vmatpush1.bf16.msra.mxu1 %v6908_v5 }
 0x30d   :  { %4361 = vmatprep.subr.bf16.mxu0 %v6909_v27  ;;  %4393 = vmatprep.subr.bf16.mxu1 %v6910_v37 }
 0x3a2   :  { %v1685_v20 = vpop.f32.mrb[4].mxu0  ;;  %v1756_v45 = vpop.f32.mrb[4].mxu1 }
 0x3a3   :  { %v4940_v55 = vadd.f32 %v1685_v20, %v6911_v39  ;;  %v1687_v23 = vpop.f32.mrb[5].mxu0  ;;  %v1758_v1 = vpop.f32.mrb[5].mxu1  ;;  %v4956_v44 = vadd.f32 %v1756_v45, %v6912_v33 }
 0x3a4   :  { %v4941_v4 = vadd.f32 %v1687_v23, %v6882_v42  ;;  %v4957_v5 = vadd.f32 %v1758_v1, %v6884_v36 }
 0x3a5   :  { %v3844_v51 = vmul.f32 -1.442695, %v4940_v55  ;;  %v3846_v40 = vmul.f32 -1.442695, %v4956_v44 }
 0x3a6   :  { %v3845_v49 = vmul.f32 -1.442695, %v4941_v4 }
 0x3a7   :  { %5147 = vpow2.f32 %v3844_v51 }
 0x3a8   :  { %5149 = vpow2.f32 %v3845_v49 }
 0x3a9   :  { %5151 = vtanh.f32 %v4957_v5 }
 0x3aa   :  { %5153 = vpow2.f32 %v3846_v40 }
 0x3b1   :  { %v5148_v27 = vpop.eup %5147 }
 0x3b2   :  { %v1774_v22 = vadd.f32 1.0, %v5148_v27  ;;  %v5150_v37 = vpop.eup %5149 }
 0x3b3   :  { %v1775_v20 = vadd.f32 1.0, %v5150_v37  ;;  %v5152_v39 = vpop.eup %5151 }
 0x3b4   :  { %5155 = vrcp.f32 %v1774_v22  ;;  %v5154_v24 = vpop.eup %5153 }
 0x3b5   :  { %5157 = vrcp.f32 %v1775_v20  ;;  %v1776_v51 = vadd.f32 1.0, %v5154_v24 }
 0x3b7   :  { %5159 = vrcp.f32 %v1776_v51 }
 0x3be   :  { %v5156_v23 = vpop.eup %5155 }
 0x3bf   :  { %v1785_v55 = vmul.f32 %v5156_v23, %v5152_v39  ;;  %v5158_v4 = vpop.eup %5157 }
 0x3c0   :  { %v1784_v49 = vmul.f32 %v5158_v4, %v6193_v31 }
 0x3c1   :  { %v5160_v31 = vpop.eup %5159 }
 0x3c2   :  { %v1855_v45 = vpop.f32.mrb[26].mxu0  ;;  %v1926_v33 = vpop.f32.mrb[26].mxu1  ;;  %v6277_v1 = vadd.f32 %v1785_v55, %v1784_v49 }
 0x3c3   :  { %v4978_v44 = vadd.f32 %v1855_v45, %v6102_v28  ;;  %v1857_v5 = vpop.f32.mrb[27].mxu0  ;;  %v1928_v27 = vpop.f32.mrb[27].mxu1  ;;  %v4994_v24 = vadd.f32 %v1926_v33, %v6111_v2 }
 0x3c4   :  { %v4979_v22 = vadd.f32 %v1857_v5, %v6885_v30  ;;  %5161 = vtanh.f32 %v6277_v1  ;;  %v4995_v39 = vadd.f32 %v1928_v27, %v6114_v29 }
 0x3c5   :  { %v3847_v40 = vmul.f32 -1.442695, %v4978_v44  ;;  %v3849_v23 = vmul.f32 -1.442695, %v4994_v24 }
 0x3c6   :  { %v3848_v37 = vmul.f32 -1.442695, %v4979_v22 }
 0x3c7   :  { %5163 = vpow2.f32 %v3847_v40 }
 0x3c8   :  { %5165 = vpow2.f32 %v3848_v37 }
 0x3c9   :  { %5167 = vtanh.f32 %v4995_v39 }
 0x3ca   :  { %5169 = vpow2.f32 %v3849_v23  ;;  %v6914_v23 = vld [vmem:[#allocation26_spill] sm:$0xff] }
 0x3ce   :  { %v5162_v20 = vpop.eup %5161 }
 0x3cf   :  { %v1788_v55 = vmul.f32 %v5162_v20, %v5160_v31  ;;  %v6913_v20 = vld [vmem:[#allocation25_spill] sm:$0xff] }
 0x3d1   :  { %v5164_v4 = vpop.eup %5163  ;;  %1962 = vst [vmem:[#allocation15 + $0x20] sm:$0xff] %v1788_v55  ;;  %2046 = vmatmul.mubr.f32.vlgmr.msra.gmra.mrb[6].mxu0 %v1788_v55  ;;  %2117 = vmatmul.mubr.f32.vlgmr.msra.gmra.mrb[6].mxu1 %v1788_v55  ;;  %v6915_v55 = vld [vmem:[#allocation27_spill] sm:$0xff] }
 0x3d2   :  { %v1944_v49 = vadd.f32 1.0, %v5164_v4  ;;  %v5166_v51 = vpop.eup %5165  ;;  %4363 = vmatpush1.bf16.msra.mxu0 %v5957_v10  ;;  %4395 = vmatpush1.bf16.msra.mxu1 %v5961_v13  ;;  %v6916_v4 = vld [vmem:[#allocation28_spill] sm:$0xff] }
 0x3d3   :  { %v1945_v33 = vadd.f32 1.0, %v5166_v51  ;;  %4365 = vmatprep.subr.bf16.mxu0 %v5963_v14  ;;  %4397 = vmatprep.subr.bf16.mxu1 %v5967_v62  ;;  %v5168_v45 = vpop.eup %5167  ;;  %v6918_v51 = vld [vmem:[#allocation30_spill] sm:$0xff] }
 0x3d4   :  { %5171 = vrcp.f32 %v1944_v49  ;;  %2215 = vmatprep.mubr.f32.mxu0 %v6852_v41  ;;  %2286 = vmatprep.mubr.f32.mxu1 %v6852_v41  ;;  %v5170_v44 = vpop.eup %5169  ;;  %v6917_v49 = vld [vmem:[#allocation29_spill] sm:$0xff] }
 0x3d5   :  { %5173 = vrcp.f32 %v1945_v33  ;;  %v1946_v40 = vadd.f32 1.0, %v5170_v44  ;;  %v6919_v33 = vld [vmem:[#allocation31_spill] sm:$0xff]  ;;  %v6921_v44 = vld [vmem:[#allocation33_spill] sm:$0xff] }
 0x3d6   :  { %4367 = vmatpush1.bf16.msra.mxu0 %v5971_v34  ;;  %4399 = vmatpush1.bf16.msra.mxu1 %v5975_v35 }
 0x3d7   :  { %4369 = vmatprep.subr.bf16.mxu0 %v5977_v60  ;;  %4401 = vmatprep.subr.bf16.mxu1 %v5980_v46  ;;  %5175 = vrcp.f32 %v1946_v40  ;;  %v6925_v40 = vld [vmem:[#allocation37_spill] sm:$0xff] }
 0x3da   :  { %4371 = vmatpush1.bf16.msra.mxu0 %v5985_v63  ;;  %4403 = vmatpush1.bf16.msra.mxu1 %v6858_v7 }
 0x3db   :  { %4373 = vmatprep.subr.bf16.mxu0 %v6859_v25  ;;  %4405 = vmatprep.subr.bf16.mxu1 %v6860_v61 }
 0x3de   :  { %v5172_v5 = vpop.eup %5171  ;;  %4375 = vmatpush1.bf16.msra.mxu0 %v6861_v26  ;;  %4407 = vmatpush1.bf16.msra.mxu1 %v6862_v32 }
 0x3df   :  { %v1955_v27 = vmul.f32 %v5172_v5, %v5168_v45  ;;  %v5174_v22 = vpop.eup %5173  ;;  %4377 = vmatprep.subr.bf16.mxu0 %v6863_v47  ;;  %4409 = vmatprep.subr.bf16.mxu1 %v6864_v3  ;;  %v6920_v45 = vld [vmem:[#allocation32_spill] sm:$0xff]  ;;  %v6922_v5 = vld [vmem:[#allocation34_spill] sm:$0xff] }
 0x3e0   :  { %v1954_v37 = vmul.f32 %v5174_v22, %v6219_v48  ;;  %v6924_v22 = vld [vmem:[#allocation36_spill] sm:$0xff] }
 0x3e1   :  { %v5176_v48 = vpop.eup %5175 }
 0x3e2   :  { %v6303_v24 = vadd.f32 %v1955_v27, %v1954_v37  ;;  %4379 = vmatpush1.bf16.msra.mxu0 %v6865_v11  ;;  %4411 = vmatpush1.bf16.msra.mxu1 %v6866_v57  ;;  %v6923_v27 = vld [vmem:[#allocation35_spill] sm:$0xff]  ;;  %v6926_v37 = vld [vmem:[#allocation38_spill] sm:$0xff] }
 0x3e3   :  { %4381 = vmatprep.subr.bf16.mxu0 %v6015_v59  ;;  %4413 = vmatprep.subr.bf16.mxu1 %v6867_v16 }
 0x3e4   :  { %5177 = vtanh.f32 %v6303_v24 }
 0x3e6   :  { %4383 = vmatpush1.bf16.msra.mxu0 %v6021_v38  ;;  %4415 = vmatpush1.bf16.msra.mxu1 %v6025_v0 }
 0x3e7   :  { %4385 = vmatprep.subr.bf16.mxu0 %v6027_v50  ;;  %4417 = vmatprep.subr.bf16.mxu1 %v6030_v8 }
 0x3ea   :  { %4387 = vmatpush1.bf16.msra.mxu0 %v6033_v17  ;;  %4419 = vmatpush1.bf16.msra.mxu1 %v6037_v58 }
 0x3eb   :  { %4389 = vmatprep.subr.bf16.mxu0 %v6039_v19  ;;  %4421 = vmatprep.subr.bf16.mxu1 %v6042_v43 }
 0x3ee   :  { %v5178_v31 = vpop.eup %5177  ;;  %4391 = vmatpush1.bf16.msra.mxu0 %v6045_v54  ;;  %4423 = vmatpush1.bf16.msra.mxu1 %v6049_v52 }
 0x3ef   :  { %v1958_v39 = vmul.f32 %v5178_v31, %v5176_v48  ;;  %4425 = vmatprep.subr.bf16.mxu0 %v5758_v53  ;;  %4457 = vmatprep.subr.bf16.mxu1 %v5762_v56  ;;  %v6927_v48 = vld [vmem:[#allocation39_spill] sm:$0xff]  ;;  %v6928_v31 = vld [vmem:[#allocation40_spill] sm:$0xff] }
 0x3f1   :  { %1966 = vst [vmem:[#allocation15 + $0x58] sm:$0xff] %v1958_v39  ;;  %2216 = vmatmul.mubr.f32.vlgmr.msra.gmra.mrb[24].mxu0 %v1958_v39  ;;  %2287 = vmatmul.mubr.f32.vlgmr.msra.gmra.mrb[24].mxu1 %v1958_v39  ;;  %v6929_v39 = vld [vmem:[#allocation41_spill] sm:$0xff] }
 0x3f2   :  { %4427 = vmatpush1.bf16.msra.mxu0 %v5817_v6  ;;  %4459 = vmatpush1.bf16.msra.mxu1 %v5820_v9 }
 0x3f3   :  { %4429 = vmatprep.subr.bf16.mxu0 %v5822_v12  ;;  %4461 = vmatprep.subr.bf16.mxu1 %v5826_v15 }
 0x3f4   :  { %2401 = vmatprep.mubr.f32.mxu0 %v6852_v41  ;;  %2472 = vmatprep.mubr.f32.mxu1 %v6852_v41 }
 0x3f6   :  { %4431 = vmatpush1.bf16.msra.mxu0 %v5831_v18  ;;  %4463 = vmatpush1.bf16.msra.mxu1 %v5835_v21 }
 0x3f7   :  { %4433 = vmatprep.subr.bf16.mxu0 %v6913_v20  ;;  %4465 = vmatprep.subr.bf16.mxu1 %v6914_v23 }
 0x3fa   :  { %4435 = vmatpush1.bf16.msra.mxu0 %v6915_v55  ;;  %4467 = vmatpush1.bf16.msra.mxu1 %v6916_v4 }
 0x3fb   :  { %4437 = vmatprep.subr.bf16.mxu0 %v6917_v49  ;;  %4469 = vmatprep.subr.bf16.mxu1 %v6918_v51  ;;  %v6939_v51 = vld [vmem:[#allocation61_spill] sm:$0xff] }
 0x3fe   :  { %4439 = vmatpush1.bf16.msra.mxu0 %v6919_v33  ;;  %4471 = vmatpush1.bf16.msra.mxu1 %v6920_v45  ;;  %v6930_v33 = vld [vmem:[#allocation42_spill] sm:$0xff]  ;;  %v6931_v45 = vld [vmem:[#allocation43_spill] sm:$0xff] }
 0x3ff   :  { %4441 = vmatprep.subr.bf16.mxu0 %v6921_v44  ;;  %4473 = vmatprep.subr.bf16.mxu1 %v6922_v5  ;;  %v6932_v44 = vld [vmem:[#allocation44_spill] sm:$0xff]  ;;  %v6933_v5 = vld [vmem:[#allocation45_spill] sm:$0xff] }
 0x402   :  { %4443 = vmatpush1.bf16.msra.mxu0 %v6923_v27  ;;  %4475 = vmatpush1.bf16.msra.mxu1 %v6924_v22  ;;  %v6934_v27 = vld [vmem:[#allocation46_spill] sm:$0xff]  ;;  %v6935_v22 = vld [vmem:[#allocation47_spill] sm:$0xff] }
 0x403   :  { %4445 = vmatprep.subr.bf16.mxu0 %v6925_v40  ;;  %4477 = vmatprep.subr.bf16.mxu1 %v6926_v37  ;;  %v6936_v40 = vld [vmem:[#allocation48_spill] sm:$0xff]  ;;  %v6937_v37 = vld [vmem:[#allocation49_spill] sm:$0xff] }
 0x406   :  { %4447 = vmatpush1.bf16.msra.mxu0 %v6927_v48  ;;  %4479 = vmatpush1.bf16.msra.mxu1 %v6928_v31  ;;  %v6938_v48 = vld [vmem:[#allocation50_spill] sm:$0xff] }
 0x407   :  { %4449 = vmatprep.subr.bf16.mxu0 %v6929_v39  ;;  %4481 = vmatprep.subr.bf16.mxu1 %v6930_v33 }
 0x40a   :  { %4451 = vmatpush1.bf16.msra.mxu0 %v6931_v45  ;;  %4483 = vmatpush1.bf16.msra.mxu1 %v6932_v44 }
 0x40b   :  { %4453 = vmatprep.subr.bf16.mxu0 %v6933_v5  ;;  %4485 = vmatprep.subr.bf16.mxu1 %v6934_v27  ;;  %v6940_v27 = vld [vmem:[#allocation63_spill] sm:$0xff] }
 0x40e   :  { %4455 = vmatpush1.bf16.msra.mxu0 %v6935_v22  ;;  %4487 = vmatpush1.bf16.msra.mxu1 %v6936_v40 }
 0x40f   :  { %4489 = vmatprep.subr.bf16.mxu0 %v6937_v37  ;;  %4521 = vmatprep.subr.bf16.mxu1 %v6938_v48 }
 0x4a4   :  { %v2047_v31 = vpop.f32.mrb[6].mxu0  ;;  %v2118_v39 = vpop.f32.mrb[6].mxu1 }
 0x4a5   :  { %v4942_v33 = vadd.f32 %v2047_v31, %v6939_v51  ;;  %v2049_v49 = vpop.f32.mrb[7].mxu0  ;;  %v2120_v45 = vpop.f32.mrb[7].mxu1  ;;  %v4958_v22 = vadd.f32 %v2118_v39, %v6940_v27 }
 0x4a6   :  { %v4943_v44 = vadd.f32 %v2049_v49, %v6882_v42  ;;  %v4959_v40 = vadd.f32 %v2120_v45, %v6884_v36 }
 0x4a7   :  { %v3850_v4 = vmul.f32 -1.442695, %v4942_v33  ;;  %v3852_v55 = vmul.f32 -1.442695, %v4958_v22 }
 0x4a8   :  { %v3851_v5 = vmul.f32 -1.442695, %v4943_v44 }
 0x4a9   :  { %5179 = vpow2.f32 %v3850_v4 }
 0x4aa   :  { %5181 = vpow2.f32 %v3851_v5 }
 0x4ab   :  { %5183 = vtanh.f32 %v4959_v40 }
 0x4ac   :  { %5185 = vpow2.f32 %v3852_v55 }
 0x4b3   :  { %v5180_v37 = vpop.eup %5179 }
 0x4b4   :  { %v2136_v23 = vadd.f32 1.0, %v5180_v37  ;;  %v5182_v48 = vpop.eup %5181 }
 0x4b5   :  { %v2137_v31 = vadd.f32 1.0, %v5182_v48  ;;  %v5184_v51 = vpop.eup %5183 }
 0x4b6   :  { %5187 = vrcp.f32 %v2136_v23  ;;  %v5186_v20 = vpop.eup %5185 }
 0x4b7   :  { %5189 = vrcp.f32 %v2137_v31  ;;  %v2138_v4 = vadd.f32 1.0, %v5186_v20 }
 0x4b9   :  { %5191 = vrcp.f32 %v2138_v4 }
 0x4c0   :  { %v5188_v49 = vpop.eup %5187 }
 0x4c1   :  { %v2147_v33 = vmul.f32 %v5188_v49, %v5184_v51  ;;  %v5190_v44 = vpop.eup %5189 }
 0x4c2   :  { %v2146_v5 = vmul.f32 %v5190_v44, %v6277_v1 }
 0x4c3   :  { %v5192_v1 = vpop.eup %5191 }
 0x4c4   :  { %v2217_v39 = vpop.f32.mrb[24].mxu0  ;;  %v2288_v27 = vpop.f32.mrb[24].mxu1  ;;  %v6361_v45 = vadd.f32 %v2147_v33, %v2146_v5 }
 0x4c5   :  { %v4976_v22 = vadd.f32 %v2217_v39, %v6102_v28  ;;  %v2219_v40 = vpop.f32.mrb[25].mxu0  ;;  %v2290_v37 = vpop.f32.mrb[25].mxu1  ;;  %v4992_v20 = vadd.f32 %v2288_v27, %v6111_v2 }
 0x4c6   :  { %v4977_v23 = vadd.f32 %v2219_v40, %v6885_v30  ;;  %5193 = vtanh.f32 %v6361_v45  ;;  %v4993_v51 = vadd.f32 %v2290_v37, %v6114_v29 }
 0x4c7   :  { %v3853_v55 = vmul.f32 -1.442695, %v4976_v22  ;;  %v3855_v49 = vmul.f32 -1.442695, %v4992_v20 }
 0x4c8   :  { %v3854_v48 = vmul.f32 -1.442695, %v4977_v23 }
 0x4c9   :  { %5195 = vpow2.f32 %v3853_v55 }
 0x4ca   :  { %5197 = vpow2.f32 %v3854_v48 }
 0x4cb   :  { %5199 = vtanh.f32 %v4993_v51 }
 0x4cc   :  { %5201 = vpow2.f32 %v3855_v49  ;;  %v6942_v49 = vld [vmem:[#allocation26_spill] sm:$0xff] }
 0x4d0   :  { %v5194_v31 = vpop.eup %5193 }
 0x4d1   :  { %v2150_v33 = vmul.f32 %v5194_v31, %v5192_v1  ;;  %v6941_v31 = vld [vmem:[#allocation25_spill] sm:$0xff] }
 0x4d3   :  { %v5196_v44 = vpop.eup %5195  ;;  %2324 = vst [vmem:[#allocation15 + $0x30] sm:$0xff] %v2150_v33  ;;  %2402 = vmatmul.mubr.f32.vlgmr.msra.gmra.mrb[8].mxu0 %v2150_v33  ;;  %2473 = vmatmul.mubr.f32.vlgmr.msra.gmra.mrb[8].mxu1 %v2150_v33  ;;  %v6943_v33 = vld [vmem:[#allocation27_spill] sm:$0xff] }
 0x4d4   :  { %v2306_v5 = vadd.f32 1.0, %v5196_v44  ;;  %v5198_v4 = vpop.eup %5197  ;;  %4491 = vmatpush1.bf16.msra.mxu0 %v5957_v10  ;;  %4523 = vmatpush1.bf16.msra.mxu1 %v5961_v13  ;;  %v6944_v44 = vld [vmem:[#allocation28_spill] sm:$0xff] }
 0x4d5   :  { %v2307_v27 = vadd.f32 1.0, %v5198_v4  ;;  %4493 = vmatprep.subr.bf16.mxu0 %v5963_v14  ;;  %4525 = vmatprep.subr.bf16.mxu1 %v5967_v62  ;;  %v5200_v39 = vpop.eup %5199  ;;  %v6946_v4 = vld [vmem:[#allocation30_spill] sm:$0xff] }
 0x4d6   :  { %5203 = vrcp.f32 %v2306_v5  ;;  %2571 = vmatprep.mubr.f32.mxu0 %v6852_v41  ;;  %2642 = vmatprep.mubr.f32.mxu1 %v6852_v41  ;;  %v5202_v22 = vpop.eup %5201  ;;  %v6945_v5 = vld [vmem:[#allocation29_spill] sm:$0xff] }
 0x4d7   :  { %5205 = vrcp.f32 %v2307_v27  ;;  %v2308_v55 = vadd.f32 1.0, %v5202_v22  ;;  %v6947_v27 = vld [vmem:[#allocation31_spill] sm:$0xff]  ;;  %v6949_v22 = vld [vmem:[#allocation33_spill] sm:$0xff] }
 0x4d8   :  { %4495 = vmatpush1.bf16.msra.mxu0 %v5971_v34  ;;  %4527 = vmatpush1.bf16.msra.mxu1 %v5975_v35 }
 0x4d9   :  { %4497 = vmatprep.subr.bf16.mxu0 %v5977_v60  ;;  %4529 = vmatprep.subr.bf16.mxu1 %v5980_v46  ;;  %5207 = vrcp.f32 %v2308_v55  ;;  %v6953_v55 = vld [vmem:[#allocation37_spill] sm:$0xff] }
 0x4dc   :  { %4499 = vmatpush1.bf16.msra.mxu0 %v5985_v63  ;;  %4531 = vmatpush1.bf16.msra.mxu1 %v6858_v7 }
 0x4dd   :  { %4501 = vmatprep.subr.bf16.mxu0 %v6859_v25  ;;  %4533 = vmatprep.subr.bf16.mxu1 %v6860_v61 }
 0x4e0   :  { %v5204_v40 = vpop.eup %5203  ;;  %4503 = vmatpush1.bf16.msra.mxu0 %v6861_v26  ;;  %4535 = vmatpush1.bf16.msra.mxu1 %v6862_v32 }
 0x4e1   :  { %v2317_v37 = vmul.f32 %v5204_v40, %v5200_v39  ;;  %v5206_v23 = vpop.eup %5205  ;;  %4505 = vmatprep.subr.bf16.mxu0 %v6863_v47  ;;  %4537 = vmatprep.subr.bf16.mxu1 %v6864_v3  ;;  %v6948_v39 = vld [vmem:[#allocation32_spill] sm:$0xff]  ;;  %v6950_v40 = vld [vmem:[#allocation34_spill] sm:$0xff] }
 0x4e2   :  { %v2316_v48 = vmul.f32 %v5206_v23, %v6303_v24  ;;  %v6952_v23 = vld [vmem:[#allocation36_spill] sm:$0xff] }
 0x4e3   :  { %v5208_v24 = vpop.eup %5207 }
 0x4e4   :  { %v6387_v20 = vadd.f32 %v2317_v37, %v2316_v48  ;;  %4507 = vmatpush1.bf16.msra.mxu0 %v6865_v11  ;;  %4539 = vmatpush1.bf16.msra.mxu1 %v6866_v57  ;;  %v6951_v37 = vld [vmem:[#allocation35_spill] sm:$0xff]  ;;  %v6954_v48 = vld [vmem:[#allocation38_spill] sm:$0xff] }
 0x4e5   :  { %4509 = vmatprep.subr.bf16.mxu0 %v6015_v59  ;;  %4541 = vmatprep.subr.bf16.mxu1 %v6867_v16 }
 0x4e6   :  { %5209 = vtanh.f32 %v6387_v20 }
 0x4e8   :  { %4511 = vmatpush1.bf16.msra.mxu0 %v6021_v38  ;;  %4543 = vmatpush1.bf16.msra.mxu1 %v6025_v0 }
 0x4e9   :  { %4513 = vmatprep.subr.bf16.mxu0 %v6027_v50  ;;  %4545 = vmatprep.subr.bf16.mxu1 %v6030_v8 }
 0x4ec   :  { %4515 = vmatpush1.bf16.msra.mxu0 %v6033_v17  ;;  %4547 = vmatpush1.bf16.msra.mxu1 %v6037_v58 }
 0x4ed   :  { %4517 = vmatprep.subr.bf16.mxu0 %v6039_v19  ;;  %4549 = vmatprep.subr.bf16.mxu1 %v6042_v43 }
 0x4f0   :  { %v5210_v1 = vpop.eup %5209  ;;  %4519 = vmatpush1.bf16.msra.mxu0 %v6045_v54  ;;  %4551 = vmatpush1.bf16.msra.mxu1 %v6049_v52 }
 0x4f1   :  { %v2320_v51 = vmul.f32 %v5210_v1, %v5208_v24  ;;  %4553 = vmatprep.subr.bf16.mxu0 %v5758_v53  ;;  %4585 = vmatprep.subr.bf16.mxu1 %v5762_v56  ;;  %v6955_v24 = vld [vmem:[#allocation39_spill] sm:$0xff]  ;;  %v6956_v1 = vld [vmem:[#allocation40_spill] sm:$0xff] }
 0x4f3   :  { %2328 = vst [vmem:[#allocation15 + $0x48] sm:$0xff] %v2320_v51  ;;  %2572 = vmatmul.mubr.f32.vlgmr.msra.gmra.mrb[22].mxu0 %v2320_v51  ;;  %2643 = vmatmul.mubr.f32.vlgmr.msra.gmra.mrb[22].mxu1 %v2320_v51  ;;  %v6957_v51 = vld [vmem:[#allocation41_spill] sm:$0xff] }
 0x4f4   :  { %4555 = vmatpush1.bf16.msra.mxu0 %v5817_v6  ;;  %4587 = vmatpush1.bf16.msra.mxu1 %v5820_v9 }
 0x4f5   :  { %4557 = vmatprep.subr.bf16.mxu0 %v5822_v12  ;;  %4589 = vmatprep.subr.bf16.mxu1 %v5826_v15 }
 0x4f6   :  { %2751 = vmatprep.mubr.f32.mxu0 %v6852_v41  ;;  %2822 = vmatprep.mubr.f32.mxu1 %v6852_v41 }
 0x4f8   :  { %4559 = vmatpush1.bf16.msra.mxu0 %v5831_v18  ;;  %4591 = vmatpush1.bf16.msra.mxu1 %v5835_v21 }
 0x4f9   :  { %4561 = vmatprep.subr.bf16.mxu0 %v6941_v31  ;;  %4593 = vmatprep.subr.bf16.mxu1 %v6942_v49 }
 0x4fc   :  { %4563 = vmatpush1.bf16.msra.mxu0 %v6943_v33  ;;  %4595 = vmatpush1.bf16.msra.mxu1 %v6944_v44 }
 0x4fd   :  { %4565 = vmatprep.subr.bf16.mxu0 %v6945_v5  ;;  %4597 = vmatprep.subr.bf16.mxu1 %v6946_v4  ;;  %v6967_v4 = vld [vmem:[#allocation61_spill] sm:$0xff] }
 0x500   :  { %4567 = vmatpush1.bf16.msra.mxu0 %v6947_v27  ;;  %4599 = vmatpush1.bf16.msra.mxu1 %v6948_v39  ;;  %v6958_v27 = vld [vmem:[#allocation42_spill] sm:$0xff]  ;;  %v6959_v39 = vld [vmem:[#allocation43_spill] sm:$0xff] }
 0x501   :  { %4569 = vmatprep.subr.bf16.mxu0 %v6949_v22  ;;  %4601 = vmatprep.subr.bf16.mxu1 %v6950_v40  ;;  %v6960_v22 = vld [vmem:[#allocation44_spill] sm:$0xff]  ;;  %v6961_v40 = vld [vmem:[#allocation45_spill] sm:$0xff] }
 0x504   :  { %4571 = vmatpush1.bf16.msra.mxu0 %v6951_v37  ;;  %4603 = vmatpush1.bf16.msra.mxu1 %v6952_v23  ;;  %v6962_v37 = vld [vmem:[#allocation46_spill] sm:$0xff]  ;;  %v6963_v23 = vld [vmem:[#allocation47_spill] sm:$0xff] }
 0x505   :  { %4573 = vmatprep.subr.bf16.mxu0 %v6953_v55  ;;  %4605 = vmatprep.subr.bf16.mxu1 %v6954_v48  ;;  %v6964_v55 = vld [vmem:[#allocation48_spill] sm:$0xff]  ;;  %v6965_v48 = vld [vmem:[#allocation49_spill] sm:$0xff] }
 0x508   :  { %4575 = vmatpush1.bf16.msra.mxu0 %v6955_v24  ;;  %4607 = vmatpush1.bf16.msra.mxu1 %v6956_v1  ;;  %v6966_v24 = vld [vmem:[#allocation50_spill] sm:$0xff] }
 0x509   :  { %4577 = vmatprep.subr.bf16.mxu0 %v6957_v51  ;;  %4609 = vmatprep.subr.bf16.mxu1 %v6958_v27 }
 0x50c   :  { %4579 = vmatpush1.bf16.msra.mxu0 %v6959_v39  ;;  %4611 = vmatpush1.bf16.msra.mxu1 %v6960_v22 }
 0x50d   :  { %4581 = vmatprep.subr.bf16.mxu0 %v6961_v40  ;;  %4613 = vmatprep.subr.bf16.mxu1 %v6962_v37  ;;  %v6968_v37 = vld [vmem:[#allocation63_spill] sm:$0xff] }
 0x510   :  { %4583 = vmatpush1.bf16.msra.mxu0 %v6963_v23  ;;  %4615 = vmatpush1.bf16.msra.mxu1 %v6964_v55 }
 0x511   :  { %4617 = vmatprep.subr.bf16.mxu0 %v6965_v48  ;;  %4649 = vmatprep.subr.bf16.mxu1 %v6966_v24 }
 0x5a6   :  { %v2403_v1 = vpop.f32.mrb[8].mxu0  ;;  %v2474_v51 = vpop.f32.mrb[8].mxu1 }
 0x5a7   :  { %v4944_v27 = vadd.f32 %v2403_v1, %v6967_v4  ;;  %v2405_v5 = vpop.f32.mrb[9].mxu0  ;;  %v2476_v39 = vpop.f32.mrb[9].mxu1  ;;  %v4960_v23 = vadd.f32 %v2474_v51, %v6968_v37 }
 0x5a8   :  { %v4945_v22 = vadd.f32 %v2405_v5, %v6882_v42  ;;  %v4961_v55 = vadd.f32 %v2476_v39, %v6884_v36 }
 0x5a9   :  { %v3856_v44 = vmul.f32 -1.442695, %v4944_v27  ;;  %v3858_v33 = vmul.f32 -1.442695, %v4960_v23 }
 0x5aa   :  { %v3857_v40 = vmul.f32 -1.442695, %v4945_v22 }
 0x5ab   :  { %5211 = vpow2.f32 %v3856_v44 }
 0x5ac   :  { %5213 = vpow2.f32 %v3857_v40 }
 0x5ad   :  { %5215 = vtanh.f32 %v4961_v55 }
 0x5ae   :  { %5217 = vpow2.f32 %v3858_v33 }
 0x5b5   :  { %v5212_v48 = vpop.eup %5211 }
 0x5b6   :  { %v2492_v49 = vadd.f32 1.0, %v5212_v48  ;;  %v5214_v24 = vpop.eup %5213 }
 0x5b7   :  { %v2493_v1 = vadd.f32 1.0, %v5214_v24  ;;  %v5216_v4 = vpop.eup %5215 }
 0x5b8   :  { %5219 = vrcp.f32 %v2492_v49  ;;  %v5218_v31 = vpop.eup %5217 }
 0x5b9   :  { %5221 = vrcp.f32 %v2493_v1  ;;  %v2494_v44 = vadd.f32 1.0, %v5218_v31 }
 0x5bb   :  { %5223 = vrcp.f32 %v2494_v44 }
 0x5c2   :  { %v5220_v5 = vpop.eup %5219 }
 0x5c3   :  { %v2503_v27 = vmul.f32 %v5220_v5, %v5216_v4  ;;  %v5222_v22 = vpop.eup %5221 }
 0x5c4   :  { %v2502_v40 = vmul.f32 %v5222_v22, %v6361_v45 }
 0x5c5   :  { %v5224_v45 = vpop.eup %5223 }
 0x5c6   :  { %v2573_v51 = vpop.f32.mrb[22].mxu0  ;;  %v2644_v37 = vpop.f32.mrb[22].mxu1  ;;  %v6445_v39 = vadd.f32 %v2503_v27, %v2502_v40 }
 0x5c7   :  { %v4974_v23 = vadd.f32 %v2573_v51, %v6102_v28  ;;  %v2575_v55 = vpop.f32.mrb[23].mxu0  ;;  %v2646_v48 = vpop.f32.mrb[23].mxu1  ;;  %v4990_v31 = vadd.f32 %v2644_v37, %v6111_v2 }
 0x5c8   :  { %v4975_v49 = vadd.f32 %v2575_v55, %v6885_v30  ;;  %5225 = vtanh.f32 %v6445_v39  ;;  %v4991_v4 = vadd.f32 %v2646_v48, %v6114_v29 }
 0x5c9   :  { %v3859_v33 = vmul.f32 -1.442695, %v4974_v23  ;;  %v3861_v5 = vmul.f32 -1.442695, %v4990_v31 }
 0x5ca   :  { %v3860_v24 = vmul.f32 -1.442695, %v4975_v49 }
 0x5cb   :  { %5227 = vpow2.f32 %v3859_v33 }
 0x5cc   :  { %5229 = vpow2.f32 %v3860_v24 }
 0x5cd   :  { %5231 = vtanh.f32 %v4991_v4 }
 0x5ce   :  { %5233 = vpow2.f32 %v3861_v5  ;;  %v6970_v5 = vld [vmem:[#allocation26_spill] sm:$0xff] }
 0x5d2   :  { %v5226_v1 = vpop.eup %5225 }
 0x5d3   :  { %v2506_v27 = vmul.f32 %v5226_v1, %v5224_v45  ;;  %v6969_v1 = vld [vmem:[#allocation25_spill] sm:$0xff] }
 0x5d5   :  { %v5228_v22 = vpop.eup %5227  ;;  %2677 = vst [vmem:[#allocation15 + $0x40] sm:$0xff] %v2506_v27  ;;  %2752 = vmatmul.mubr.f32.vlgmr.msra.gmra.mrb[10].mxu0 %v2506_v27  ;;  %2823 = vmatmul.mubr.f32.vlgmr.msra.gmra.mrb[10].mxu1 %v2506_v27  ;;  %v6971_v27 = vld [vmem:[#allocation27_spill] sm:$0xff] }
 0x5d6   :  { %v2662_v40 = vadd.f32 1.0, %v5228_v22  ;;  %v5230_v44 = vpop.eup %5229  ;;  %4619 = vmatpush1.bf16.msra.mxu0 %v5957_v10  ;;  %4651 = vmatpush1.bf16.msra.mxu1 %v5961_v13  ;;  %v6972_v22 = vld [vmem:[#allocation28_spill] sm:$0xff] }
 0x5d7   :  { %v2663_v37 = vadd.f32 1.0, %v5230_v44  ;;  %4621 = vmatprep.subr.bf16.mxu0 %v5963_v14  ;;  %4653 = vmatprep.subr.bf16.mxu1 %v5967_v62  ;;  %v5232_v51 = vpop.eup %5231  ;;  %v6974_v44 = vld [vmem:[#allocation30_spill] sm:$0xff] }
 0x5d8   :  { %5235 = vrcp.f32 %v2662_v40  ;;  %2921 = vmatprep.mubr.f32.mxu0 %v6852_v41  ;;  %2992 = vmatprep.mubr.f32.mxu1 %v6852_v41  ;;  %v5234_v23 = vpop.eup %5233  ;;  %v6973_v40 = vld [vmem:[#allocation29_spill] sm:$0xff] }
 0x5d9   :  { %5237 = vrcp.f32 %v2663_v37  ;;  %v2664_v33 = vadd.f32 1.0, %v5234_v23  ;;  %v6975_v37 = vld [vmem:[#allocation31_spill] sm:$0xff]  ;;  %v6977_v23 = vld [vmem:[#allocation33_spill] sm:$0xff] }
 0x5da   :  { %4623 = vmatpush1.bf16.msra.mxu0 %v5971_v34  ;;  %4655 = vmatpush1.bf16.msra.mxu1 %v5975_v35 }
 0x5db   :  { %4625 = vmatprep.subr.bf16.mxu0 %v5977_v60  ;;  %4657 = vmatprep.subr.bf16.mxu1 %v5980_v46  ;;  %5239 = vrcp.f32 %v2664_v33  ;;  %v6981_v33 = vld [vmem:[#allocation37_spill] sm:$0xff] }
 0x5de   :  { %4627 = vmatpush1.bf16.msra.mxu0 %v5985_v63  ;;  %4659 = vmatpush1.bf16.msra.mxu1 %v6858_v7 }
 0x5df   :  { %4629 = vmatprep.subr.bf16.mxu0 %v6859_v25  ;;  %4661 = vmatprep.subr.bf16.mxu1 %v6860_v61 }
 0x5e2   :  { %v5236_v55 = vpop.eup %5235  ;;  %4631 = vmatpush1.bf16.msra.mxu0 %v6861_v26  ;;  %4663 = vmatpush1.bf16.msra.mxu1 %v6862_v32 }
 0x5e3   :  { %v2673_v48 = vmul.f32 %v5236_v55, %v5232_v51  ;;  %v5238_v49 = vpop.eup %5237  ;;  %4633 = vmatprep.subr.bf16.mxu0 %v6863_v47  ;;  %4665 = vmatprep.subr.bf16.mxu1 %v6864_v3  ;;  %v6976_v51 = vld [vmem:[#allocation32_spill] sm:$0xff]  ;;  %v6978_v55 = vld [vmem:[#allocation34_spill] sm:$0xff] }
 0x5e4   :  { %v2672_v24 = vmul.f32 %v5238_v49, %v6387_v20  ;;  %v6980_v49 = vld [vmem:[#allocation36_spill] sm:$0xff] }
 0x5e5   :  { %v5240_v20 = vpop.eup %5239 }
 0x5e6   :  { %v6471_v31 = vadd.f32 %v2673_v48, %v2672_v24  ;;  %4635 = vmatpush1.bf16.msra.mxu0 %v6865_v11  ;;  %4667 = vmatpush1.bf16.msra.mxu1 %v6866_v57  ;;  %v6979_v48 = vld [vmem:[#allocation35_spill] sm:$0xff]  ;;  %v6982_v24 = vld [vmem:[#allocation38_spill] sm:$0xff] }
 0x5e7   :  { %4637 = vmatprep.subr.bf16.mxu0 %v6015_v59  ;;  %4669 = vmatprep.subr.bf16.mxu1 %v6867_v16 }
 0x5e8   :  { %5241 = vtanh.f32 %v6471_v31 }
 0x5ea   :  { %4639 = vmatpush1.bf16.msra.mxu0 %v6021_v38  ;;  %4671 = vmatpush1.bf16.msra.mxu1 %v6025_v0 }
 0x5eb   :  { %4641 = vmatprep.subr.bf16.mxu0 %v6027_v50  ;;  %4673 = vmatprep.subr.bf16.mxu1 %v6030_v8 }
 0x5ee   :  { %4643 = vmatpush1.bf16.msra.mxu0 %v6033_v17  ;;  %4675 = vmatpush1.bf16.msra.mxu1 %v6037_v58 }
 0x5ef   :  { %4645 = vmatprep.subr.bf16.mxu0 %v6039_v19  ;;  %4677 = vmatprep.subr.bf16.mxu1 %v6042_v43 }
 0x5f2   :  { %v5242_v45 = vpop.eup %5241  ;;  %4647 = vmatpush1.bf16.msra.mxu0 %v6045_v54  ;;  %4679 = vmatpush1.bf16.msra.mxu1 %v6049_v52 }
 0x5f3   :  { %v2676_v4 = vmul.f32 %v5242_v45, %v5240_v20  ;;  %4681 = vmatprep.subr.bf16.mxu0 %v5758_v53  ;;  %4713 = vmatprep.subr.bf16.mxu1 %v5762_v56  ;;  %v6983_v20 = vld [vmem:[#allocation39_spill] sm:$0xff]  ;;  %v6984_v45 = vld [vmem:[#allocation40_spill] sm:$0xff] }
 0x5f5   :  { %2678 = vst [vmem:[#allocation15 + $0x38] sm:$0xff] %v2676_v4  ;;  %2922 = vmatmul.mubr.f32.vlgmr.msra.gmra.mrb[20].mxu0 %v2676_v4  ;;  %2993 = vmatmul.mubr.f32.vlgmr.msra.gmra.mrb[20].mxu1 %v2676_v4  ;;  %v6985_v4 = vld [vmem:[#allocation41_spill] sm:$0xff] }
 0x5f6   :  { %4683 = vmatpush1.bf16.msra.mxu0 %v5817_v6  ;;  %4715 = vmatpush1.bf16.msra.mxu1 %v5820_v9 }
 0x5f7   :  { %4685 = vmatprep.subr.bf16.mxu0 %v5822_v12  ;;  %4717 = vmatprep.subr.bf16.mxu1 %v5826_v15 }
 0x5f8   :  { %3101 = vmatprep.mubr.f32.mxu0 %v6852_v41  ;;  %3172 = vmatprep.mubr.f32.mxu1 %v6852_v41 }
 0x5fa   :  { %4687 = vmatpush1.bf16.msra.mxu0 %v5831_v18  ;;  %4719 = vmatpush1.bf16.msra.mxu1 %v5835_v21 }
 0x5fb   :  { %4689 = vmatprep.subr.bf16.mxu0 %v6969_v1  ;;  %4721 = vmatprep.subr.bf16.mxu1 %v6970_v5 }
 0x5fe   :  { %4691 = vmatpush1.bf16.msra.mxu0 %v6971_v27  ;;  %4723 = vmatpush1.bf16.msra.mxu1 %v6972_v22 }
 0x5ff   :  { %4693 = vmatprep.subr.bf16.mxu0 %v6973_v40  ;;  %4725 = vmatprep.subr.bf16.mxu1 %v6974_v44  ;;  %v6995_v44 = vld [vmem:[#allocation61_spill] sm:$0xff] }
 0x602   :  { %4695 = vmatpush1.bf16.msra.mxu0 %v6975_v37  ;;  %4727 = vmatpush1.bf16.msra.mxu1 %v6976_v51  ;;  %v6986_v37 = vld [vmem:[#allocation42_spill] sm:$0xff]  ;;  %v6987_v51 = vld [vmem:[#allocation43_spill] sm:$0xff] }
 0x603   :  { %4697 = vmatprep.subr.bf16.mxu0 %v6977_v23  ;;  %4729 = vmatprep.subr.bf16.mxu1 %v6978_v55  ;;  %v6988_v23 = vld [vmem:[#allocation44_spill] sm:$0xff]  ;;  %v6989_v55 = vld [vmem:[#allocation45_spill] sm:$0xff] }
 0x606   :  { %4699 = vmatpush1.bf16.msra.mxu0 %v6979_v48  ;;  %4731 = vmatpush1.bf16.msra.mxu1 %v6980_v49  ;;  %v6990_v48 = vld [vmem:[#allocation46_spill] sm:$0xff]  ;;  %v6991_v49 = vld [vmem:[#allocation47_spill] sm:$0xff] }
 0x607   :  { %4701 = vmatprep.subr.bf16.mxu0 %v6981_v33  ;;  %4733 = vmatprep.subr.bf16.mxu1 %v6982_v24  ;;  %v6992_v33 = vld [vmem:[#allocation48_spill] sm:$0xff]  ;;  %v6993_v24 = vld [vmem:[#allocation49_spill] sm:$0xff] }
 0x60a   :  { %4703 = vmatpush1.bf16.msra.mxu0 %v6983_v20  ;;  %4735 = vmatpush1.bf16.msra.mxu1 %v6984_v45  ;;  %v6994_v20 = vld [vmem:[#allocation50_spill] sm:$0xff] }
 0x60b   :  { %4705 = vmatprep.subr.bf16.mxu0 %v6985_v4  ;;  %4737 = vmatprep.subr.bf16.mxu1 %v6986_v37 }
 0x60e   :  { %4707 = vmatpush1.bf16.msra.mxu0 %v6987_v51  ;;  %4739 = vmatpush1.bf16.msra.mxu1 %v6988_v23 }
 0x60f   :  { %4709 = vmatprep.subr.bf16.mxu0 %v6989_v55  ;;  %4741 = vmatprep.subr.bf16.mxu1 %v6990_v48  ;;  %v6996_v48 = vld [vmem:[#allocation63_spill] sm:$0xff] }
 0x612   :  { %4711 = vmatpush1.bf16.msra.mxu0 %v6991_v49  ;;  %4743 = vmatpush1.bf16.msra.mxu1 %v6992_v33 }
 0x613   :  { %4745 = vmatprep.subr.bf16.mxu0 %v6993_v24  ;;  %4777 = vmatprep.subr.bf16.mxu1 %v6994_v20 }
 0x6a8   :  { %v2753_v45 = vpop.f32.mrb[10].mxu0  ;;  %v2824_v4 = vpop.f32.mrb[10].mxu1 }
 0x6a9   :  { %v4946_v37 = vadd.f32 %v2753_v45, %v6995_v44  ;;  %v2755_v40 = vpop.f32.mrb[11].mxu0  ;;  %v2826_v51 = vpop.f32.mrb[11].mxu1  ;;  %v4962_v49 = vadd.f32 %v2824_v4, %v6996_v48 }
 0x6aa   :  { %v4947_v23 = vadd.f32 %v2755_v40, %v6882_v42  ;;  %v4963_v33 = vadd.f32 %v2826_v51, %v6884_v36 }
 0x6ab   :  { %v3862_v22 = vmul.f32 -1.442695, %v4946_v37  ;;  %v3864_v27 = vmul.f32 -1.442695, %v4962_v49 }
 0x6ac   :  { %v3863_v55 = vmul.f32 -1.442695, %v4947_v23 }
 0x6ad   :  { %5243 = vpow2.f32 %v3862_v22 }
 0x6ae   :  { %5245 = vpow2.f32 %v3863_v55 }
 0x6af   :  { %5247 = vtanh.f32 %v4963_v33 }
 0x6b0   :  { %5249 = vpow2.f32 %v3864_v27 }
 0x6b7   :  { %v5244_v24 = vpop.eup %5243 }
 0x6b8   :  { %v2842_v5 = vadd.f32 1.0, %v5244_v24  ;;  %v5246_v20 = vpop.eup %5245 }
 0x6b9   :  { %v2843_v45 = vadd.f32 1.0, %v5246_v20  ;;  %v5248_v44 = vpop.eup %5247 }
 0x6ba   :  { %5251 = vrcp.f32 %v2842_v5  ;;  %v5250_v1 = vpop.eup %5249 }
 0x6bb   :  { %5253 = vrcp.f32 %v2843_v45  ;;  %v2844_v22 = vadd.f32 1.0, %v5250_v1 }
 0x6bd   :  { %5255 = vrcp.f32 %v2844_v22 }
 0x6c4   :  { %v5252_v40 = vpop.eup %5251 }
 0x6c5   :  { %v2853_v37 = vmul.f32 %v5252_v40, %v5248_v44  ;;  %v5254_v23 = vpop.eup %5253 }
 0x6c6   :  { %v2852_v55 = vmul.f32 %v5254_v23, %v6445_v39 }
 0x6c7   :  { %v5256_v39 = vpop.eup %5255 }
 0x6c8   :  { %v2923_v4 = vpop.f32.mrb[20].mxu0  ;;  %v2994_v48 = vpop.f32.mrb[20].mxu1  ;;  %v6529_v51 = vadd.f32 %v2853_v37, %v2852_v55 }
 0x6c9   :  { %v4972_v49 = vadd.f32 %v2923_v4, %v6102_v28  ;;  %v2925_v33 = vpop.f32.mrb[21].mxu0  ;;  %v2996_v24 = vpop.f32.mrb[21].mxu1  ;;  %v4988_v1 = vadd.f32 %v2994_v48, %v6111_v2 }
 0x6ca   :  { %v4973_v5 = vadd.f32 %v2925_v33, %v6885_v30  ;;  %5257 = vtanh.f32 %v6529_v51  ;;  %v4989_v44 = vadd.f32 %v2996_v24, %v6114_v29 }
 0x6cb   :  { %v3865_v27 = vmul.f32 -1.442695, %v4972_v49  ;;  %v3867_v40 = vmul.f32 -1.442695, %v4988_v1 }
 0x6cc   :  { %v3866_v20 = vmul.f32 -1.442695, %v4973_v5 }
 0x6cd   :  { %5259 = vpow2.f32 %v3865_v27 }
 0x6ce   :  { %5261 = vpow2.f32 %v3866_v20 }
 0x6cf   :  { %5263 = vtanh.f32 %v4989_v44 }
 0x6d0   :  { %5265 = vpow2.f32 %v3867_v40  ;;  %v7004_v40 = vld [vmem:[#allocation32_spill] sm:$0xff] }
 0x6d4   :  { %v5258_v45 = vpop.eup %5257 }
 0x6d5   :  { %v2856_v37 = vmul.f32 %v5258_v45, %v5256_v39  ;;  %v6999_v45 = vld [vmem:[#allocation27_spill] sm:$0xff] }
 0x6d7   :  { %v5260_v23 = vpop.eup %5259  ;;  %3027 = vst [vmem:[#allocation15 + $0x50] sm:$0xff] %v2856_v37  ;;  %3102 = vmatmul.mubr.f32.vlgmr.msra.gmra.mrb[12].mxu0 %v2856_v37  ;;  %3173 = vmatmul.mubr.f32.vlgmr.msra.gmra.mrb[12].mxu1 %v2856_v37  ;;  %v7005_v37 = vld [vmem:[#allocation33_spill] sm:$0xff] }
 0x6d8   :  { %v3012_v55 = vadd.f32 1.0, %v5260_v23  ;;  %v5262_v22 = vpop.eup %5261  ;;  %4747 = vmatpush1.bf16.msra.mxu0 %v5957_v10  ;;  %4779 = vmatpush1.bf16.msra.mxu1 %v5961_v13  ;;  %v7008_v23 = vld [vmem:[#allocation36_spill] sm:$0xff] }
 0x6d9   :  { %v3013_v48 = vadd.f32 1.0, %v5262_v22  ;;  %4749 = vmatprep.subr.bf16.mxu0 %v5963_v14  ;;  %4781 = vmatprep.subr.bf16.mxu1 %v5967_v62  ;;  %v5264_v4 = vpop.eup %5263  ;;  %v7010_v22 = vld [vmem:[#allocation38_spill] sm:$0xff] }
 0x6da   :  { %5267 = vrcp.f32 %v3012_v55  ;;  %3271 = vmatprep.mubr.f32.mxu0 %v6852_v41  ;;  %3342 = vmatprep.mubr.f32.mxu1 %v6852_v41  ;;  %v5266_v49 = vpop.eup %5265  ;;  %v7009_v55 = vld [vmem:[#allocation37_spill] sm:$0xff] }
 0x6db   :  { %5269 = vrcp.f32 %v3013_v48  ;;  %v3014_v27 = vadd.f32 1.0, %v5266_v49  ;;  %v7011_v48 = vld [vmem:[#allocation39_spill] sm:$0xff]  ;;  %v7013_v49 = vld [vmem:[#allocation41_spill] sm:$0xff] }
 0x6dc   :  { %4751 = vmatpush1.bf16.msra.mxu0 %v5971_v34  ;;  %4783 = vmatpush1.bf16.msra.mxu1 %v5975_v35 }
 0x6dd   :  { %4753 = vmatprep.subr.bf16.mxu0 %v5977_v60  ;;  %4785 = vmatprep.subr.bf16.mxu1 %v5980_v46  ;;  %5271 = vrcp.f32 %v3014_v27  ;;  %v7017_v27 = vld [vmem:[#allocation45_spill] sm:$0xff] }
 0x6e0   :  { %4755 = vmatpush1.bf16.msra.mxu0 %v5985_v63  ;;  %4787 = vmatpush1.bf16.msra.mxu1 %v6858_v7 }
 0x6e1   :  { %4757 = vmatprep.subr.bf16.mxu0 %v6859_v25  ;;  %4789 = vmatprep.subr.bf16.mxu1 %v6860_v61 }
 0x6e4   :  { %v5268_v33 = vpop.eup %5267  ;;  %4759 = vmatpush1.bf16.msra.mxu0 %v6861_v26  ;;  %4791 = vmatpush1.bf16.msra.mxu1 %v6862_v32 }
 0x6e5   :  { %v3023_v24 = vmul.f32 %v5268_v33, %v5264_v4  ;;  %v5270_v5 = vpop.eup %5269  ;;  %4761 = vmatprep.subr.bf16.mxu0 %v6863_v47  ;;  %4793 = vmatprep.subr.bf16.mxu1 %v6864_v3  ;;  %v7012_v4 = vld [vmem:[#allocation40_spill] sm:$0xff]  ;;  %v7014_v33 = vld [vmem:[#allocation42_spill] sm:$0xff] }
 0x6e6   :  { %v3022_v20 = vmul.f32 %v5270_v5, %v6471_v31  ;;  %v7016_v5 = vld [vmem:[#allocation44_spill] sm:$0xff] }
 0x6e7   :  { %v5272_v31 = vpop.eup %5271 }
 0x6e8   :  { %v6555_v1 = vadd.f32 %v3023_v24, %v3022_v20  ;;  %4763 = vmatpush1.bf16.msra.mxu0 %v6865_v11  ;;  %4795 = vmatpush1.bf16.msra.mxu1 %v6866_v57  ;;  %v7015_v24 = vld [vmem:[#allocation43_spill] sm:$0xff]  ;;  %v7018_v20 = vld [vmem:[#allocation46_spill] sm:$0xff] }
 0x6e9   :  { %4765 = vmatprep.subr.bf16.mxu0 %v6015_v59  ;;  %4797 = vmatprep.subr.bf16.mxu1 %v6867_v16 }
 0x6ea   :  { %5273 = vtanh.f32 %v6555_v1 }
 0x6ec   :  { %4767 = vmatpush1.bf16.msra.mxu0 %v6021_v38  ;;  %4799 = vmatpush1.bf16.msra.mxu1 %v6025_v0 }
 0x6ed   :  { %4769 = vmatprep.subr.bf16.mxu0 %v6027_v50  ;;  %4801 = vmatprep.subr.bf16.mxu1 %v6030_v8 }
 0x6f0   :  { %4771 = vmatpush1.bf16.msra.mxu0 %v6033_v17  ;;  %4803 = vmatpush1.bf16.msra.mxu1 %v6037_v58 }
 0x6f1   :  { %4773 = vmatprep.subr.bf16.mxu0 %v6039_v19  ;;  %4805 = vmatprep.subr.bf16.mxu1 %v6042_v43 }
 0x6f4   :  { %v5274_v39 = vpop.eup %5273  ;;  %4775 = vmatpush1.bf16.msra.mxu0 %v6045_v54  ;;  %4807 = vmatpush1.bf16.msra.mxu1 %v6049_v52 }
 0x6f5   :  { %v3026_v44 = vmul.f32 %v5274_v39, %v5272_v31  ;;  %4809 = vmatprep.subr.bf16.mxu0 %v5758_v53  ;;  %4841 = vmatprep.subr.bf16.mxu1 %v5762_v56  ;;  %v6997_v53 = vld [vmem:[#allocation25_spill] sm:$0xff]  ;;  %v6998_v56 = vld [vmem:[#allocation26_spill] sm:$0xff]  ;;  %v7019_v31 = vld [vmem:[#allocation47_spill] sm:$0xff] }
 0x6f6   :  { %v7020_v39 = vld [vmem:[#allocation48_spill] sm:$0xff] }
 0x6f7   :  { %3028 = vst [vmem:[#allocation15 + $0x28] sm:$0xff] %v3026_v44  ;;  %3272 = vmatmul.mubr.f32.vlgmr.msra.gmra.mrb[18].mxu0 %v3026_v44  ;;  %3343 = vmatmul.mubr.f32.vlgmr.msra.gmra.mrb[18].mxu1 %v3026_v44  ;;  %v7021_v44 = vld [vmem:[#allocation49_spill] sm:$0xff] }
 0x6f8   :  { %4811 = vmatpush1.bf16.msra.mxu0 %v5817_v6  ;;  %4843 = vmatpush1.bf16.msra.mxu1 %v5820_v9  ;;  %v7000_v6 = vld [vmem:[#allocation28_spill] sm:$0xff]  ;;  %v7001_v9 = vld [vmem:[#allocation29_spill] sm:$0xff] }
 0x6f9   :  { %4813 = vmatprep.subr.bf16.mxu0 %v5822_v12  ;;  %4845 = vmatprep.subr.bf16.mxu1 %v5826_v15  ;;  %v7002_v12 = vld [vmem:[#allocation30_spill] sm:$0xff]  ;;  %v7003_v15 = vld [vmem:[#allocation31_spill] sm:$0xff] }
 0x6fa   :  { %3451 = vmatprep.mubr.f32.mxu0 %v6852_v41  ;;  %3522 = vmatprep.mubr.f32.mxu1 %v6852_v41 }
 0x6fc   :  { %4815 = vmatpush1.bf16.msra.mxu0 %v5831_v18  ;;  %4847 = vmatpush1.bf16.msra.mxu1 %v5835_v21  ;;  %v7006_v18 = vld [vmem:[#allocation34_spill] sm:$0xff]  ;;  %v7007_v21 = vld [vmem:[#allocation35_spill] sm:$0xff] }
 0x6fd   :  { %4817 = vmatprep.subr.bf16.mxu0 %v6997_v53  ;;  %4849 = vmatprep.subr.bf16.mxu1 %v6998_v56  ;;  %v7022_v53 = vld [vmem:[#allocation50_spill] sm:$0xff] }
 0x700   :  { %4819 = vmatpush1.bf16.msra.mxu0 %v6999_v45  ;;  %4851 = vmatpush1.bf16.msra.mxu1 %v7000_v6  ;;  %v7023_v6 = vld [vmem:[#allocation61_spill] sm:$0xff] }
 0x701   :  { %4821 = vmatprep.subr.bf16.mxu0 %v7001_v9  ;;  %4853 = vmatprep.subr.bf16.mxu1 %v7002_v12 }
 0x704   :  { %4823 = vmatpush1.bf16.msra.mxu0 %v7003_v15  ;;  %4855 = vmatpush1.bf16.msra.mxu1 %v7004_v40 }
 0x705   :  { %4825 = vmatprep.subr.bf16.mxu0 %v7005_v37  ;;  %4857 = vmatprep.subr.bf16.mxu1 %v7006_v18 }
 0x708   :  { %4827 = vmatpush1.bf16.msra.mxu0 %v7007_v21  ;;  %4859 = vmatpush1.bf16.msra.mxu1 %v7008_v23  ;;  %v7024_v21 = vld [vmem:[#allocation63_spill] sm:$0xff] }
 0x709   :  { %4829 = vmatprep.subr.bf16.mxu0 %v7009_v55  ;;  %4861 = vmatprep.subr.bf16.mxu1 %v7010_v22 }
 0x70c   :  { %4831 = vmatpush1.bf16.msra.mxu0 %v7011_v48  ;;  %4863 = vmatpush1.bf16.msra.mxu1 %v7012_v4 }
 0x70d   :  { %4833 = vmatprep.subr.bf16.mxu0 %v7013_v49  ;;  %4865 = vmatprep.subr.bf16.mxu1 %v7014_v33 }
 0x710   :  { %4835 = vmatpush1.bf16.msra.mxu0 %v7015_v24  ;;  %4867 = vmatpush1.bf16.msra.mxu1 %v7016_v5 }
 0x711   :  { %4837 = vmatprep.subr.bf16.mxu0 %v7017_v27  ;;  %4869 = vmatprep.subr.bf16.mxu1 %v7018_v20 }
 0x714   :  { %4839 = vmatpush1.bf16.msra.mxu0 %v7019_v31  ;;  %4871 = vmatpush1.bf16.msra.mxu1 %v7020_v39 }
 0x715   :  { %4873 = vmatprep.subr.bf16.mxu0 %v7021_v44  ;;  %4905 = vmatprep.subr.bf16.mxu1 %v7022_v53 }
 0x7aa   :  { %v3103_v56 = vpop.f32.mrb[12].mxu0  ;;  %v3174_v45 = vpop.f32.mrb[12].mxu1 }
 0x7ab   :  { %v4948_v9 = vadd.f32 %v3103_v56, %v7023_v6  ;;  %v3105_v12 = vpop.f32.mrb[13].mxu0  ;;  %v3176_v15 = vpop.f32.mrb[13].mxu1  ;;  %v4964_v23 = vadd.f32 %v3174_v45, %v7024_v21 }
 0x7ac   :  { %v4949_v40 = vadd.f32 %v3105_v12, %v6882_v42  ;;  %v4965_v55 = vadd.f32 %v3176_v15, %v6884_v36 }
 0x7ad   :  { %v3868_v37 = vmul.f32 -1.442695, %v4948_v9  ;;  %v3870_v22 = vmul.f32 -1.442695, %v4964_v23 }
 0x7ae   :  { %v3869_v18 = vmul.f32 -1.442695, %v4949_v40 }
 0x7af   :  { %5275 = vpow2.f32 %v3868_v37 }
 0x7b0   :  { %5277 = vpow2.f32 %v3869_v18 }
 0x7b1   :  { %5279 = vtanh.f32 %v4965_v55 }
 0x7b2   :  { %5281 = vpow2.f32 %v3870_v22 }
 0x7b9   :  { %v5276_v48 = vpop.eup %5275 }
 0x7ba   :  { %v3192_v4 = vadd.f32 1.0, %v5276_v48  ;;  %v5278_v49 = vpop.eup %5277 }
 0x7bb   :  { %v3193_v33 = vadd.f32 1.0, %v5278_v49  ;;  %v5280_v24 = vpop.eup %5279 }
 0x7bc   :  { %5283 = vrcp.f32 %v3192_v4  ;;  %v5282_v5 = vpop.eup %5281 }
 0x7bd   :  { %5285 = vrcp.f32 %v3193_v33  ;;  %v3194_v39 = vadd.f32 1.0, %v5282_v5 }
 0x7bf   :  { %5287 = vrcp.f32 %v3194_v39 }
 0x7c6   :  { %v5284_v27 = vpop.eup %5283 }
 0x7c7   :  { %v3203_v20 = vmul.f32 %v5284_v27, %v5280_v24  ;;  %v5286_v31 = vpop.eup %5285 }
 0x7c8   :  { %v3202_v44 = vmul.f32 %v5286_v31, %v6529_v51 }
 0x7c9   :  { %v5288_v51 = vpop.eup %5287 }
 0x7ca   :  { %v3273_v53 = vpop.f32.mrb[18].mxu0  ;;  %v3344_v56 = vpop.f32.mrb[18].mxu1  ;;  %v6613_v45 = vadd.f32 %v3203_v20, %v3202_v44 }
 0x7cb   :  { %v4970_v9 = vadd.f32 %v3273_v53, %v6102_v28  ;;  %v3275_v12 = vpop.f32.mrb[19].mxu0  ;;  %v3346_v15 = vpop.f32.mrb[19].mxu1  ;;  %v4986_v23 = vadd.f32 %v3344_v56, %v6111_v2 }
 0x7cc   :  { %v4971_v40 = vadd.f32 %v3275_v12, %v6885_v30  ;;  %5289 = vtanh.f32 %v6613_v45  ;;  %v4987_v55 = vadd.f32 %v3346_v15, %v6114_v29 }
 0x7cd   :  { %v3871_v37 = vmul.f32 -1.442695, %v4970_v9  ;;  %v3873_v48 = vmul.f32 -1.442695, %v4986_v23 }
 0x7ce   :  { %v3872_v18 = vmul.f32 -1.442695, %v4971_v40 }
 0x7cf   :  { %5291 = vpow2.f32 %v3871_v37 }
 0x7d0   :  { %5293 = vpow2.f32 %v3872_v18 }
 0x7d1   :  { %5295 = vtanh.f32 %v4987_v55 }
 0x7d2   :  { %5297 = vpow2.f32 %v3873_v48 }
 0x7d6   :  { %v5290_v22 = vpop.eup %5289 }
 0x7d7   :  { %v3206_v4 = vmul.f32 %v5290_v22, %v5288_v51 }
 0x7d9   :  { %v5292_v49 = vpop.eup %5291  ;;  %3377 = vst [vmem:[#allocation15 + $0x60] sm:$0xff] %v3206_v4  ;;  %3452 = vmatmul.mubr.f32.vlgmr.msra.gmra.mrb[14].mxu0 %v3206_v4  ;;  %3523 = vmatmul.mubr.f32.vlgmr.msra.gmra.mrb[14].mxu1 %v3206_v4 }
 0x7da   :  { %v3362_v33 = vadd.f32 1.0, %v5292_v49  ;;  %v5294_v24 = vpop.eup %5293  ;;  %4875 = vmatpush1.bf16.msra.mxu0 %v5957_v10  ;;  %4907 = vmatpush1.bf16.msra.mxu1 %v5961_v13 }
 0x7db   :  { %v3363_v5 = vadd.f32 1.0, %v5294_v24  ;;  %4877 = vmatprep.subr.bf16.mxu0 %v5963_v14  ;;  %4909 = vmatprep.subr.bf16.mxu1 %v5967_v62  ;;  %v5296_v10 = vpop.eup %5295 }
 0x7dc   :  { %5299 = vrcp.f32 %v3362_v33  ;;  %3621 = vmatprep.mubr.f32.mxu0 %v6852_v41  ;;  %3692 = vmatprep.mubr.f32.mxu1 %v6852_v41  ;;  %v5298_v13 = vpop.eup %5297 }
 0x7dd   :  { %5301 = vrcp.f32 %v3363_v5 }
 0x7de   :  { %4879 = vmatpush1.bf16.msra.mxu0 %v5971_v34  ;;  %4911 = vmatpush1.bf16.msra.mxu1 %v5975_v35  ;;  %v3364_v35 = vadd.f32 1.0, %v5298_v13 }
 0x7df   :  { %4881 = vmatprep.subr.bf16.mxu0 %v5977_v60  ;;  %4913 = vmatprep.subr.bf16.mxu1 %v5980_v46 }
 0x7e0   :  { %5303 = vrcp.f32 %v3364_v35 }
 0x7e2   :  { %4883 = vmatpush1.bf16.msra.mxu0 %v5985_v63  ;;  %4915 = vmatpush1.bf16.msra.mxu1 %v6858_v7 }
 0x7e3   :  { %4885 = vmatprep.subr.bf16.mxu0 %v6859_v25  ;;  %4917 = vmatprep.subr.bf16.mxu1 %v6860_v61 }
 0x7e6   :  { %v5300_v14 = vpop.eup %5299  ;;  %4887 = vmatpush1.bf16.msra.mxu0 %v6861_v26  ;;  %4919 = vmatpush1.bf16.msra.mxu1 %v6862_v32 }
 0x7e7   :  { %v3373_v62 = vmul.f32 %v5300_v14, %v5296_v10  ;;  %v5302_v34 = vpop.eup %5301  ;;  %4889 = vmatprep.subr.bf16.mxu0 %v6863_v47  ;;  %4921 = vmatprep.subr.bf16.mxu1 %v6864_v3 }
 0x7e8   :  { %v3372_v60 = vmul.f32 %v5302_v34, %v6555_v1 }
 0x7ea   :  { %v6639_v46 = vadd.f32 %v3373_v62, %v3372_v60  ;;  %4891 = vmatpush1.bf16.msra.mxu0 %v6865_v11  ;;  %4923 = vmatpush1.bf16.msra.mxu1 %v6866_v57  ;;  %v5304_v63 = vpop.eup %5303 }
 0x7eb   :  { %4893 = vmatprep.subr.bf16.mxu0 %v6015_v59  ;;  %4925 = vmatprep.subr.bf16.mxu1 %v6867_v16 }
 0x7ec   :  { %5305 = vtanh.f32 %v6639_v46 }
 0x7ee   :  { %4895 = vmatpush1.bf16.msra.mxu0 %v6021_v38  ;;  %4927 = vmatpush1.bf16.msra.mxu1 %v6025_v0 }
 0x7ef   :  { %4897 = vmatprep.subr.bf16.mxu0 %v6027_v50  ;;  %4929 = vmatprep.subr.bf16.mxu1 %v6030_v8 }
 0x7f2   :  { %4899 = vmatpush1.bf16.msra.mxu0 %v6033_v17  ;;  %4931 = vmatpush1.bf16.msra.mxu1 %v6037_v58 }
 0x7f3   :  { %4901 = vmatprep.subr.bf16.mxu0 %v6039_v19  ;;  %4933 = vmatprep.subr.bf16.mxu1 %v6042_v43 }
 0x7f6   :  { %v5306_v59 = vpop.eup %5305  ;;  %4903 = vmatpush1.bf16.msra.mxu0 %v6045_v54  ;;  %4935 = vmatpush1.bf16.msra.mxu1 %v6049_v52 }
 0x7f7   :  { %v3376_v38 = vmul.f32 %v5306_v59, %v5304_v63 }
 0x7f9   :  { %3378 = vst [vmem:[#allocation15 + $0x18] sm:$0xff] %v3376_v38  ;;  %3622 = vmatmul.mubr.f32.vlgmr.msra.gmra.mrb[16].mxu0 %v3376_v38  ;;  %3693 = vmatmul.mubr.f32.vlgmr.msra.gmra.mrb[16].mxu1 %v3376_v38 }
 0x8ac   :  { %v3453_v0 = vpop.f32.mrb[14].mxu0  ;;  %v3524_v50 = vpop.f32.mrb[14].mxu1 }
 0x8ad   :  { %v4950_v17 = vadd.f32 %v3453_v0, %v7023_v6  ;;  %v3455_v8 = vpop.f32.mrb[15].mxu0  ;;  %v3526_v58 = vpop.f32.mrb[15].mxu1  ;;  %v4966_v54 = vadd.f32 %v3524_v50, %v7024_v21 }
 0x8ae   :  { %v4951_v19 = vadd.f32 %v3455_v8, %v6882_v42  ;;  %v4967_v52 = vadd.f32 %v3526_v58, %v6884_v36 }
 0x8af   :  { %v3874_v41 = vmul.f32 -1.442695, %v4950_v17  ;;  %v3876_v7 = vmul.f32 -1.442695, %v4966_v54 }
 0x8b0   :  { %v3875_v43 = vmul.f32 -1.442695, %v4951_v19 }
 0x8b1   :  { %5307 = vpow2.f32 %v3874_v41 }
 0x8b2   :  { %5309 = vpow2.f32 %v3875_v43 }
 0x8b3   :  { %5311 = vtanh.f32 %v4967_v52 }
 0x8b4   :  { %5313 = vpow2.f32 %v3876_v7 }
 0x8bb   :  { %v5308_v25 = vpop.eup %5307 }
 0x8bc   :  { %v3542_v61 = vadd.f32 1.0, %v5308_v25  ;;  %v5310_v26 = vpop.eup %5309 }
 0x8bd   :  { %v3543_v32 = vadd.f32 1.0, %v5310_v26  ;;  %v5312_v47 = vpop.eup %5311 }
 0x8be   :  { %5315 = vrcp.f32 %v3542_v61  ;;  %v5314_v3 = vpop.eup %5313 }
 0x8bf   :  { %5317 = vrcp.f32 %v3543_v32  ;;  %v3544_v16 = vadd.f32 1.0, %v5314_v3 }
 0x8c1   :  { %5319 = vrcp.f32 %v3544_v16 }
 0x8c8   :  { %v5316_v42 = vpop.eup %5315 }
 0x8c9   :  { %v3553_v11 = vmul.f32 %v5316_v42, %v5312_v47  ;;  %v5318_v57 = vpop.eup %5317 }
 0x8ca   :  { %v3552_v1 = vmul.f32 %v5318_v57, %v6613_v45 }
 0x8cb   :  { %v5320_v9 = vpop.eup %5319 }
 0x8cc   :  { %v3623_v6 = vpop.f32.mrb[16].mxu0  ;;  %v3694_v21 = vpop.f32.mrb[16].mxu1  ;;  %v3554_v36 = vadd.f32 %v3553_v11, %v3552_v1 }
 0x8cd   :  { %v4968_v27 = vadd.f32 %v3623_v6, %v6102_v28  ;;  %v3625_v20 = vpop.f32.mrb[17].mxu0  ;;  %v3696_v31 = vpop.f32.mrb[17].mxu1  ;;  %v4984_v56 = vadd.f32 %v3694_v21, %v6111_v2 }
 0x8ce   :  { %v4969_v39 = vadd.f32 %v3625_v20, %v6885_v30  ;;  %5321 = vtanh.f32 %v3554_v36  ;;  %3732 = vst [vmem:[#allocation18] sm:$0xff] %v3554_v36  ;;  %v4985_v45 = vadd.f32 %v3696_v31, %v6114_v29 }
 0x8cf   :  { %v3877_v44 = vmul.f32 -1.442695, %v4968_v27  ;;  %v3879_v15 = vmul.f32 -1.442695, %v4984_v56 }
 0x8d0   :  { %v3878_v53 = vmul.f32 -1.442695, %v4969_v39 }
 0x8d1   :  { %5323 = vpow2.f32 %v3877_v44 }
 0x8d2   :  { %5325 = vpow2.f32 %v3878_v53 }
 0x8d3   :  { %5327 = vtanh.f32 %v4985_v45 }
 0x8d4   :  { %5329 = vpow2.f32 %v3879_v15 }
 0x8d8   :  { %v5322_v12 = vpop.eup %5321 }
 0x8d9   :  { %v3556_v40 = vmul.f32 %v5322_v12, %v5320_v9 }
 0x8db   :  { %v5324_v28 = vpop.eup %5323  ;;  %3727 = vst [vmem:[#allocation15 + $0x70] sm:$0xff] %v3556_v40  ;;  %3729 = vst [vmem:[#allocation16] sm:$0xff] %v3556_v40 }
 0x8dc   :  { %v3712_v37 = vadd.f32 1.0, %v5324_v28  ;;  %v5326_v30 = vpop.eup %5325 }
 0x8dd   :  { %v3713_v18 = vadd.f32 1.0, %v5326_v30  ;;  %v5328_v23 = vpop.eup %5327 }
 0x8de   :  { %5331 = vrcp.f32 %v3712_v37  ;;  %v5330_v51 = vpop.eup %5329 }
 0x8df   :  { %5333 = vrcp.f32 %v3713_v18  ;;  %v3714_v48 = vadd.f32 1.0, %v5330_v51 }
 0x8e1   :  { %5335 = vrcp.f32 %v3714_v48 }
 0x8e8   :  { %v5332_v55 = vpop.eup %5331 }
 0x8e9   :  { %v3723_v2 = vmul.f32 %v5332_v55, %v5328_v23  ;;  %v5334_v22 = vpop.eup %5333 }
 0x8ea   :  { %v3722_v29 = vmul.f32 %v5334_v22, %v6639_v46 }
 0x8eb   :  { %v5336_v49 = vpop.eup %5335 }
 0x8ec   :  { %v3724_v4 = vadd.f32 %v3723_v2, %v3722_v29 }
 0x8ee   :  { %5337 = vtanh.f32 %v3724_v4  ;;  %3734 = vst [vmem:[#allocation18 + $0x8] sm:$0xff] %v3724_v4 }
 0x8f8   :  { %v5338_v33 = vpop.eup %5337 }
 0x8f9   :  { %v3726_v24 = vmul.f32 %v5338_v33, %v5336_v49 }
 0x8fb   :  { %3728 = vst [vmem:[#allocation15 + $0x8] sm:$0xff] %v3726_v24  ;;  %3731 = vst [vmem:[#allocation16 + $0x8] sm:$0xff] %v3726_v24 }
 0x8fc   :  { %5504 = shalt.err (!%p5501_p4)
}
 0x8fd   :  { %s5505_s5 = scalar_lea.hbm %s6730_s8, 256 }
 0x8fe   :  { %p5506_p5 = scmp.ne.s32.totalorder %s6730_s8, %s5505_s5  ;;  %p5509_p6 = scmp.lt.u32.totalorder %s5505_s5, %s6730_s8 }
 0x900   :  { %p5511_p7 = pnand %p5509_p6, %p5506_p5 }
 0x902   :  { %5514 = shalt.err (!%p5511_p7)
}
 0x903   :  { %3758 = dma.vmem_to_hbm [thread:$0]  %s3753_s0, 256, %s6730_s8, [#allocation17], %s5579_s24, %s5579_s24, %s5580_s27  }
 0x904   :  { %s5515_s22 = scalar_lea.vmem %s6666_s12, 2048  ;;  %p5520_p9 = scmp.lt.s32.totalorder %s6666_s12, %s6666_s12 }
 0x905   :  { %p5516_p8 = scmp.ne.s32.totalorder %s6666_s12, %s5515_s22  ;;  %p5521_p10 = scmp.lt.s32.totalorder %s5515_s22, %s5515_s22 }
 0x907   :  { %p5522_p11 = por %p5521_p10, %p5520_p9 }
 0x909   :  { %p5523_p12 = pnand %p5522_p11, %p5516_p8 }
 0x90b   :  { %5526 = shalt.err (!%p5523_p12)
}
 0x90c   :  { %s5527_s3 = scalar_lea.hbm %s6729_s7, 2048 }
 0x90d   :  { %p5528_p13 = scmp.ne.s32.totalorder %s6729_s7, %s5527_s3  ;;  %p5531_p0 = scmp.lt.u32.totalorder %s5527_s3, %s6729_s7 }
 0x90f   :  { %p5533_p1 = pnand %p5531_p0, %p5528_p13 }
 0x911   :  { %5536 = shalt.err (!%p5533_p1)
}
 0x912   :  { %s5588_s8 = smov 256   ;;  %s5589_s4 = smov 16  }
 0x913   :  { %3746 = dma.vmem_to_hbm [thread:$0]  %s6666_s12, 2048, %s6729_s7, [#allocation5], %s5588_s8, %s5588_s8, %s5589_s4  }
 0x914   :  { %s5537_s0 = scalar_lea.vmem %s6668_s14, 256  ;;  %p5542_p3 = scmp.lt.s32.totalorder %s6668_s14, %s6668_s14 }
 0x915   :  { %p5538_p2 = scmp.ne.s32.totalorder %s6668_s14, %s5537_s0  ;;  %p5543_p4 = scmp.lt.s32.totalorder %s5537_s0, %s5537_s0 }
 0x917   :  { %p5544_p5 = por %p5543_p4, %p5542_p3 }
 0x919   :  { %p5545_p6 = pnand %p5544_p5, %p5538_p2 }
 0x91b   :  { %5548 = shalt.err (!%p5545_p6)
}
 0x91c   :  { %s5549_s15 = scalar_lea.hbm %s6731_s9, 256 }
 0x91d   :  { %p5550_p7 = scmp.ne.s32.totalorder %s6731_s9, %s5549_s15  ;;  %p5553_p8 = scmp.lt.u32.totalorder %s5549_s15, %s6731_s9 }
 0x91f   :  { %p5555_p9 = pnand %p5553_p8, %p5550_p7 }
 0x921   :  { %5558 = shalt.err (!%p5555_p9)
}
 0x922   :  { %3770 = dma.vmem_to_hbm [thread:$0]  %s6668_s14, 256, %s6731_s9, [#allocation17], %s5579_s24, %s5579_s24, %s5580_s27  }
 0x923   :  { %5567 = dma.done.wait [#allocation5], 2048  }
 0x924   :  { %5568 = vsyncadd [#allocation5], 4294965248 }
 0x925   :  { %5569 = dma.done.wait [#allocation17], 512  }
 0x926   :  { %5570 = vsyncadd [#allocation17], 4294966784 }
 0x927   :  { %3780 = vsyncpa [#allocation4], 1 }
 0x928   :  { %3781 = vsyncpa [#allocation7], 1 }
 0x929   :  { %3782 = vsyncpa [#allocation10], 1 }
 0x92a   :  { %3783 = vsyncpa [#allocation13], 1 }
 0x92b   :  { %3784 = vsyncpa [#allocation5], 1 }
 0x92c   :  { %3785 = vsyncpa [#allocation17], 1 }

</bundles_post_ra>
